<compile_context>
chip_gen: v5e
topology: v5e:2x2
jax: 0.10.0
libtpu: 0.0.40
codegen_flags: <defaults>
</compile_context>

<pallas_src>
import functools

import jax
import jax.numpy as jnp
from jax.experimental import pallas as pl
from jax.experimental.pallas import tpu as pltpu


LEAKY_SLOPE = 0.2


def _round_up(x, m):
    return ((x + m - 1) // m) * m


def _pick_row_tile(m, pref):
    """Pick a row-tile size (multiple of 8) and the padded row count."""
    if m >= pref:
        return pref, _round_up(m, pref)
    t = _round_up(m, 8)
    return t, t


# --------------------------------------------------------------------------
# Kernel 1: negative squared pairwise distance, tiled over query rows.
#   d[i, j] = -||x_i - x_j||^2 = 2 x_i.x_j - ||x_i||^2 - ||x_j||^2
# --------------------------------------------------------------------------
def _pdist_kernel(q_ref, k_ref, o_ref):
    q = q_ref[0].astype(jnp.float32)                                  # (tQ, C)
    kx = k_ref[0].astype(jnp.float32)                                 # (N, C)
    g = jnp.dot(q, kx.T, preferred_element_type=jnp.float32)          # (tQ, N)
    qsq = jnp.sum(q * q, axis=1, keepdims=True)                       # (tQ, 1)
    ksq = jnp.sum(kx * kx, axis=1, keepdims=True)                     # (N, 1)
    o_ref[0] = (2.0 * g - qsq - ksq.T).astype(o_ref.dtype)


def pairwise_neg_sqdist(feat, *, tq_pref=512):
    """feat: (B, N, C) -> (B, N, N) negative squared distances."""
    B, N, C = feat.shape
    tQ = tq_pref if (N >= tq_pref and N % tq_pref == 0) else N
    return pl.pallas_call(
        _pdist_kernel,
        out_shape=jax.ShapeDtypeStruct((B, N, N), jnp.float32),
        grid_spec=pltpu.PrefetchScalarGridSpec(
            num_scalar_prefetch=0,
            grid=(B, N // tQ),
            in_specs=[pl.BlockSpec((1, tQ, C), lambda b, q: (b, q, 0)),
                      pl.BlockSpec((1, N, C), lambda b, q: (b, 0, 0))],
            out_specs=pl.BlockSpec((1, tQ, N), lambda b, q: (b, q, 0)),
        ),
        compiler_params=pltpu.CompilerParams(
            dimension_semantics=("parallel", "parallel")),
    )(feat, feat)


# --------------------------------------------------------------------------
# Kernel 2: fused EdgeConv block.
#   For a tile of points: edge-feature algebra (no 2C tensor), all 1x1 convs
#   (folded BN + LeakyReLU), then max over K neighbors -> (tM, Cout).
# --------------------------------------------------------------------------
def _edge_block_kernel(knn_ref, cent_ref, *refs, n_layers, slope):
    o_ref = refs[-1]
    knn = knn_ref[...].astype(jnp.float32)                            # (tM, K, C)
    cent = cent_ref[...].astype(jnp.float32)                          # (tM, C)
    tM, K, C = knn.shape

    wk = refs[0][...].astype(jnp.float32)                             # (C, C1)
    wc = refs[1][...].astype(jnp.float32)                             # (C, C1)
    b1 = refs[2][...].astype(jnp.float32)                             # (1, C1)

    # Layer 1 with edge-feature algebra folded in:
    #   (knn - cent) @ w1[:C] + cent @ w1[C:]  ==  knn @ wk + cent @ wc
    c_term = jnp.dot(cent, wc, preferred_element_type=jnp.float32) + b1       # (tM, C1)
    y = jnp.dot(knn.reshape(tM * K, C), wk, preferred_element_type=jnp.float32)
    y = y.reshape(tM, K, -1) + c_term[:, None, :]
    y = jnp.where(y > 0, y, slope * y)                                # LeakyReLU(0.2)

    r = 3
    for _ in range(n_layers - 1):
        w = refs[r][...].astype(jnp.float32)
        b = refs[r + 1][...].astype(jnp.float32)
        r += 2
        cin = y.shape[-1]
        y = jnp.dot(y.reshape(tM * K, cin), w, preferred_element_type=jnp.float32) + b
        y = jnp.where(y > 0, y, slope * y)
        y = y.reshape(tM, K, -1)

    o_ref[...] = jnp.max(y, axis=1).astype(o_ref.dtype)               # max over K


def edge_conv_block(feat, idx, layers, *, row_tile=256):
    """feat: (B, N, C); idx: (B, N, K) kNN indices; layers: [(w, b)], w0: (2C, C1)."""
    B, N, C = feat.shape
    K = idx.shape[-1]
    # TODO(synk): data-dependent neighbor gather stays in XLA; an in-kernel
    # scalar-prefetch DMA gather would remove this last large HBM intermediate.
    knn_feat = jax.vmap(lambda f, i: f[i])(feat, idx)                 # (B, N, K, C)

    BN = B * N
    tM, BNpad = _pick_row_tile(BN, row_tile)
    knn_flat = knn_feat.reshape(BN, K, C)
    cent_flat = feat.reshape(BN, C)
    if BNpad != BN:
        knn_flat = jnp.pad(knn_flat, ((0, BNpad - BN), (0, 0), (0, 0)))
        cent_flat = jnp.pad(cent_flat, ((0, BNpad - BN), (0, 0)))

    (w1, b1) = layers[0]
    wk = w1[:C]                    # applies to knn features
    wc = w1[C:] - w1[:C]           # applies to central features (algebraic fold)
    cout = layers[-1][0].shape[1]

    operands = [knn_flat, cent_flat, wk, wc, b1.reshape(1, -1)]
    in_specs = [
        pl.BlockSpec((tM, K, C), lambda i: (i, 0, 0)),
        pl.BlockSpec((tM, C), lambda i: (i, 0)),
        pl.BlockSpec(wk.shape, lambda i: (0, 0)),
        pl.BlockSpec(wc.shape, lambda i: (0, 0)),
        pl.BlockSpec((1, b1.shape[0]), lambda i: (0, 0)),
    ]
    for (w, b) in layers[1:]:
        operands += [w, b.reshape(1, -1)]
        in_specs += [pl.BlockSpec(w.shape, lambda i: (0, 0)),
                     pl.BlockSpec((1, b.shape[0]), lambda i: (0, 0))]

    out = pl.pallas_call(
        functools.partial(_edge_block_kernel, n_layers=len(layers), slope=LEAKY_SLOPE),
        out_shape=jax.ShapeDtypeStruct((BNpad, cout), feat.dtype),
        grid_spec=pltpu.PrefetchScalarGridSpec(
            num_scalar_prefetch=0,
            grid=(BNpad // tM,),
            in_specs=in_specs,
            out_specs=pl.BlockSpec((tM, cout), lambda i: (i, 0)),
        ),
        compiler_params=pltpu.CompilerParams(dimension_semantics=("parallel",)),
    )(*operands)
    return out[:BN].reshape(B, N, cout)


# --------------------------------------------------------------------------
# Kernel 3: fused conv1d MLP chain (1x1 conv + folded-BN + LeakyReLU, chained)
# --------------------------------------------------------------------------
def _mlp_chain_kernel(x_ref, *refs, n_layers, slope):
    o_ref = refs[-1]
    y = x_ref[...].astype(jnp.float32)                                # (tM, Cin)
    r = 0
    for _ in range(n_layers):
        w = refs[r][...].astype(jnp.float32)
        b = refs[r + 1][...].astype(jnp.float32)
        r += 2
        y = jnp.dot(y, w, preferred_element_type=jnp.float32) + b
        y = jnp.where(y > 0, y, slope * y)
    o_ref[...] = y.astype(o_ref.dtype)


def mlp_chain(x, layers, *, row_tile=512):
    """x: (M, Cin) -> (M, Cout); whole conv1d chain fused in one pallas_call."""
    M, Cin = x.shape
    cout = layers[-1][0].shape[1]
    tM, Mpad = _pick_row_tile(M, row_tile)
    if Mpad != M:
        x = jnp.pad(x, ((0, Mpad - M), (0, 0)))

    operands = [x]
    in_specs = [pl.BlockSpec((tM, Cin), lambda i: (i, 0))]
    for (w, b) in layers:
        operands += [w, b.reshape(1, -1)]
        in_specs += [pl.BlockSpec(w.shape, lambda i: (0, 0)),
                     pl.BlockSpec((1, b.shape[0]), lambda i: (0, 0))]

    out = pl.pallas_call(
        functools.partial(_mlp_chain_kernel, n_layers=len(layers), slope=LEAKY_SLOPE),
        out_shape=jax.ShapeDtypeStruct((Mpad, cout), x.dtype),
        grid_spec=pltpu.PrefetchScalarGridSpec(
            num_scalar_prefetch=0,
            grid=(Mpad // tM,),
            in_specs=in_specs,
            out_specs=pl.BlockSpec((tM, cout), lambda i: (i, 0)),
        ),
        compiler_params=pltpu.CompilerParams(dimension_semantics=("parallel",)),
    )(*operands)
    return out[:M]


# --------------------------------------------------------------------------
# Glue (plain JAX): kNN index selection
# --------------------------------------------------------------------------
def knn_indices(feat, K):
    d = pairwise_neg_sqdist(feat)                                     # (B, N, N)
    # TODO(synk): top-k (data-dependent sort) has no clean Pallas TPU equivalent.
    _, idx = jax.lax.top_k(d, K)                                      # (B, N, K)
    return idx


# --------------------------------------------------------------------------
# Deterministic parameter init (synthetic; BN folded in eval mode)
# --------------------------------------------------------------------------
def init_params(key, nfeat, edgeconv_widths, mlp_widths):
    eps = 1e-5

    def conv_bn(k, cin, cout):
        k1, k2, k3 = jax.random.split(k, 3)
        w = 0.1 * jax.random.normal(k1, (cin, cout), jnp.float32)
        gamma = 1.0 + 0.1 * jax.random.normal(k2, (cout,), jnp.float32)
        beta = 0.05 * jax.random.normal(k3, (cout,), jnp.float32)
        scale = gamma / jnp.sqrt(1.0 + eps)   # running_mean=0, running_var=1 (eval)
        return w * scale[None, :], beta

    n_layers = sum(len(w) for w in edgeconv_widths) + len(mlp_widths)
    keys = jax.random.split(key, n_layers)
    ki = 0
    params = {"edge": [], "mlp": []}
    for i, widths in enumerate(edgeconv_widths):
        cin = (nfeat if i == 0 else edgeconv_widths[i - 1][-1]) * 2
        block = []
        for cout in widths:
            block.append(conv_bn(keys[ki], cin, cout)); ki += 1
            cin = cout
        params["edge"].append(block)
    cin = sum(w[-1] for w in edgeconv_widths)
    for cout in mlp_widths:
        params["mlp"].append(conv_bn(keys[ki], cin, cout)); ki += 1
        cin = cout
    return params


# --------------------------------------------------------------------------
# DGCNN forward (return_edgeconvs=False): returns (edgeconv_outputs[0], out)
# in PyTorch (B, C, N) layout.
# --------------------------------------------------------------------------
def dgcnn_forward(x, params, *, K):
    feat = jnp.transpose(x, (0, 2, 1))                                # (B, N, C)
    B, N, _ = feat.shape

    edgeconv_outputs = []
    for block in params["edge"]:
        idx = knn_indices(feat, K)
        feat = edge_conv_block(feat, idx, block)                      # fused block + max-K
        edgeconv_outputs.append(feat)

    cat = jnp.concatenate(edgeconv_outputs, axis=-1)                  # (B, N, sum(widths))
    out = mlp_chain(cat.reshape(B * N, -1), params["mlp"]).reshape(B, N, -1)

    return (jnp.transpose(edgeconv_outputs[0], (0, 2, 1)),            # (B, C1, N)
            jnp.transpose(out, (0, 2, 1)))                            # (B, mlp[-1], N)


# --------------------------------------------------------------------------
if __name__ == "__main__":
    B, nfeat, N = 2, 4, 16
    K = 8
    edgeconv_widths = [[32, 32], [32, 32], [32, 32]]
    mlp_widths = [64, 32]

    key = jax.random.PRNGKey(0)
    kx, kp = jax.random.split(key)
    x = jax.random.normal(kx, (B, nfeat, N), jnp.float32)             # (B, C, N) point cloud
    params = init_params(kp, nfeat, edgeconv_widths, mlp_widths)

    fwd = jax.jit(functools.partial(dgcnn_forward, K=K))
    edge0, out = fwd(x, params)
    jax.block_until_ready((edge0, out))

    assert edge0.shape == (B, edgeconv_widths[0][-1], N), edge0.shape
    assert out.shape == (B, mlp_widths[-1], N), out.shape
    assert bool(jnp.all(jnp.isfinite(edge0))) and bool(jnp.all(jnp.isfinite(out)))
    print("KERNEL_OK")
</pallas_src>

<mosaic_0001>
module attributes {stable_mosaic.version = 11 : i64} {
  func.func @_edge_block_kernel(%arg0: i32, %arg1: memref<32x8x4xf32, #tpu.memory_space<vmem>>, %arg2: memref<32x4xf32, #tpu.memory_space<vmem>>, %arg3: memref<4x32xf32, #tpu.memory_space<vmem>>, %arg4: memref<4x32xf32, #tpu.memory_space<vmem>>, %arg5: memref<1x32xf32, #tpu.memory_space<vmem>>, %arg6: memref<32x32xf32, #tpu.memory_space<vmem>>, %arg7: memref<1x32xf32, #tpu.memory_space<vmem>>, %arg8: memref<32x32xf32, #tpu.memory_space<vmem>>) attributes {dimension_semantics = [#tpu.dimension_semantics<parallel>], iteration_bounds = array<i64: 1>, scalar_prefetch = 0 : i64, scratch_operands = 0 : i64, tpu.core_type = #tpu.core_type<tc>, window_params = [{transform_indices = @transform_0, window_bounds = array<i64: 32, 8, 4>}, {transform_indices = @transform_1, window_bounds = array<i64: 32, 4>}, {pipeline_mode = #tpu.pipeline_mode<synchronous>, transform_indices = @transform_2, window_bounds = array<i64: 4, 32>}, {pipeline_mode = #tpu.pipeline_mode<synchronous>, transform_indices = @transform_3, window_bounds = array<i64: 4, 32>}, {pipeline_mode = #tpu.pipeline_mode<synchronous>, transform_indices = @transform_4, window_bounds = array<i64: 1, 32>}, {pipeline_mode = #tpu.pipeline_mode<synchronous>, transform_indices = @transform_5, window_bounds = array<i64: 32, 32>}, {pipeline_mode = #tpu.pipeline_mode<synchronous>, transform_indices = @transform_6, window_bounds = array<i64: 1, 32>}, {transform_indices = @transform_7, window_bounds = array<i64: 32, 32>}]} {
    %c0 = arith.constant 0 : index
    %c0_0 = arith.constant 0 : index
    %c0_1 = arith.constant 0 : index
    %0 = vector.load %arg1[%c0, %c0_0, %c0_1] : memref<32x8x4xf32, #tpu.memory_space<vmem>>, vector<32x8x4xf32>
    %c0_2 = arith.constant 0 : index
    %c0_3 = arith.constant 0 : index
    %1 = vector.load %arg2[%c0_2, %c0_3] : memref<32x4xf32, #tpu.memory_space<vmem>>, vector<32x4xf32>
    %c0_4 = arith.constant 0 : index
    %c0_5 = arith.constant 0 : index
    %2 = vector.load %arg3[%c0_4, %c0_5] : memref<4x32xf32, #tpu.memory_space<vmem>>, vector<4x32xf32>
    %c0_6 = arith.constant 0 : index
    %c0_7 = arith.constant 0 : index
    %3 = vector.load %arg4[%c0_6, %c0_7] : memref<4x32xf32, #tpu.memory_space<vmem>>, vector<4x32xf32>
    %c0_8 = arith.constant 0 : index
    %c0_9 = arith.constant 0 : index
    %4 = vector.load %arg5[%c0_8, %c0_9] : memref<1x32xf32, #tpu.memory_space<vmem>>, vector<1x32xf32>
    %cst = arith.constant dense<0.000000e+00> : vector<32x32xf32>
    %5 = tpu.matmul %1, %3, %cst {dimension_numbers = #tpu.dot_dimension_numbers<[1], [0], [0], [1], [0, 0, 1, 1], [], []>} : vector<32x4xf32>, vector<4x32xf32>, vector<32x32xf32> -> vector<32x32xf32>
    %6 = vector.broadcast %4 : vector<1x32xf32> to vector<32x32xf32>
    %7 = arith.addf %5, %6 : vector<32x32xf32>
    %8 = vector.shape_cast %0 : vector<32x8x4xf32> to vector<256x4xf32>
    %cst_10 = arith.constant dense<0.000000e+00> : vector<256x32xf32>
    %9 = tpu.matmul %8, %2, %cst_10 {dimension_numbers = #tpu.dot_dimension_numbers<[1], [0], [0], [1], [0, 0, 1, 1], [], []>} : vector<256x4xf32>, vector<4x32xf32>, vector<256x32xf32> -> vector<256x32xf32>
    %10 = vector.shape_cast %9 : vector<256x32xf32> to vector<32x8x32xf32>
    %11 = vector.shape_cast %7 : vector<32x32xf32> to vector<32x1x32xf32>
    %12 = vector.broadcast %11 : vector<32x1x32xf32> to vector<32x8x32xf32>
    %13 = arith.addf %10, %12 : vector<32x8x32xf32>
    %cst_11 = arith.constant 0.000000e+00 : f32
    %14 = vector.broadcast %cst_11 : f32 to vector<32x8x32xf32>
    %15 = arith.cmpf ogt, %13, %14 : vector<32x8x32xf32>
    %cst_12 = arith.constant 2.000000e-01 : f32
    %16 = vector.broadcast %cst_12 : f32 to vector<32x8x32xf32>
    %17 = arith.mulf %16, %13 : vector<32x8x32xf32>
    %18 = arith.select %15, %13, %17 : vector<32x8x32xi1>, vector<32x8x32xf32>
    %c0_13 = arith.constant 0 : index
    %c0_14 = arith.constant 0 : index
    %19 = vector.load %arg6[%c0_13, %c0_14] : memref<32x32xf32, #tpu.memory_space<vmem>>, vector<32x32xf32>
    %c0_15 = arith.constant 0 : index
    %c0_16 = arith.constant 0 : index
    %20 = vector.load %arg7[%c0_15, %c0_16] : memref<1x32xf32, #tpu.memory_space<vmem>>, vector<1x32xf32>
    %21 = vector.shape_cast %18 : vector<32x8x32xf32> to vector<256x32xf32>
    %cst_17 = arith.constant dense<0.000000e+00> : vector<256x32xf32>
    %22 = tpu.matmul %21, %19, %cst_17 {dimension_numbers = #tpu.dot_dimension_numbers<[1], [0], [0], [1], [0, 0, 1, 1], [], []>} : vector<256x32xf32>, vector<32x32xf32>, vector<256x32xf32> -> vector<256x32xf32>
    %23 = vector.broadcast %20 : vector<1x32xf32> to vector<256x32xf32>
    %24 = arith.addf %22, %23 : vector<256x32xf32>
    %cst_18 = arith.constant 0.000000e+00 : f32
    %25 = vector.broadcast %cst_18 : f32 to vector<256x32xf32>
    %26 = arith.cmpf ogt, %24, %25 : vector<256x32xf32>
    %cst_19 = arith.constant 2.000000e-01 : f32
    %27 = vector.broadcast %cst_19 : f32 to vector<256x32xf32>
    %28 = arith.mulf %27, %24 : vector<256x32xf32>
    %29 = arith.select %26, %24, %28 : vector<256x32xi1>, vector<256x32xf32>
    %30 = vector.shape_cast %29 : vector<256x32xf32> to vector<32x8x32xf32>
    %cst_20 = arith.constant dense<0xFF800000> : vector<32x32xf32>
    %31 = vector.multi_reduction <maximumf>, %30, %cst_20 [1] : vector<32x8x32xf32> to vector<32x32xf32>
    %c0_21 = arith.constant 0 : index
    %c0_22 = arith.constant 0 : index
    %32 = vector.load %arg8[%c0_21, %c0_22] : memref<32x32xf32, #tpu.memory_space<vmem>>, vector<32x32xf32>
    tpu.vector_store %arg8[%c0_21, %c0_22], %31 {strides = array<i32>} : memref<32x32xf32, #tpu.memory_space<vmem>>, vector<32x32xf32>,
    return
  }
  func.func @transform_0(%arg0: i32) -> (i32, i32, i32) {
    %c0_i32 = arith.constant 0 : i32
    %c0_i32_0 = arith.constant 0 : i32
    %c0_i32_1 = arith.constant 0 : i32
    return %arg0, %c0_i32, %c0_i32_0 : i32, i32, i32
  }
  func.func @transform_1(%arg0: i32) -> (i32, i32) {
    %c0_i32 = arith.constant 0 : i32
    %c0_i32_0 = arith.constant 0 : i32
    return %arg0, %c0_i32 : i32, i32
  }
  func.func @transform_2(%arg0: i32) -> (i32, i32) {
    %c0_i32 = arith.constant 0 : i32
    %c0_i32_0 = arith.constant 0 : i32
    %c0_i32_1 = arith.constant 0 : i32
    return %c0_i32, %c0_i32_0 : i32, i32
  }
  func.func @transform_3(%arg0: i32) -> (i32, i32) {
    %c0_i32 = arith.constant 0 : i32
    %c0_i32_0 = arith.constant 0 : i32
    %c0_i32_1 = arith.constant 0 : i32
    return %c0_i32, %c0_i32_0 : i32, i32
  }
  func.func @transform_4(%arg0: i32) -> (i32, i32) {
    %c0_i32 = arith.constant 0 : i32
    %c0_i32_0 = arith.constant 0 : i32
    %c0_i32_1 = arith.constant 0 : i32
    return %c0_i32, %c0_i32_0 : i32, i32
  }
  func.func @transform_5(%arg0: i32) -> (i32, i32) {
    %c0_i32 = arith.constant 0 : i32
    %c0_i32_0 = arith.constant 0 : i32
    %c0_i32_1 = arith.constant 0 : i32
    return %c0_i32, %c0_i32_0 : i32, i32
  }
  func.func @transform_6(%arg0: i32) -> (i32, i32) {
    %c0_i32 = arith.constant 0 : i32
    %c0_i32_0 = arith.constant 0 : i32
    %c0_i32_1 = arith.constant 0 : i32
    return %c0_i32, %c0_i32_0 : i32, i32
  }
  func.func @transform_7(%arg0: i32) -> (i32, i32) {
    %c0_i32 = arith.constant 0 : i32
    %c0_i32_0 = arith.constant 0 : i32
    return %arg0, %c0_i32 : i32, i32
  }
}

module attributes {stable_mosaic.version = 11 : i64} {
  func.func @_pdist_kernel(%arg0: i32, %arg1: i32, %arg2: memref<1x16x4xf32, #tpu.memory_space<vmem>>, %arg3: memref<1x16x4xf32, #tpu.memory_space<vmem>>, %arg4: memref<1x16x16xf32, #tpu.memory_space<vmem>>) attributes {dimension_semantics = [#tpu.dimension_semantics<parallel>, #tpu.dimension_semantics<parallel>], iteration_bounds = array<i64: 2, 1>, scalar_prefetch = 0 : i64, scratch_operands = 0 : i64, tpu.core_type = #tpu.core_type<tc>, window_params = [{transform_indices = @transform_0, window_bounds = array<i64: 1, 16, 4>}, {transform_indices = @transform_1, window_bounds = array<i64: 1, 16, 4>}, {transform_indices = @transform_2, window_bounds = array<i64: 1, 16, 16>}]} {
    %c0 = arith.constant 0 : index
    %c0_0 = arith.constant 0 : index
    %c0_1 = arith.constant 0 : index
    %0 = vector.load %arg2[%c0, %c0_0, %c0_1] : memref<1x16x4xf32, #tpu.memory_space<vmem>>, vector<1x16x4xf32>
    %1 = vector.shape_cast %0 : vector<1x16x4xf32> to vector<16x4xf32>
    %c0_2 = arith.constant 0 : index
    %c0_3 = arith.constant 0 : index
    %c0_4 = arith.constant 0 : index
    %2 = vector.load %arg3[%c0_2, %c0_3, %c0_4] : memref<1x16x4xf32, #tpu.memory_space<vmem>>, vector<1x16x4xf32>
    %3 = vector.shape_cast %2 : vector<1x16x4xf32> to vector<16x4xf32>
    %4 = tpu.transpose %3, [1, 0] : vector<16x4xf32> -> vector<4x16xf32>
    %cst = arith.constant dense<0.000000e+00> : vector<16x16xf32>
    %5 = tpu.matmul %1, %4, %cst {dimension_numbers = #tpu.dot_dimension_numbers<[1], [0], [0], [1], [0, 0, 1, 1], [], []>} : vector<16x4xf32>, vector<4x16xf32>, vector<16x16xf32> -> vector<16x16xf32>
    %6 = arith.mulf %1, %1 : vector<16x4xf32>
    %cst_5 = arith.constant dense<0.000000e+00> : vector<16xf32>
    %7 = vector.multi_reduction <add>, %6, %cst_5 [1] : vector<16x4xf32> to vector<16xf32>
    %8 = vector.shape_cast %7 : vector<16xf32> to vector<16x1xf32>
    %9 = arith.mulf %3, %3 : vector<16x4xf32>
    %cst_6 = arith.constant dense<0.000000e+00> : vector<16xf32>
    %10 = vector.multi_reduction <add>, %9, %cst_6 [1] : vector<16x4xf32> to vector<16xf32>
    %11 = vector.shape_cast %10 : vector<16xf32> to vector<16x1xf32>
    %cst_7 = arith.constant 2.000000e+00 : f32
    %12 = vector.broadcast %cst_7 : f32 to vector<16x16xf32>
    %13 = arith.mulf %12, %5 : vector<16x16xf32>
    %14 = vector.broadcast %8 : vector<16x1xf32> to vector<16x16xf32>
    %15 = arith.subf %13, %14 : vector<16x16xf32>
    %16 = tpu.transpose %11, [1, 0] : vector<16x1xf32> -> vector<1x16xf32>
    %17 = vector.broadcast %16 : vector<1x16xf32> to vector<16x16xf32>
    %18 = arith.subf %15, %17 : vector<16x16xf32>
    %c0_8 = arith.constant 0 : index
    %c0_9 = arith.constant 0 : index
    %c0_10 = arith.constant 0 : index
    %19 = vector.load %arg4[%c0_8, %c0_9, %c0_10] : memref<1x16x16xf32, #tpu.memory_space<vmem>>, vector<1x16x16xf32>
    %20 = vector.shape_cast %19 : vector<1x16x16xf32> to vector<16x16xf32>
    %21 = vector.shape_cast %18 : vector<16x16xf32> to vector<1x16x16xf32>
    tpu.vector_store %arg4[%c0_8, %c0_9, %c0_10], %21 {strides = array<i32>} : memref<1x16x16xf32, #tpu.memory_space<vmem>>, vector<1x16x16xf32>,
    return
  }
  func.func @transform_0(%arg0: i32, %arg1: i32) -> (i32, i32, i32) {
    %c0_i32 = arith.constant 0 : i32
    %c0_i32_0 = arith.constant 0 : i32
    return %arg0, %arg1, %c0_i32 : i32, i32, i32
  }
  func.func @transform_1(%arg0: i32, %arg1: i32) -> (i32, i32, i32) {
    %c0_i32 = arith.constant 0 : i32
    %c0_i32_0 = arith.constant 0 : i32
    %c0_i32_1 = arith.constant 0 : i32
    return %arg0, %c0_i32, %c0_i32_0 : i32, i32, i32
  }
  func.func @transform_2(%arg0: i32, %arg1: i32) -> (i32, i32, i32) {
    %c0_i32 = arith.constant 0 : i32
    %c0_i32_0 = arith.constant 0 : i32
    return %arg0, %arg1, %c0_i32 : i32, i32, i32
  }
}

module attributes {stable_mosaic.version = 11 : i64} {
  func.func @_pdist_kernel(%arg0: i32, %arg1: i32, %arg2: memref<1x16x32xf32, #tpu.memory_space<vmem>>, %arg3: memref<1x16x32xf32, #tpu.memory_space<vmem>>, %arg4: memref<1x16x16xf32, #tpu.memory_space<vmem>>) attributes {dimension_semantics = [#tpu.dimension_semantics<parallel>, #tpu.dimension_semantics<parallel>], iteration_bounds = array<i64: 2, 1>, scalar_prefetch = 0 : i64, scratch_operands = 0 : i64, tpu.core_type = #tpu.core_type<tc>, window_params = [{transform_indices = @transform_0, window_bounds = array<i64: 1, 16, 32>}, {transform_indices = @transform_1, window_bounds = array<i64: 1, 16, 32>}, {transform_indices = @transform_2, window_bounds = array<i64: 1, 16, 16>}]} {
    %c0 = arith.constant 0 : index
    %c0_0 = arith.constant 0 : index
    %c0_1 = arith.constant 0 : index
    %0 = vector.load %arg2[%c0, %c0_0, %c0_1] : memref<1x16x32xf32, #tpu.memory_space<vmem>>, vector<1x16x32xf32>
    %1 = vector.shape_cast %0 : vector<1x16x32xf32> to vector<16x32xf32>
    %c0_2 = arith.constant 0 : index
    %c0_3 = arith.constant 0 : index
    %c0_4 = arith.constant 0 : index
    %2 = vector.load %arg3[%c0_2, %c0_3, %c0_4] : memref<1x16x32xf32, #tpu.memory_space<vmem>>, vector<1x16x32xf32>
    %3 = vector.shape_cast %2 : vector<1x16x32xf32> to vector<16x32xf32>
    %4 = tpu.transpose %3, [1, 0] : vector<16x32xf32> -> vector<32x16xf32>
    %cst = arith.constant dense<0.000000e+00> : vector<16x16xf32>
    %5 = tpu.matmul %1, %4, %cst {dimension_numbers = #tpu.dot_dimension_numbers<[1], [0], [0], [1], [0, 0, 1, 1], [], []>} : vector<16x32xf32>, vector<32x16xf32>, vector<16x16xf32> -> vector<16x16xf32>
    %6 = arith.mulf %1, %1 : vector<16x32xf32>
    %cst_5 = arith.constant dense<0.000000e+00> : vector<16xf32>
    %7 = vector.multi_reduction <add>, %6, %cst_5 [1] : vector<16x32xf32> to vector<16xf32>
    %8 = vector.shape_cast %7 : vector<16xf32> to vector<16x1xf32>
    %9 = arith.mulf %3, %3 : vector<16x32xf32>
    %cst_6 = arith.constant dense<0.000000e+00> : vector<16xf32>
    %10 = vector.multi_reduction <add>, %9, %cst_6 [1] : vector<16x32xf32> to vector<16xf32>
    %11 = vector.shape_cast %10 : vector<16xf32> to vector<16x1xf32>
    %cst_7 = arith.constant 2.000000e+00 : f32
    %12 = vector.broadcast %cst_7 : f32 to vector<16x16xf32>
    %13 = arith.mulf %12, %5 : vector<16x16xf32>
    %14 = vector.broadcast %8 : vector<16x1xf32> to vector<16x16xf32>
    %15 = arith.subf %13, %14 : vector<16x16xf32>
    %16 = tpu.transpose %11, [1, 0] : vector<16x1xf32> -> vector<1x16xf32>
    %17 = vector.broadcast %16 : vector<1x16xf32> to vector<16x16xf32>
    %18 = arith.subf %15, %17 : vector<16x16xf32>
    %c0_8 = arith.constant 0 : index
    %c0_9 = arith.constant 0 : index
    %c0_10 = arith.constant 0 : index
    %19 = vector.load %arg4[%c0_8, %c0_9, %c0_10] : memref<1x16x16xf32, #tpu.memory_space<vmem>>, vector<1x16x16xf32>
    %20 = vector.shape_cast %19 : vector<1x16x16xf32> to vector<16x16xf32>
    %21 = vector.shape_cast %18 : vector<16x16xf32> to vector<1x16x16xf32>
    tpu.vector_store %arg4[%c0_8, %c0_9, %c0_10], %21 {strides = array<i32>} : memref<1x16x16xf32, #tpu.memory_space<vmem>>, vector<1x16x16xf32>,
    return
  }
  func.func @transform_0(%arg0: i32, %arg1: i32) -> (i32, i32, i32) {
    %c0_i32 = arith.constant 0 : i32
    %c0_i32_0 = arith.constant 0 : i32
    return %arg0, %arg1, %c0_i32 : i32, i32, i32
  }
  func.func @transform_1(%arg0: i32, %arg1: i32) -> (i32, i32, i32) {
    %c0_i32 = arith.constant 0 : i32
    %c0_i32_0 = arith.constant 0 : i32
    %c0_i32_1 = arith.constant 0 : i32
    return %arg0, %c0_i32, %c0_i32_0 : i32, i32, i32
  }
  func.func @transform_2(%arg0: i32, %arg1: i32) -> (i32, i32, i32) {
    %c0_i32 = arith.constant 0 : i32
    %c0_i32_0 = arith.constant 0 : i32
    return %arg0, %arg1, %c0_i32 : i32, i32, i32
  }
}

module attributes {stable_mosaic.version = 11 : i64} {
  func.func @_edge_block_kernel(%arg0: i32, %arg1: memref<32x8x32xf32, #tpu.memory_space<vmem>>, %arg2: memref<32x32xf32, #tpu.memory_space<vmem>>, %arg3: memref<32x32xf32, #tpu.memory_space<vmem>>, %arg4: memref<32x32xf32, #tpu.memory_space<vmem>>, %arg5: memref<1x32xf32, #tpu.memory_space<vmem>>, %arg6: memref<32x32xf32, #tpu.memory_space<vmem>>, %arg7: memref<1x32xf32, #tpu.memory_space<vmem>>, %arg8: memref<32x32xf32, #tpu.memory_space<vmem>>) attributes {dimension_semantics = [#tpu.dimension_semantics<parallel>], iteration_bounds = array<i64: 1>, scalar_prefetch = 0 : i64, scratch_operands = 0 : i64, tpu.core_type = #tpu.core_type<tc>, window_params = [{transform_indices = @transform_0, window_bounds = array<i64: 32, 8, 32>}, {transform_indices = @transform_1, window_bounds = array<i64: 32, 32>}, {pipeline_mode = #tpu.pipeline_mode<synchronous>, transform_indices = @transform_2, window_bounds = array<i64: 32, 32>}, {pipeline_mode = #tpu.pipeline_mode<synchronous>, transform_indices = @transform_3, window_bounds = array<i64: 32, 32>}, {pipeline_mode = #tpu.pipeline_mode<synchronous>, transform_indices = @transform_4, window_bounds = array<i64: 1, 32>}, {pipeline_mode = #tpu.pipeline_mode<synchronous>, transform_indices = @transform_5, window_bounds = array<i64: 32, 32>}, {pipeline_mode = #tpu.pipeline_mode<synchronous>, transform_indices = @transform_6, window_bounds = array<i64: 1, 32>}, {transform_indices = @transform_7, window_bounds = array<i64: 32, 32>}]} {
    %c0 = arith.constant 0 : index
    %c0_0 = arith.constant 0 : index
    %c0_1 = arith.constant 0 : index
    %0 = vector.load %arg1[%c0, %c0_0, %c0_1] : memref<32x8x32xf32, #tpu.memory_space<vmem>>, vector<32x8x32xf32>
    %c0_2 = arith.constant 0 : index
    %c0_3 = arith.constant 0 : index
    %1 = vector.load %arg2[%c0_2, %c0_3] : memref<32x32xf32, #tpu.memory_space<vmem>>, vector<32x32xf32>
    %c0_4 = arith.constant 0 : index
    %c0_5 = arith.constant 0 : index
    %2 = vector.load %arg3[%c0_4, %c0_5] : memref<32x32xf32, #tpu.memory_space<vmem>>, vector<32x32xf32>
    %c0_6 = arith.constant 0 : index
    %c0_7 = arith.constant 0 : index
    %3 = vector.load %arg4[%c0_6, %c0_7] : memref<32x32xf32, #tpu.memory_space<vmem>>, vector<32x32xf32>
    %c0_8 = arith.constant 0 : index
    %c0_9 = arith.constant 0 : index
    %4 = vector.load %arg5[%c0_8, %c0_9] : memref<1x32xf32, #tpu.memory_space<vmem>>, vector<1x32xf32>
    %cst = arith.constant dense<0.000000e+00> : vector<32x32xf32>
    %5 = tpu.matmul %1, %3, %cst {dimension_numbers = #tpu.dot_dimension_numbers<[1], [0], [0], [1], [0, 0, 1, 1], [], []>} : vector<32x32xf32>, vector<32x32xf32>, vector<32x32xf32> -> vector<32x32xf32>
    %6 = vector.broadcast %4 : vector<1x32xf32> to vector<32x32xf32>
    %7 = arith.addf %5, %6 : vector<32x32xf32>
    %8 = vector.shape_cast %0 : vector<32x8x32xf32> to vector<256x32xf32>
    %cst_10 = arith.constant dense<0.000000e+00> : vector<256x32xf32>
    %9 = tpu.matmul %8, %2, %cst_10 {dimension_numbers = #tpu.dot_dimension_numbers<[1], [0], [0], [1], [0, 0, 1, 1], [], []>} : vector<256x32xf32>, vector<32x32xf32>, vector<256x32xf32> -> vector<256x32xf32>
    %10 = vector.shape_cast %9 : vector<256x32xf32> to vector<32x8x32xf32>
    %11 = vector.shape_cast %7 : vector<32x32xf32> to vector<32x1x32xf32>
    %12 = vector.broadcast %11 : vector<32x1x32xf32> to vector<32x8x32xf32>
    %13 = arith.addf %10, %12 : vector<32x8x32xf32>
    %cst_11 = arith.constant 0.000000e+00 : f32
    %14 = vector.broadcast %cst_11 : f32 to vector<32x8x32xf32>
    %15 = arith.cmpf ogt, %13, %14 : vector<32x8x32xf32>
    %cst_12 = arith.constant 2.000000e-01 : f32
    %16 = vector.broadcast %cst_12 : f32 to vector<32x8x32xf32>
    %17 = arith.mulf %16, %13 : vector<32x8x32xf32>
    %18 = arith.select %15, %13, %17 : vector<32x8x32xi1>, vector<32x8x32xf32>
    %c0_13 = arith.constant 0 : index
    %c0_14 = arith.constant 0 : index
    %19 = vector.load %arg6[%c0_13, %c0_14] : memref<32x32xf32, #tpu.memory_space<vmem>>, vector<32x32xf32>
    %c0_15 = arith.constant 0 : index
    %c0_16 = arith.constant 0 : index
    %20 = vector.load %arg7[%c0_15, %c0_16] : memref<1x32xf32, #tpu.memory_space<vmem>>, vector<1x32xf32>
    %21 = vector.shape_cast %18 : vector<32x8x32xf32> to vector<256x32xf32>
    %cst_17 = arith.constant dense<0.000000e+00> : vector<256x32xf32>
    %22 = tpu.matmul %21, %19, %cst_17 {dimension_numbers = #tpu.dot_dimension_numbers<[1], [0], [0], [1], [0, 0, 1, 1], [], []>} : vector<256x32xf32>, vector<32x32xf32>, vector<256x32xf32> -> vector<256x32xf32>
    %23 = vector.broadcast %20 : vector<1x32xf32> to vector<256x32xf32>
    %24 = arith.addf %22, %23 : vector<256x32xf32>
    %cst_18 = arith.constant 0.000000e+00 : f32
    %25 = vector.broadcast %cst_18 : f32 to vector<256x32xf32>
    %26 = arith.cmpf ogt, %24, %25 : vector<256x32xf32>
    %cst_19 = arith.constant 2.000000e-01 : f32
    %27 = vector.broadcast %cst_19 : f32 to vector<256x32xf32>
    %28 = arith.mulf %27, %24 : vector<256x32xf32>
    %29 = arith.select %26, %24, %28 : vector<256x32xi1>, vector<256x32xf32>
    %30 = vector.shape_cast %29 : vector<256x32xf32> to vector<32x8x32xf32>
    %cst_20 = arith.constant dense<0xFF800000> : vector<32x32xf32>
    %31 = vector.multi_reduction <maximumf>, %30, %cst_20 [1] : vector<32x8x32xf32> to vector<32x32xf32>
    %c0_21 = arith.constant 0 : index
    %c0_22 = arith.constant 0 : index
    %32 = vector.load %arg8[%c0_21, %c0_22] : memref<32x32xf32, #tpu.memory_space<vmem>>, vector<32x32xf32>
    tpu.vector_store %arg8[%c0_21, %c0_22], %31 {strides = array<i32>} : memref<32x32xf32, #tpu.memory_space<vmem>>, vector<32x32xf32>,
    return
  }
  func.func @transform_0(%arg0: i32) -> (i32, i32, i32) {
    %c0_i32 = arith.constant 0 : i32
    %c0_i32_0 = arith.constant 0 : i32
    %c0_i32_1 = arith.constant 0 : i32
    return %arg0, %c0_i32, %c0_i32_0 : i32, i32, i32
  }
  func.func @transform_1(%arg0: i32) -> (i32, i32) {
    %c0_i32 = arith.constant 0 : i32
    %c0_i32_0 = arith.constant 0 : i32
    return %arg0, %c0_i32 : i32, i32
  }
  func.func @transform_2(%arg0: i32) -> (i32, i32) {
    %c0_i32 = arith.constant 0 : i32
    %c0_i32_0 = arith.constant 0 : i32
    %c0_i32_1 = arith.constant 0 : i32
    return %c0_i32, %c0_i32_0 : i32, i32
  }
  func.func @transform_3(%arg0: i32) -> (i32, i32) {
    %c0_i32 = arith.constant 0 : i32
    %c0_i32_0 = arith.constant 0 : i32
    %c0_i32_1 = arith.constant 0 : i32
    return %c0_i32, %c0_i32_0 : i32, i32
  }
  func.func @transform_4(%arg0: i32) -> (i32, i32) {
    %c0_i32 = arith.constant 0 : i32
    %c0_i32_0 = arith.constant 0 : i32
    %c0_i32_1 = arith.constant 0 : i32
    return %c0_i32, %c0_i32_0 : i32, i32
  }
  func.func @transform_5(%arg0: i32) -> (i32, i32) {
    %c0_i32 = arith.constant 0 : i32
    %c0_i32_0 = arith.constant 0 : i32
    %c0_i32_1 = arith.constant 0 : i32
    return %c0_i32, %c0_i32_0 : i32, i32
  }
  func.func @transform_6(%arg0: i32) -> (i32, i32) {
    %c0_i32 = arith.constant 0 : i32
    %c0_i32_0 = arith.constant 0 : i32
    %c0_i32_1 = arith.constant 0 : i32
    return %c0_i32, %c0_i32_0 : i32, i32
  }
  func.func @transform_7(%arg0: i32) -> (i32, i32) {
    %c0_i32 = arith.constant 0 : i32
    %c0_i32_0 = arith.constant 0 : i32
    return %arg0, %c0_i32 : i32, i32
  }
}

module attributes {stable_mosaic.version = 11 : i64} {
  func.func @_mlp_chain_kernel(%arg0: i32, %arg1: memref<32x96xf32, #tpu.memory_space<vmem>>, %arg2: memref<96x64xf32, #tpu.memory_space<vmem>>, %arg3: memref<1x64xf32, #tpu.memory_space<vmem>>, %arg4: memref<64x32xf32, #tpu.memory_space<vmem>>, %arg5: memref<1x32xf32, #tpu.memory_space<vmem>>, %arg6: memref<32x32xf32, #tpu.memory_space<vmem>>) attributes {dimension_semantics = [#tpu.dimension_semantics<parallel>], iteration_bounds = array<i64: 1>, scalar_prefetch = 0 : i64, scratch_operands = 0 : i64, tpu.core_type = #tpu.core_type<tc>, window_params = [{transform_indices = @transform_0, window_bounds = array<i64: 32, 96>}, {pipeline_mode = #tpu.pipeline_mode<synchronous>, transform_indices = @transform_1, window_bounds = array<i64: 96, 64>}, {pipeline_mode = #tpu.pipeline_mode<synchronous>, transform_indices = @transform_2, window_bounds = array<i64: 1, 64>}, {pipeline_mode = #tpu.pipeline_mode<synchronous>, transform_indices = @transform_3, window_bounds = array<i64: 64, 32>}, {pipeline_mode = #tpu.pipeline_mode<synchronous>, transform_indices = @transform_4, window_bounds = array<i64: 1, 32>}, {transform_indices = @transform_5, window_bounds = array<i64: 32, 32>}]} {
    %c0 = arith.constant 0 : index
    %c0_0 = arith.constant 0 : index
    %0 = vector.load %arg1[%c0, %c0_0] : memref<32x96xf32, #tpu.memory_space<vmem>>, vector<32x96xf32>
    %c0_1 = arith.constant 0 : index
    %c0_2 = arith.constant 0 : index
    %1 = vector.load %arg2[%c0_1, %c0_2] : memref<96x64xf32, #tpu.memory_space<vmem>>, vector<96x64xf32>
    %c0_3 = arith.constant 0 : index
    %c0_4 = arith.constant 0 : index
    %2 = vector.load %arg3[%c0_3, %c0_4] : memref<1x64xf32, #tpu.memory_space<vmem>>, vector<1x64xf32>
    %cst = arith.constant dense<0.000000e+00> : vector<32x64xf32>
    %3 = tpu.matmul %0, %1, %cst {dimension_numbers = #tpu.dot_dimension_numbers<[1], [0], [0], [1], [0, 0, 1, 1], [], []>} : vector<32x96xf32>, vector<96x64xf32>, vector<32x64xf32> -> vector<32x64xf32>
    %4 = vector.broadcast %2 : vector<1x64xf32> to vector<32x64xf32>
    %5 = arith.addf %3, %4 : vector<32x64xf32>
    %cst_5 = arith.constant 0.000000e+00 : f32
    %6 = vector.broadcast %cst_5 : f32 to vector<32x64xf32>
    %7 = arith.cmpf ogt, %5, %6 : vector<32x64xf32>
    %cst_6 = arith.constant 2.000000e-01 : f32
    %8 = vector.broadcast %cst_6 : f32 to vector<32x64xf32>
    %9 = arith.mulf %8, %5 : vector<32x64xf32>
    %10 = arith.select %7, %5, %9 : vector<32x64xi1>, vector<32x64xf32>
    %c0_7 = arith.constant 0 : index
    %c0_8 = arith.constant 0 : index
    %11 = vector.load %arg4[%c0_7, %c0_8] : memref<64x32xf32, #tpu.memory_space<vmem>>, vector<64x32xf32>
    %c0_9 = arith.constant 0 : index
    %c0_10 = arith.constant 0 : index
    %12 = vector.load %arg5[%c0_9, %c0_10] : memref<1x32xf32, #tpu.memory_space<vmem>>, vector<1x32xf32>
    %cst_11 = arith.constant dense<0.000000e+00> : vector<32x32xf32>
    %13 = tpu.matmul %10, %11, %cst_11 {dimension_numbers = #tpu.dot_dimension_numbers<[1], [0], [0], [1], [0, 0, 1, 1], [], []>} : vector<32x64xf32>, vector<64x32xf32>, vector<32x32xf32> -> vector<32x32xf32>
    %14 = vector.broadcast %12 : vector<1x32xf32> to vector<32x32xf32>
    %15 = arith.addf %13, %14 : vector<32x32xf32>
    %cst_12 = arith.constant 0.000000e+00 : f32
    %16 = vector.broadcast %cst_12 : f32 to vector<32x32xf32>
    %17 = arith.cmpf ogt, %15, %16 : vector<32x32xf32>
    %cst_13 = arith.constant 2.000000e-01 : f32
    %18 = vector.broadcast %cst_13 : f32 to vector<32x32xf32>
    %19 = arith.mulf %18, %15 : vector<32x32xf32>
    %20 = arith.select %17, %15, %19 : vector<32x32xi1>, vector<32x32xf32>
    %c0_14 = arith.constant 0 : index
    %c0_15 = arith.constant 0 : index
    %21 = vector.load %arg6[%c0_14, %c0_15] : memref<32x32xf32, #tpu.memory_space<vmem>>, vector<32x32xf32>
    tpu.vector_store %arg6[%c0_14, %c0_15], %20 {strides = array<i32>} : memref<32x32xf32, #tpu.memory_space<vmem>>, vector<32x32xf32>,
    return
  }
  func.func @transform_0(%arg0: i32) -> (i32, i32) {
    %c0_i32 = arith.constant 0 : i32
    %c0_i32_0 = arith.constant 0 : i32
    return %arg0, %c0_i32 : i32, i32
  }
  func.func @transform_1(%arg0: i32) -> (i32, i32) {
    %c0_i32 = arith.constant 0 : i32
    %c0_i32_0 = arith.constant 0 : i32
    %c0_i32_1 = arith.constant 0 : i32
    return %c0_i32, %c0_i32_0 : i32, i32
  }
  func.func @transform_2(%arg0: i32) -> (i32, i32) {
    %c0_i32 = arith.constant 0 : i32
    %c0_i32_0 = arith.constant 0 : i32
    %c0_i32_1 = arith.constant 0 : i32
    return %c0_i32, %c0_i32_0 : i32, i32
  }
  func.func @transform_3(%arg0: i32) -> (i32, i32) {
    %c0_i32 = arith.constant 0 : i32
    %c0_i32_0 = arith.constant 0 : i32
    %c0_i32_1 = arith.constant 0 : i32
    return %c0_i32, %c0_i32_0 : i32, i32
  }
  func.func @transform_4(%arg0: i32) -> (i32, i32) {
    %c0_i32 = arith.constant 0 : i32
    %c0_i32_0 = arith.constant 0 : i32
    %c0_i32_1 = arith.constant 0 : i32
    return %c0_i32, %c0_i32_0 : i32, i32
  }
  func.func @transform_5(%arg0: i32) -> (i32, i32) {
    %c0_i32 = arith.constant 0 : i32
    %c0_i32_0 = arith.constant 0 : i32
    return %arg0, %c0_i32 : i32, i32
  }
}

</mosaic_0001>

<bundles_post_ra>
// kernel: dgcnn_forward.8
= control target key start
LH: loop header
LB: loop body
LE: loop exit
PB: predicated region body
PF: predicated region fallthrough
CT: control target
= control target key end

     0   :  { %vm81_vm0 = vcmask 1043456   ;;  %vm68_vm1 = vcmask 31744   ;;  %vm558_vm2 = vcmask 261120   ;;  %s1731_s3 = inlined_call_operand.vmem [shape: f32[4,32], index: 3, kind: input, shape index: {}]   ;;  %s1732_s2 = inlined_call_operand.vmem [shape: f32[4,32], index: 2, kind: input, shape index: {}]   ;;  %s1733_s1 = inlined_call_operand.vmem [shape: f32[32,4], index: 1, kind: input, shape index: {}]   ;;  %s1734_s0 = inlined_call_operand.vmem [shape: f32[32,8,4], index: 0, kind: input, shape index: {}]   ;;  %s1735_s4 = inlined_call_operand.vmem [shape: f32[1,32], index: 4, kind: input, shape index: {}]   ;;  %s1736_s5 = inlined_call_operand.vmem [shape: f32[32,32], index: 5, kind: input, shape index: {}]   ;;  %s1737_s6 = inlined_call_operand.vmem [shape: f32[1,32], index: 6, kind: input, shape index: {}]   ;;  %s1738_s7 = inlined_call_operand.vmem [shape: f32[32,32], index: 7, kind: output, shape index: {}]  }
   0x1   :  { %v63_v0 = vld [vmem:[%s1731_s3] sm:$0xf]  ;;  %v40_v3 = vld [vmem:[%s1734_s0 + $0x70] sm:$0xff]  ;;  %v59_v4 = vld [vmem:[%s1733_s1 + $0x8] sm:$0xff] }
   0x2   :  { %v62_v1 = vld [vmem:[%s1732_s2] sm:$0xf]  ;;  %1167 = vmatpush.msk.msra.mxu0 %vm81_vm0, %v63_v0  ;;  %v41_v5 = vld [vmem:[%s1734_s0 + $0x78] sm:$0xff]  ;;  %v60_v6 = vld [vmem:[%s1733_s1 + $0x10] sm:$0xff] }
   0x3   :  { %v58_v2 = vld [vmem:[%s1733_s1] sm:$0xff]  ;;  %1237 = vmatpush.msk.msra.mxu1 %vm81_vm0, %v62_v1  ;;  %v61_v8 = vld [vmem:[%s1733_s1 + $0x18] sm:$0xff]  ;;  %v43_v9 = vld [vmem:[%s1734_s0 + $0x88] sm:$0xff] }
   0x4   :  { %1168 = vmatmul.msk.f32.vlgmr.msra.gmra.mxu0 %vm68_vm1, %v58_v2  ;;  %1187 = vmatmul.msk.f32.vlgmr.msra.gmra.mxu1 %vm68_vm1, %v40_v3  ;;  %v42_v7 = vld [vmem:[%s1734_s0 + $0x80] sm:$0xff]  ;;  %v44_v11 = vld [vmem:[%s1734_s0 + $0x90] sm:$0xff]  ;;  %v27_v12 = vld [vmem:[%s1734_s0 + $0x8] sm:$0xff] }
   0x5   :  { %1172 = vmatpush.msk.msrb.mxu0 %vm81_vm0, %v62_v1  ;;  %v26_v10 = vld [vmem:[%s1734_s0] sm:$0xff]  ;;  %v45_v13 = vld [vmem:[%s1734_s0 + $0x98] sm:$0xff]  ;;  %v28_v14 = vld [vmem:[%s1734_s0 + $0x10] sm:$0xff] }
   0x6   :  { %v46_v15 = vld [vmem:[%s1734_s0 + $0xa0] sm:$0xff]  ;;  %v29_v16 = vld [vmem:[%s1734_s0 + $0x18] sm:$0xff]  ;;  %v47_v17 = vld [vmem:[%s1734_s0 + $0xa8] sm:$0xff] }
   0x7   :  { %v30_v18 = vld [vmem:[%s1734_s0 + $0x20] sm:$0xff]  ;;  %v48_v19 = vld [vmem:[%s1734_s0 + $0xb0] sm:$0xff]  ;;  %v31_v20 = vld [vmem:[%s1734_s0 + $0x28] sm:$0xff] }
   0x8   :  { %v49_v21 = vld [vmem:[%s1734_s0 + $0xb8] sm:$0xff]  ;;  %v32_v22 = vld [vmem:[%s1734_s0 + $0x30] sm:$0xff]  ;;  %v50_v23 = vld [vmem:[%s1734_s0 + $0xc0] sm:$0xff] }
   0x9   :  { %v33_v24 = vld [vmem:[%s1734_s0 + $0x38] sm:$0xff]  ;;  %v51_v25 = vld [vmem:[%s1734_s0 + $0xc8] sm:$0xff]  ;;  %v34_v26 = vld [vmem:[%s1734_s0 + $0x40] sm:$0xff] }
   0xa   :  { %v52_v27 = vld [vmem:[%s1734_s0 + $0xd0] sm:$0xff]  ;;  %v35_v28 = vld [vmem:[%s1734_s0 + $0x48] sm:$0xff]  ;;  %v53_v29 = vld [vmem:[%s1734_s0 + $0xd8] sm:$0xff] }
   0xb   :  { %v36_v30 = vld [vmem:[%s1734_s0 + $0x50] sm:$0xff]  ;;  %v54_v31 = vld [vmem:[%s1734_s0 + $0xe0] sm:$0xff]  ;;  %v553_v32 = vld [vmem:[%s1736_s5 + $0x18] sm:$0xff] }
   0xc   :  { %1169 = vmatmul.msk.f32.gmra.mxu0 %vm68_vm1, %v59_v4  ;;  %1188 = vmatmul.msk.f32.gmra.mxu1 %vm68_vm1, %v41_v5  ;;  %v37_v33 = vld [vmem:[%s1734_s0 + $0x58] sm:$0xff]  ;;  %v55_v34 = vld [vmem:[%s1734_s0 + $0xe8] sm:$0xff]  ;;  %v552_v35 = vld [vmem:[%s1736_s5 + $0x10] sm:$0xff] }
   0xd   :  { %1238 = vmatpush.msra.mxu3 %v553_v32  ;;  %667 = vmatpush.msra.mxu2 %v553_v32  ;;  %v551_v36 = vld [vmem:[%s1736_s5 + $0x8] sm:$0xff]  ;;  %v550_v37 = vld [vmem:[%s1736_s5] sm:$0xff]  ;;  %v56_v41 = vld [vmem:[%s1734_s0 + $0xf0] sm:$0xff] }
   0xe   :  { %v38_v40 = vld [vmem:[%s1734_s0 + $0x60] sm:$0xff]  ;;  %v39_v45 = vld [vmem:[%s1734_s0 + $0x68] sm:$0xff]  ;;  %v57_v46 = vld [vmem:[%s1734_s0 + $0xf8] sm:$0xff] }
   0xf   :  { %1239 = vmatpush.msra.mxu3 %v552_v35  ;;  %668 = vmatpush.msra.mxu2 %v552_v35  ;;  %v1441_v42 = vld [vmem:[%s1735_s4] ss:$0 sm:$0xff] }
  0x11   :  { %1240 = vmatpush.msra.mxu3 %v551_v36  ;;  %669 = vmatpush.msra.mxu2 %v551_v36 }
  0x13   :  { %1241 = vmatpush.msra.mxu3 %v550_v37  ;;  %670 = vmatpush.msra.mxu2 %v550_v37 }
  0x14   :  { %1170 = vmatmul.msk.f32.gmra.mxu0 %vm68_vm1, %v60_v6  ;;  %1189 = vmatmul.msk.f32.gmra.mxu1 %vm68_vm1, %v42_v7 }
  0x1c   :  { %1171 = vmatmul.msk.f32.gmra.mxu0 %vm68_vm1, %v61_v8  ;;  %1190 = vmatmul.msk.f32.gmra.mxu1 %vm68_vm1, %v43_v9 }
  0x24   :  { %1173 = vmatmul.msk.f32.vlgmr.msrb.gmra.mxu0 %vm68_vm1, %v26_v10  ;;  %1191 = vmatmul.msk.f32.gmra.mxu1 %vm68_vm1, %v44_v11 }
  0x2c   :  { %1174 = vmatmul.msk.f32.gmra.mxu0 %vm68_vm1, %v27_v12  ;;  %1192 = vmatmul.msk.f32.gmra.mxu1 %vm68_vm1, %v45_v13 }
  0x34   :  { %1175 = vmatmul.msk.f32.gmra.mxu0 %vm68_vm1, %v28_v14  ;;  %1193 = vmatmul.msk.f32.gmra.mxu1 %vm68_vm1, %v46_v15 }
  0x3c   :  { %1176 = vmatmul.msk.f32.gmra.mxu0 %vm68_vm1, %v29_v16  ;;  %1194 = vmatmul.msk.f32.gmra.mxu1 %vm68_vm1, %v47_v17 }
  0x44   :  { %1177 = vmatmul.msk.f32.gmra.mxu0 %vm68_vm1, %v30_v18  ;;  %1195 = vmatmul.msk.f32.gmra.mxu1 %vm68_vm1, %v48_v19 }
  0x4c   :  { %1178 = vmatmul.msk.f32.gmra.mxu0 %vm68_vm1, %v31_v20  ;;  %1196 = vmatmul.msk.f32.gmra.mxu1 %vm68_vm1, %v49_v21 }
  0x54   :  { %1179 = vmatmul.msk.f32.gmra.mxu0 %vm68_vm1, %v32_v22  ;;  %1197 = vmatmul.msk.f32.gmra.mxu1 %vm68_vm1, %v50_v23 }
  0x5c   :  { %1180 = vmatmul.msk.f32.gmra.mxu0 %vm68_vm1, %v33_v24  ;;  %1198 = vmatmul.msk.f32.gmra.mxu1 %vm68_vm1, %v51_v25 }
  0x64   :  { %1181 = vmatmul.msk.f32.gmra.mxu0 %vm68_vm1, %v34_v26  ;;  %1199 = vmatmul.msk.f32.gmra.mxu1 %vm68_vm1, %v52_v27 }
  0x6c   :  { %1182 = vmatmul.msk.f32.gmra.mxu0 %vm68_vm1, %v35_v28  ;;  %1200 = vmatmul.msk.f32.gmra.mxu1 %vm68_vm1, %v53_v29 }
  0x74   :  { %1183 = vmatmul.msk.f32.gmra.mxu0 %vm68_vm1, %v36_v30  ;;  %1201 = vmatmul.msk.f32.gmra.mxu1 %vm68_vm1, %v54_v31 }
  0x7c   :  { %1184 = vmatmul.msk.f32.gmra.mxu0 %vm68_vm1, %v37_v33  ;;  %1202 = vmatmul.msk.f32.gmra.mxu1 %vm68_vm1, %v55_v34 }
  0x81   :  { %v102_v38 = vpop.f32.mrf.mxu0  ;;  %v272_v39 = vpop.f32.mrf.mxu1 }
  0x82   :  { %v1470_v0 = vadd.f32 %v1441_v42, %v102_v38 }
  0x84   :  { %1185 = vmatmul.msk.f32.gmra.mxu0 %vm68_vm1, %v38_v40  ;;  %1203 = vmatmul.msk.f32.gmra.mxu1 %vm68_vm1, %v56_v41  ;;  %v358_v4 = vperm.slane %v1470_v0, 0  ;;  %v330_v10 = vrot.slane %v1470_v0, 1  ;;  %v331_v22 = vrot.slane %v1470_v0, 2  ;;  %v332_v34 = vrot.slane %v1470_v0, 3 }
  0x86   :  { %v359_v16 = vperm.slane %v330_v10, 0  ;;  %v360_v28 = vperm.slane %v331_v22, 0  ;;  %v361_v40 = vperm.slane %v332_v34, 0 }
  0x89   :  { %v105_v43 = vpop.f32.mrf.mxu0  ;;  %v275_v44 = vpop.f32.mrf.mxu1 }
  0x8a   :  { %v1450_v47 = vadd.f32 %v1441_v42, %v105_v43 }
  0x8c   :  { %v343_v48 = vrot.slane %v1450_v47, 7  ;;  %1186 = vmatmul.msk.f32.gmra.mxu0 %vm68_vm1, %v39_v45  ;;  %1204 = vmatmul.msk.f32.gmra.mxu1 %vm68_vm1, %v57_v46  ;;  %v342_v49 = vrot.slane %v1450_v47, 6 }
  0x8e   :  { %v373_v50 = vperm.slane %v343_v48, 0  ;;  %v372_v51 = vperm.slane %v342_v49, 0  ;;  %v333_v48 = vrot.slane %v1470_v0, 4 }
  0x90   :  { %v1456_v52 = vadd.f32 %v373_v50, %v275_v44  ;;  %v1458_v55 = vadd.f32 %v372_v51, %v272_v39 }
  0x91   :  { %v108_v53 = vpop.f32.mrf.mxu0  ;;  %v278_v54 = vpop.f32.mrf.mxu1 }
  0x92   :  { %v1461_v56 = vadd.f32 %v1441_v42, %v108_v53 }
  0x94   :  { %v374_v57 = vperm.slane %v1461_v56, 0  ;;  %v344_v58 = vrot.slane %v1461_v56, 1  ;;  %v345_v2 = vrot.slane %v1461_v56, 2  ;;  %v346_v11 = vrot.slane %v1461_v56, 3 }
  0x95   :  { %v347_v23 = vrot.slane %v1461_v56, 4  ;;  %v348_v35 = vrot.slane %v1461_v56, 5  ;;  %v349_v49 = vrot.slane %v1461_v56, 6 }
  0x96   :  { %v1465_v59 = vadd.f32 %v374_v57, %v278_v54  ;;  %v375_v60 = vperm.slane %v344_v58, 0  ;;  %v376_v5 = vperm.slane %v345_v2, 0  ;;  %v377_v17 = vperm.slane %v346_v11, 0 }
  0x97   :  { %v378_v29 = vperm.slane %v347_v23, 0  ;;  %v379_v41 = vperm.slane %v348_v35, 0  ;;  %v362_v57 = vperm.slane %v333_v48, 0  ;;  %v380_v58 = vperm.slane %v349_v49, 0 }
  0x98   :  { %v334_v2 = vrot.slane %v1470_v0, 5 }
  0x99   :  { %v1467_v61 = vpop.f32.mrf.mxu0  ;;  %v281_v62 = vpop.f32.mrf.mxu1 }
  0x9a   :  { %v439_v63 = vadd.f32 %v375_v60, %v281_v62 }
  0x9c   :  { %v503_v1 = vmul.f32 0.2, %v439_v63  ;;  %vm471_vm3 = vcmp.gt.f32.partialorder %v439_v63, 0.0 }
  0x9e   :  { %v535_v3 = vsel %vm471_vm3, %v439_v63, %v503_v1 }
  0x9f   :  { %1222 = vmatmul.msk.f32.vlgmr.msra.gmra.mxu3 %vm558_vm2, %v535_v3  ;;  %v350_v3 = vrot.slane %v1461_v56, 7  ;;  %v335_v56 = vrot.slane %v1470_v0, 6 }
  0xa1   :  { %v230_v6 = vpop.f32.mrf.mxu0  ;;  %v284_v7 = vpop.f32.mrf.mxu1 }
  0xa2   :  { %v422_v8 = vadd.f32 %v358_v4, %v230_v6  ;;  %v440_v9 = vadd.f32 %v376_v5, %v284_v7 }
  0xa4   :  { %v486_v12 = vmul.f32 0.2, %v422_v8  ;;  %v504_v13 = vmul.f32 0.2, %v440_v9  ;;  %vm454_vm4 = vcmp.gt.f32.partialorder %v422_v8, 0.0  ;;  %vm472_vm5 = vcmp.gt.f32.partialorder %v440_v9, 0.0 }
  0xa6   :  { %v518_v14 = vsel %vm454_vm4, %v422_v8, %v486_v12  ;;  %v536_v15 = vsel %vm472_vm5, %v440_v9, %v504_v13  ;;  %v363_v8 = vperm.slane %v334_v2, 0  ;;  %v381_v9 = vperm.slane %v350_v3, 0 }
  0xa7   :  { %1205 = vmatmul.msk.f32.vlgmr.msra.gmra.mxu2 %vm558_vm2, %v518_v14  ;;  %1223 = vmatmul.msk.f32.gmra.mxu3 %vm558_vm2, %v536_v15  ;;  %v1497_v14 = vadd.f32 %v1441_v42, %v1467_v61  ;;  %v336_v61 = vrot.slane %v1470_v0, 7 }
  0xa9   :  { %v233_v18 = vpop.f32.mrf.mxu0  ;;  %v287_v19 = vpop.f32.mrf.mxu1  ;;  %v352_v0 = vrot.slane %v1497_v14, 2  ;;  %v353_v48 = vrot.slane %v1497_v14, 3  ;;  %v354_v2 = vrot.slane %v1497_v14, 4 }
  0xaa   :  { %v423_v20 = vadd.f32 %v359_v16, %v233_v18  ;;  %v441_v21 = vadd.f32 %v377_v17, %v287_v19  ;;  %v364_v19 = vperm.slane %v335_v56, 0  ;;  %v355_v56 = vrot.slane %v1497_v14, 5 }
  0xac   :  { %v487_v24 = vmul.f32 0.2, %v423_v20  ;;  %v505_v25 = vmul.f32 0.2, %v441_v21  ;;  %vm455_vm6 = vcmp.gt.f32.partialorder %v423_v20, 0.0  ;;  %vm473_vm7 = vcmp.gt.f32.partialorder %v441_v21, 0.0 }
  0xae   :  { %v519_v26 = vsel %vm455_vm6, %v423_v20, %v487_v24  ;;  %v537_v27 = vsel %vm473_vm7, %v441_v21, %v505_v25  ;;  %v382_v20 = vperm.slane %v1497_v14, 0  ;;  %v351_v24 = vrot.slane %v1497_v14, 1 }
  0xaf   :  { %1206 = vmatmul.msk.f32.gmra.mxu2 %vm558_vm2, %v519_v26  ;;  %1224 = vmatmul.msk.f32.gmra.mxu3 %vm558_vm2, %v537_v27 }
  0xb1   :  { %v236_v30 = vpop.f32.mrf.mxu0  ;;  %v290_v31 = vpop.f32.mrf.mxu1 }
  0xb2   :  { %v424_v32 = vadd.f32 %v360_v28, %v236_v30  ;;  %v442_v33 = vadd.f32 %v378_v29, %v290_v31  ;;  %v365_v29 = vperm.slane %v336_v61, 0  ;;  %v383_v30 = vperm.slane %v351_v24, 0 }
  0xb3   :  { %v340_v61 = vrot.slane %v1450_v47, 4  ;;  %v356_v24 = vrot.slane %v1497_v14, 6 }
  0xb4   :  { %v488_v36 = vmul.f32 0.2, %v424_v32  ;;  %v506_v37 = vmul.f32 0.2, %v442_v33  ;;  %vm456_vm8 = vcmp.gt.f32.partialorder %v424_v32, 0.0  ;;  %vm474_vm9 = vcmp.gt.f32.partialorder %v442_v33, 0.0 }
  0xb6   :  { %v520_v38 = vsel %vm456_vm8, %v424_v32, %v488_v36  ;;  %v538_v39 = vsel %vm474_vm9, %v442_v33, %v506_v37 }
  0xb7   :  { %1207 = vmatmul.msk.f32.gmra.mxu2 %vm558_vm2, %v520_v38  ;;  %1225 = vmatmul.msk.f32.gmra.mxu3 %vm558_vm2, %v538_v39  ;;  %v366_v39 = vperm.slane %v1450_v47, 0 }
  0xb9   :  { %v239_v43 = vpop.f32.mrf.mxu0  ;;  %v293_v44 = vpop.f32.mrf.mxu1 }
  0xba   :  { %v425_v45 = vadd.f32 %v361_v40, %v239_v43  ;;  %v443_v46 = vadd.f32 %v379_v41, %v293_v44  ;;  %v384_v40 = vperm.slane %v352_v0, 0  ;;  %v341_v0 = vrot.slane %v1450_v47, 5 }
  0xbc   :  { %v489_v50 = vmul.f32 0.2, %v425_v45  ;;  %v507_v51 = vmul.f32 0.2, %v443_v46  ;;  %vm457_vm10 = vcmp.gt.f32.partialorder %v425_v45, 0.0  ;;  %vm475_vm11 = vcmp.gt.f32.partialorder %v443_v46, 0.0 }
  0xbe   :  { %v521_v53 = vsel %vm457_vm10, %v425_v45, %v489_v50  ;;  %v539_v54 = vsel %vm475_vm11, %v443_v46, %v507_v51  ;;  %v337_v46 = vrot.slane %v1450_v47, 1 }
  0xbf   :  { %1208 = vmatmul.msk.f32.gmra.mxu2 %vm558_vm2, %v521_v53  ;;  %1226 = vmatmul.msk.f32.gmra.mxu3 %vm558_vm2, %v539_v54 }
  0xc0   :  { %v367_v54 = vperm.slane %v337_v46, 0 }
  0xc1   :  { %v242_v60 = vpop.f32.mrf.mxu0  ;;  %v296_v62 = vpop.f32.mrf.mxu1 }
  0xc2   :  { %v426_v63 = vadd.f32 %v362_v57, %v242_v60  ;;  %v444_v1 = vadd.f32 %v380_v58, %v296_v62  ;;  %v385_v57 = vperm.slane %v353_v48, 0 }
  0xc4   :  { %v490_v4 = vmul.f32 0.2, %v426_v63  ;;  %v508_v5 = vmul.f32 0.2, %v444_v1  ;;  %vm458_vm12 = vcmp.gt.f32.partialorder %v426_v63, 0.0  ;;  %vm476_vm13 = vcmp.gt.f32.partialorder %v444_v1, 0.0 }
  0xc6   :  { %v522_v6 = vsel %vm458_vm12, %v426_v63, %v490_v4  ;;  %v540_v7 = vsel %vm476_vm13, %v444_v1, %v508_v5  ;;  %v338_v1 = vrot.slane %v1450_v47, 2 }
  0xc7   :  { %1209 = vmatmul.msk.f32.gmra.mxu2 %vm558_vm2, %v522_v6  ;;  %1227 = vmatmul.msk.f32.gmra.mxu3 %vm558_vm2, %v540_v7 }
  0xc8   :  { %v368_v7 = vperm.slane %v338_v1, 0 }
  0xc9   :  { %v245_v10 = vpop.f32.mrf.mxu0  ;;  %v299_v11 = vpop.f32.mrf.mxu1 }
  0xca   :  { %v427_v12 = vadd.f32 %v363_v8, %v245_v10  ;;  %v445_v13 = vadd.f32 %v381_v9, %v299_v11  ;;  %v386_v8 = vperm.slane %v354_v2, 0 }
  0xcc   :  { %v491_v15 = vmul.f32 0.2, %v427_v12  ;;  %v509_v16 = vmul.f32 0.2, %v445_v13  ;;  %vm459_vm14 = vcmp.gt.f32.partialorder %v427_v12, 0.0  ;;  %vm477_vm15 = vcmp.gt.f32.partialorder %v445_v13, 0.0 }
  0xce   :  { %v523_v17 = vsel %vm459_vm14, %v427_v12, %v491_v15  ;;  %v541_v18 = vsel %vm477_vm15, %v445_v13, %v509_v16  ;;  %v339_v13 = vrot.slane %v1450_v47, 3 }
  0xcf   :  { %1210 = vmatmul.msk.f32.gmra.mxu2 %vm558_vm2, %v523_v17  ;;  %1228 = vmatmul.msk.f32.gmra.mxu3 %vm558_vm2, %v541_v18 }
  0xd1   :  { %v248_v21 = vpop.f32.mrf.mxu0  ;;  %v302_v22 = vpop.f32.mrf.mxu1 }
  0xd2   :  { %v428_v23 = vadd.f32 %v364_v19, %v248_v21  ;;  %v446_v42 = vadd.f32 %v382_v20, %v302_v22  ;;  %v369_v19 = vperm.slane %v339_v13, 0  ;;  %v387_v20 = vperm.slane %v355_v56, 0 }
  0xd4   :  { %v492_v25 = vmul.f32 0.2, %v428_v23  ;;  %v510_v26 = vmul.f32 0.2, %v446_v42  ;;  %vm460_vm0 = vcmp.gt.f32.partialorder %v428_v23, 0.0  ;;  %vm478_vm1 = vcmp.gt.f32.partialorder %v446_v42, 0.0 }
  0xd6   :  { %v524_v27 = vsel %vm460_vm0, %v428_v23, %v492_v25  ;;  %v542_v28 = vsel %vm478_vm1, %v446_v42, %v510_v26  ;;  %vm468_vm1 = vcmp.gt.f32.partialorder %v1458_v55, 0.0 }
  0xd7   :  { %1211 = vmatmul.msk.f32.gmra.mxu2 %vm558_vm2, %v524_v27  ;;  %1229 = vmatmul.msk.f32.gmra.mxu3 %vm558_vm2, %v542_v28 }
  0xd9   :  { %v251_v31 = vpop.f32.mrf.mxu0  ;;  %v305_v32 = vpop.f32.mrf.mxu1 }
  0xda   :  { %v429_v33 = vadd.f32 %v365_v29, %v251_v31  ;;  %v447_v34 = vadd.f32 %v383_v30, %v305_v32  ;;  %v370_v29 = vperm.slane %v340_v61, 0  ;;  %v388_v30 = vperm.slane %v356_v24, 0 }
  0xdc   :  { %v493_v35 = vmul.f32 0.2, %v429_v33  ;;  %v511_v36 = vmul.f32 0.2, %v447_v34  ;;  %vm461_vm3 = vcmp.gt.f32.partialorder %v429_v33, 0.0  ;;  %vm479_vm4 = vcmp.gt.f32.partialorder %v447_v34, 0.0 }
  0xde   :  { %v525_v37 = vsel %vm461_vm3, %v429_v33, %v493_v35  ;;  %v543_v38 = vsel %vm479_vm4, %v447_v34, %v511_v36  ;;  %v357_v35 = vrot.slane %v1497_v14, 7  ;;  %vm469_vm3 = vcmp.gt.f32.partialorder %v1456_v52, 0.0 }
  0xdf   :  { %1212 = vmatmul.msk.f32.gmra.mxu2 %vm558_vm2, %v525_v37  ;;  %1230 = vmatmul.msk.f32.gmra.mxu3 %vm558_vm2, %v543_v38  ;;  %vm470_vm4 = vcmp.gt.f32.partialorder %v1465_v59, 0.0 }
  0xe1   :  { %v254_v41 = vpop.f32.mrf.mxu0  ;;  %v308_v43 = vpop.f32.mrf.mxu1 }
  0xe2   :  { %v430_v44 = vadd.f32 %v366_v39, %v254_v41  ;;  %v448_v45 = vadd.f32 %v384_v40, %v308_v43  ;;  %v371_v40 = vperm.slane %v341_v0, 0  ;;  %v389_v41 = vperm.slane %v357_v35, 0 }
  0xe4   :  { %v494_v49 = vmul.f32 0.2, %v430_v44  ;;  %v512_v50 = vmul.f32 0.2, %v448_v45  ;;  %vm462_vm5 = vcmp.gt.f32.partialorder %v430_v44, 0.0  ;;  %vm480_vm6 = vcmp.gt.f32.partialorder %v448_v45, 0.0 }
  0xe6   :  { %v526_v51 = vsel %vm462_vm5, %v430_v44, %v494_v49  ;;  %v544_v53 = vsel %vm480_vm6, %v448_v45, %v512_v50  ;;  %v500_v50 = vmul.f32 0.2, %v1458_v55 }
  0xe7   :  { %1213 = vmatmul.msk.f32.gmra.mxu2 %vm558_vm2, %v526_v51  ;;  %1231 = vmatmul.msk.f32.gmra.mxu3 %vm558_vm2, %v544_v53  ;;  %v501_v53 = vmul.f32 0.2, %v1456_v52 }
  0xe8   :  { %v532_v51 = vsel %vm468_vm1, %v1458_v55, %v500_v50  ;;  %vm1126_vm1 = vcmask 1044484  }
  0xe9   :  { %v257_v58 = vpop.f32.mrf.mxu0  ;;  %v311_v60 = vpop.f32.mrf.mxu1 }
  0xea   :  { %v431_v62 = vadd.f32 %v367_v54, %v257_v58  ;;  %v449_v63 = vadd.f32 %v385_v57, %v311_v60  ;;  %v533_v54 = vsel %vm469_vm3, %v1456_v52, %v501_v53  ;;  %v502_v57 = vmul.f32 0.2, %v1465_v59 }
  0xec   :  { %v495_v3 = vmul.f32 0.2, %v431_v62  ;;  %v513_v4 = vmul.f32 0.2, %v449_v63  ;;  %vm463_vm7 = vcmp.gt.f32.partialorder %v431_v62, 0.0  ;;  %vm481_vm8 = vcmp.gt.f32.partialorder %v449_v63, 0.0 }
  0xed   :  { %v534_v60 = vsel %vm470_vm4, %v1465_v59, %v502_v57  ;;  %vm1128_vm4 = vcmask 1045509  }
  0xee   :  { %v527_v5 = vsel %vm463_vm7, %v431_v62, %v495_v3  ;;  %v545_v6 = vsel %vm481_vm8, %v449_v63, %v513_v4 }
  0xef   :  { %1214 = vmatmul.msk.f32.gmra.mxu2 %vm558_vm2, %v527_v5  ;;  %1232 = vmatmul.msk.f32.gmra.mxu3 %vm558_vm2, %v545_v6  ;;  %v1558_v5 = vld [vmem:[%s1737_s6] ss:$0 sm:$0xff] }
  0xf1   :  { %v260_v9 = vpop.f32.mrf.mxu0  ;;  %v314_v10 = vpop.f32.mrf.mxu1 }
  0xf2   :  { %v432_v11 = vadd.f32 %v368_v7, %v260_v9  ;;  %v450_v12 = vadd.f32 %v386_v8, %v314_v10 }
  0xf4   :  { %v496_v15 = vmul.f32 0.2, %v432_v11  ;;  %v514_v16 = vmul.f32 0.2, %v450_v12  ;;  %vm464_vm9 = vcmp.gt.f32.partialorder %v432_v11, 0.0  ;;  %vm482_vm10 = vcmp.gt.f32.partialorder %v450_v12, 0.0 }
  0xf6   :  { %v528_v17 = vsel %vm464_vm9, %v432_v11, %v496_v15  ;;  %v546_v18 = vsel %vm482_vm10, %v450_v12, %v514_v16 }
  0xf7   :  { %1215 = vmatmul.msk.f32.gmra.mxu2 %vm558_vm2, %v528_v17  ;;  %1233 = vmatmul.msk.f32.gmra.mxu3 %vm558_vm2, %v546_v18 }
  0xf9   :  { %v263_v21 = vpop.f32.mrf.mxu0  ;;  %v317_v22 = vpop.f32.mrf.mxu1 }
  0xfa   :  { %v433_v23 = vadd.f32 %v369_v19, %v263_v21  ;;  %v451_v42 = vadd.f32 %v387_v20, %v317_v22 }
  0xfc   :  { %v497_v25 = vmul.f32 0.2, %v433_v23  ;;  %v515_v26 = vmul.f32 0.2, %v451_v42  ;;  %vm465_vm11 = vcmp.gt.f32.partialorder %v433_v23, 0.0  ;;  %vm483_vm12 = vcmp.gt.f32.partialorder %v451_v42, 0.0 }
  0xfe   :  { %v529_v27 = vsel %vm465_vm11, %v433_v23, %v497_v25  ;;  %v547_v28 = vsel %vm483_vm12, %v451_v42, %v515_v26 }
  0xff   :  { %1216 = vmatmul.msk.f32.gmra.mxu2 %vm558_vm2, %v529_v27  ;;  %1234 = vmatmul.msk.f32.gmra.mxu3 %vm558_vm2, %v547_v28 }
 0x101   :  { %v266_v31 = vpop.f32.mrf.mxu0  ;;  %v320_v32 = vpop.f32.mrf.mxu1 }
 0x102   :  { %v434_v33 = vadd.f32 %v370_v29, %v266_v31  ;;  %v452_v34 = vadd.f32 %v388_v30, %v320_v32 }
 0x104   :  { %v498_v36 = vmul.f32 0.2, %v434_v33  ;;  %v516_v37 = vmul.f32 0.2, %v452_v34  ;;  %vm466_vm13 = vcmp.gt.f32.partialorder %v434_v33, 0.0  ;;  %vm484_vm14 = vcmp.gt.f32.partialorder %v452_v34, 0.0 }
 0x106   :  { %v530_v38 = vsel %vm466_vm13, %v434_v33, %v498_v36  ;;  %v548_v39 = vsel %vm484_vm14, %v452_v34, %v516_v37  ;;  %vm1120_vm14 = vcmask 1041409  }
 0x107   :  { %1217 = vmatmul.msk.f32.gmra.mxu2 %vm558_vm2, %v530_v38  ;;  %1235 = vmatmul.msk.f32.gmra.mxu3 %vm558_vm2, %v548_v39 }
 0x109   :  { %v269_v43 = vpop.f32.mrf.mxu0  ;;  %v323_v44 = vpop.f32.mrf.mxu1 }
 0x10a   :  { %v435_v45 = vadd.f32 %v371_v40, %v269_v43  ;;  %v453_v46 = vadd.f32 %v389_v41, %v323_v44 }
 0x10c   :  { %v499_v48 = vmul.f32 0.2, %v435_v45  ;;  %v517_v47 = vmul.f32 0.2, %v453_v46  ;;  %vm467_vm15 = vcmp.gt.f32.partialorder %v435_v45, 0.0  ;;  %vm485_vm0 = vcmp.gt.f32.partialorder %v453_v46, 0.0 }
 0x10e   :  { %v531_v14 = vsel %vm467_vm15, %v435_v45, %v499_v48  ;;  %v549_v49 = vsel %vm485_vm0, %v453_v46, %v517_v47  ;;  %vm1122_vm15 = vcmask 1042434   ;;  %vm1124_vm0 = vcmask 1043459  }
 0x10f   :  { %1218 = vmatmul.msk.f32.gmra.mxu2 %vm558_vm2, %v531_v14  ;;  %1236 = vmatmul.msk.f32.gmra.mxu3 %vm558_vm2, %v549_v49 }
 0x117   :  { %1219 = vmatmul.msk.f32.gmra.mxu2 %vm558_vm2, %v532_v51 }
 0x11f   :  { %1220 = vmatmul.msk.f32.gmra.mxu2 %vm558_vm2, %v533_v54 }
 0x122   :  { %v1542_v58 = vpop.f32.mrf.mxu3 }
 0x127   :  { %1221 = vmatmul.msk.f32.gmra.mxu2 %vm558_vm2, %v534_v60 }
 0x12a   :  { %v672_v55 = vpop.f32.mrf.mxu2  ;;  %v1547_v62 = vpop.f32.mrf.mxu3 }
 0x12b   :  { %v673_v6 = vadd.f32 %v1558_v5, %v672_v55 }
 0x12d   :  { %v800_v13 = vmul.f32 0.2, %v673_v6  ;;  %vm768_vm6 = vcmp.gt.f32.partialorder %v673_v6, 0.0 }
 0x12f   :  { %v832_v18 = vsel %vm768_vm6, %v673_v6, %v800_v13  ;;  %vm1130_vm6 = vcmask 1046534  }
 0x130   :  { %v864_v24 = vsel %vm558_vm2, %v832_v18, -inf }
 0x131   :  { %v865_v31 = vrot.slane %v864_v24, 4 }
 0x132   :  { %v675_v63 = vpop.f32.mrf.mxu2  ;;  %v1549_v1 = vpop.f32.mrf.mxu3 }
 0x133   :  { %v676_v59 = vadd.f32 %v1558_v5, %v675_v63  ;;  %v866_v40 = vmax.f32 %v864_v24, %v865_v31 }
 0x135   :  { %v801_v12 = vmul.f32 0.2, %v676_v59  ;;  %vm769_vm5 = vcmp.gt.f32.partialorder %v676_v59, 0.0  ;;  %v867_v14 = vrot.slane %v866_v40, 2 }
 0x137   :  { %v833_v17 = vsel %vm769_vm5, %v676_v59, %v801_v12  ;;  %v868_v59 = vmax.f32 %v866_v40, %v867_v14 }
 0x138   :  { %v871_v42 = vsel %vm558_vm2, %v833_v17, -inf }
 0x139   :  { %v872_v28 = vrot.slane %v871_v42, 4 }
 0x13a   :  { %v678_v2 = vpop.f32.mrf.mxu2  ;;  %v1551_v52 = vpop.f32.mrf.mxu3 }
 0x13b   :  { %v679_v7 = vadd.f32 %v1558_v5, %v678_v2  ;;  %v873_v37 = vmax.f32 %v871_v42, %v872_v28  ;;  %v727_v28 = vadd.f32 %v1558_v5, %v1547_v62 }
 0x13d   :  { %v802_v56 = vmul.f32 0.2, %v679_v7  ;;  %vm770_vm7 = vcmp.gt.f32.partialorder %v679_v7, 0.0  ;;  %v874_v46 = vrot.slane %v873_v37, 2  ;;  %vm786_vm5 = vcmp.gt.f32.partialorder %v727_v28, 0.0 }
 0x13f   :  { %v834_v19 = vsel %vm770_vm7, %v679_v7, %v802_v56  ;;  %v875_v55 = vmax.f32 %v873_v37, %v874_v46  ;;  %vm1132_vm7 = vcmask 1047559  }
 0x140   :  { %v878_v25 = vsel %vm558_vm2, %v834_v19, -inf  ;;  %v869_v19 = vrot.slane %v868_v59, 1 }
 0x141   :  { %v879_v32 = vrot.slane %v878_v25, 4  ;;  %v876_v13 = vrot.slane %v875_v55, 1 }
 0x142   :  { %v681_v3 = vpop.f32.mrf.mxu2  ;;  %v1553_v4 = vpop.f32.mrf.mxu3  ;;  %v870_v31 = vmax.f32 %v868_v59, %v869_v19 }
 0x143   :  { %v682_v10 = vadd.f32 %v1558_v5, %v681_v3  ;;  %v880_v41 = vmax.f32 %v878_v25, %v879_v32  ;;  %v877_v25 = vmax.f32 %v875_v55, %v876_v13 }
 0x145   :  { %v803_v15 = vmul.f32 0.2, %v682_v10  ;;  %vm771_vm8 = vcmp.gt.f32.partialorder %v682_v10, 0.0  ;;  %v881_v49 = vrot.slane %v880_v41, 2 }
 0x147   :  { %v835_v22 = vsel %vm771_vm8, %v682_v10, %v803_v15  ;;  %v882_v6 = vmax.f32 %v880_v41, %v881_v49 }
 0x148   :  { %v885_v27 = vsel %vm558_vm2, %v835_v22, -inf }
 0x149   :  { %v886_v34 = vrot.slane %v885_v27, 4 }
 0x14a   :  { %v684_v8 = vpop.f32.mrf.mxu2  ;;  %v1563_v9 = vpop.f32.mrf.mxu3 }
 0x14b   :  { %v685_v11 = vadd.f32 %v1558_v5, %v684_v8  ;;  %v887_v43 = vmax.f32 %v885_v27, %v886_v34 }
 0x14d   :  { %v804_v16 = vmul.f32 0.2, %v685_v11  ;;  %vm772_vm9 = vcmp.gt.f32.partialorder %v685_v11, 0.0  ;;  %v888_v51 = vrot.slane %v887_v43, 2 }
 0x14f   :  { %v836_v61 = vsel %vm772_vm9, %v685_v11, %v804_v16  ;;  %v889_v7 = vmax.f32 %v887_v43, %v888_v51  ;;  %v724_v11 = vadd.f32 %v1558_v5, %v1542_v58  ;;  %v883_v16 = vrot.slane %v882_v6, 1 }
 0x150   :  { %v892_v29 = vsel %vm558_vm2, %v836_v61, -inf }
 0x151   :  { %v893_v0 = vrot.slane %v892_v29, 4  ;;  %vm785_vm13 = vcmp.gt.f32.partialorder %v724_v11, 0.0  ;;  %v817_v58 = vmul.f32 0.2, %v724_v11 }
 0x152   :  { %v687_v20 = vpop.f32.mrf.mxu2  ;;  %v1567_v21 = vpop.f32.mrf.mxu3 }
 0x153   :  { %v688_v23 = vadd.f32 %v1558_v5, %v687_v20  ;;  %v894_v45 = vmax.f32 %v892_v29, %v893_v0  ;;  %v890_v20 = vrot.slane %v889_v7, 1  ;;  %v884_v29 = vmax.f32 %v882_v6, %v883_v16 }
 0x155   :  { %vm773_vm10 = vcmp.gt.f32.partialorder %v688_v23, 0.0  ;;  %v805_v26 = vmul.f32 0.2, %v688_v23  ;;  %v895_v54 = vrot.slane %v894_v45, 2  ;;  %v891_v32 = vmax.f32 %v889_v7, %v890_v20 }
 0x157   :  { %v837_v30 = vsel %vm773_vm10, %v688_v23, %v805_v26  ;;  %v896_v12 = vmax.f32 %v894_v45, %v895_v54 }
 0x158   :  { %v899_v33 = vsel %vm558_vm2, %v837_v30, -inf }
 0x159   :  { %v900_v38 = vrot.slane %v899_v33, 4  ;;  %v897_v23 = vrot.slane %v896_v12, 1 }
 0x15a   :  { %v690_v35 = vpop.f32.mrf.mxu2  ;;  %v744_v36 = vpop.f32.mrf.mxu3 }
 0x15b   :  { %v691_v39 = vadd.f32 %v1558_v5, %v690_v35  ;;  %v901_v48 = vmax.f32 %v899_v33, %v900_v38  ;;  %v745_v42 = vadd.f32 %v1558_v5, %v744_v36  ;;  %v898_v34 = vmax.f32 %v896_v12, %v897_v23 }
 0x15c   :  { %v1121_v36 = vsel %vm1120_vm14, %v877_v25, %v870_v31 }
 0x15d   :  { %vm774_vm11 = vcmp.gt.f32.partialorder %v691_v39, 0.0  ;;  %v806_v44 = vmul.f32 0.2, %v691_v39  ;;  %v902_v63 = vrot.slane %v901_v48, 2  ;;  %v824_v0 = vmul.f32 0.2, %v745_v42 }
 0x15e   :  { %vm792_vm3 = vcmp.gt.f32.partialorder %v745_v42, 0.0  ;;  %v1123_v62 = vsel %vm1122_vm15, %v884_v29, %v1121_v36 }
 0x15f   :  { %v838_v47 = vsel %vm774_vm11, %v691_v39, %v806_v44  ;;  %v903_v56 = vmax.f32 %v901_v48, %v902_v63  ;;  %v818_v39 = vmul.f32 0.2, %v727_v28  ;;  %v1125_v41 = vsel %vm1124_vm0, %v891_v32, %v1123_v62 }
 0x160   :  { %v906_v50 = vsel %vm558_vm2, %v838_v47, -inf  ;;  %v1127_v44 = vsel %vm1126_vm1, %v898_v34, %v1125_v41  ;;  %v856_v45 = vsel %vm792_vm3, %v745_v42, %v824_v0  ;;  %v1636_v62 = vadd.f32 %v1558_v5, %v1567_v21 }
 0x161   :  { %v907_v53 = vrot.slane %v906_v50, 4  ;;  %v904_v26 = vrot.slane %v903_v56, 1  ;;  %v850_v51 = vsel %vm786_vm5, %v727_v28, %v818_v39 }
 0x162   :  { %v693_v57 = vpop.f32.mrf.mxu2  ;;  %v747_v60 = vpop.f32.mrf.mxu3 }
 0x163   :  { %v908_v2 = vmax.f32 %v906_v50, %v907_v53  ;;  %v694_v3 = vadd.f32 %v1558_v5, %v693_v57  ;;  %v748_v35 = vadd.f32 %v1558_v5, %v747_v60  ;;  %v905_v37 = vmax.f32 %v903_v56, %v904_v26 }
 0x164   :  { %v849_v50 = vsel %vm785_vm13, %v724_v11, %v817_v58  ;;  %v730_v53 = vadd.f32 %v1558_v5, %v1549_v1  ;;  %v1032_v57 = vsel %vm558_vm2, %v856_v45, -inf  ;;  %v733_v1 = vadd.f32 %v1558_v5, %v1551_v52 }
 0x165   :  { %v909_v8 = vrot.slane %v908_v2, 2  ;;  %vm775_vm12 = vcmp.gt.f32.partialorder %v694_v3, 0.0  ;;  %v807_v10 = vmul.f32 0.2, %v694_v3  ;;  %v825_v46 = vmul.f32 0.2, %v748_v35 }
 0x166   :  { %v1129_v14 = vsel %vm1128_vm4, %v905_v37, %v1127_v44  ;;  %vm793_vm8 = vcmp.gt.f32.partialorder %v748_v35, 0.0  ;;  %v983_v63 = vsel %vm558_vm2, %v849_v50, -inf  ;;  %v1033_v59 = vrot.slane %v1032_v57, 4 }
 0x167   :  { %v839_v15 = vsel %vm775_vm12, %v694_v3, %v807_v10  ;;  %v910_v17 = vmax.f32 %v908_v2, %v909_v8  ;;  %v857_v55 = vsel %vm793_vm8, %v748_v35, %v825_v46  ;;  %v990_v2 = vsel %vm558_vm2, %v850_v51, -inf }
 0x168   :  { %v913_v18 = vsel %vm558_vm2, %v839_v15, -inf  ;;  %v819_v3 = vmul.f32 0.2, %v730_v53  ;;  %vm787_vm9 = vcmp.gt.f32.partialorder %v730_v53, 0.0  ;;  %v1039_v6 = vsel %vm558_vm2, %v857_v55, -inf }
 0x169   :  { %v914_v22 = vrot.slane %v913_v18, 4  ;;  %v911_v30 = vrot.slane %v910_v17, 1  ;;  %v984_v8 = vrot.slane %v983_v63, 4  ;;  %v991_v10 = vrot.slane %v990_v2, 4 }
 0x16a   :  { %v1583_v61 = vpop.f32.mrf.mxu2  ;;  %v750_v24 = vpop.f32.mrf.mxu3  ;;  %v851_v56 = vsel %vm787_vm9, %v730_v53, %v819_v3  ;;  %v820_v15 = vmul.f32 0.2, %v733_v1  ;;  %v1034_v16 = vmax.f32 %v1032_v57, %v1033_v59  ;;  %vm788_vm10 = vcmp.gt.f32.partialorder %v733_v1, 0.0 }
 0x16b   :  { %v915_v27 = vmax.f32 %v913_v18, %v914_v22  ;;  %v912_v40 = vmax.f32 %v910_v17, %v911_v30  ;;  %v751_v7 = vadd.f32 %v1558_v5, %v750_v24  ;;  %v1040_v17 = vrot.slane %v1039_v6, 4 }
 0x16c   :  { %v1613_v19 = vmax.f32 %v983_v63, %v984_v8  ;;  %v1615_v20 = vmax.f32 %v990_v2, %v991_v10  ;;  %v697_v22 = vadd.f32 %v1558_v5, %v1583_v61  ;;  %v1620_v23 = vsel %vm558_vm2, %v851_v56, -inf }
 0x16d   :  { %v916_v33 = vrot.slane %v915_v27, 2  ;;  %v1131_v54 = vsel %vm1130_vm6, %v912_v40, %v1129_v14  ;;  %v826_v18 = vmul.f32 0.2, %v751_v7  ;;  %vm794_vm11 = vcmp.gt.f32.partialorder %v751_v7, 0.0 }
 0x16e   :  { %v852_v24 = vsel %vm788_vm10, %v733_v1, %v820_v15  ;;  %v1035_v58 = vrot.slane %v1034_v16, 2  ;;  %v1041_v25 = vmax.f32 %v1039_v6, %v1040_v17  ;;  %v736_v26 = vadd.f32 %v1558_v5, %v1553_v4 }
 0x16f   :  { %v917_v38 = vmax.f32 %v915_v27, %v916_v33  ;;  %v739_v27 = vadd.f32 %v1558_v5, %v1563_v9  ;;  %v858_v28 = vsel %vm794_vm11, %v751_v7, %v826_v18  ;;  %v986_v30 = vrot.slane %v1613_v19, 2 }
 0x170   :  { %v993_v61 = vrot.slane %v1615_v20, 2  ;;  %v808_v31 = vmul.f32 0.2, %v697_v22  ;;  %v998_v34 = vrot.slane %v1620_v23, 4  ;;  %vm776_vm3 = vcmp.gt.f32.partialorder %v697_v22, 0.0 }
 0x171   :  { %v918_v43 = vrot.slane %v917_v38, 1  ;;  %v1631_v4 = vsel %vm558_vm2, %v852_v24, -inf  ;;  %v1036_v9 = vmax.f32 %v1034_v16, %v1035_v58  ;;  %v1042_v36 = vrot.slane %v1041_v25, 2 }
 0x172   :  { %v1592_v48 = vpop.f32.mrf.mxu2  ;;  %v753_v47 = vpop.f32.mrf.mxu3  ;;  %v1046_v37 = vsel %vm558_vm2, %v858_v28, -inf  ;;  %v822_v39 = vmul.f32 0.2, %v739_v27  ;;  %v840_v41 = vsel %vm776_vm3, %v697_v22, %v808_v31  ;;  %vm789_vm8 = vcmp.gt.f32.partialorder %v736_v26, 0.0 }
 0x173   :  { %v919_v49 = vmax.f32 %v917_v38, %v918_v43  ;;  %v754_v13 = vadd.f32 %v1558_v5, %v753_v47  ;;  %v821_v38 = vmul.f32 0.2, %v736_v26  ;;  %vm790_vm9 = vcmp.gt.f32.partialorder %v739_v27, 0.0 }
 0x174   :  { %v1047_v45 = vrot.slane %v1046_v37, 4  ;;  %v700_v46 = vadd.f32 %v1558_v5, %v1592_v48  ;;  %v1037_v47 = vrot.slane %v1036_v9, 1  ;;  %v1043_v14 = vmax.f32 %v1041_v25, %v1042_v36 }
 0x175   :  { %v1133_v60 = vsel %vm1132_vm7, %v919_v49, %v1131_v54  ;;  %v827_v42 = vmul.f32 0.2, %v754_v13  ;;  %vm795_vm12 = vcmp.gt.f32.partialorder %v754_v13, 0.0  ;;  %v920_v21 = vsel %vm558_vm2, %v840_v41, -inf }
 0x176   :  { %1159 = vst.msk [vmem:[%s1738_s7] sm:$0xff] %vm558_vm2, %v1133_v60  ;;  %v1645_v57 = vsel %vm789_vm8, %v736_v26, %v821_v38  ;;  %v1647_v60 = vsel %vm790_vm9, %v739_v27, %v822_v39  ;;  %v1650_v55 = vmul.f32 0.2, %v1636_v62  ;;  %v1048_v3 = vmax.f32 %v1046_v37, %v1047_v45 }
 0x177   :  { %v859_v0 = vsel %vm795_vm12, %v754_v13, %v827_v42  ;;  %v809_v1 = vmul.f32 0.2, %v700_v46  ;;  %v921_v7 = vrot.slane %v920_v21, 4  ;;  %vm777_vm10 = vcmp.gt.f32.partialorder %v700_v46, 0.0 }
 0x178   :  { %v1053_v43 = vsel %vm558_vm2, %v859_v0, -inf  ;;  %v1049_v17 = vrot.slane %v1048_v3, 2  ;;  %vm791_vm9 = vcmp.gt.f32.partialorder %v1636_v62, 0.0 }
 0x179   :  { %v1054_v51 = vrot.slane %v1053_v43, 4  ;;  %v841_v18 = vsel %vm777_vm10, %v700_v46, %v809_v1  ;;  %v1657_v22 = vmax.f32 %v920_v21, %v921_v7 }
 0x17a   :  { %v702_v11 = vpop.f32.mrf.mxu2  ;;  %v756_v12 = vpop.f32.mrf.mxu3  ;;  %v927_v28 = vsel %vm558_vm2, %v841_v18, -inf }
 0x17b   :  { %v757_v52 = vadd.f32 %v1558_v5, %v756_v12  ;;  %v703_v53 = vadd.f32 %v1558_v5, %v702_v11  ;;  %v1655_v11 = vmax.f32 %v1036_v9, %v1037_v47  ;;  %v1044_v12 = vrot.slane %v1043_v14, 1 }
 0x17c   :  { %v1055_v13 = vmax.f32 %v1053_v43, %v1054_v51  ;;  %v928_v43 = vrot.slane %v927_v28, 4 }
 0x17d   :  { %v828_v29 = vmul.f32 0.2, %v757_v52  ;;  %vm796_vm13 = vcmp.gt.f32.partialorder %v757_v52, 0.0  ;;  %v810_v56 = vmul.f32 0.2, %v703_v53  ;;  %vm778_vm11 = vcmp.gt.f32.partialorder %v703_v53, 0.0 }
 0x17e   :  { %v1045_v25 = vmax.f32 %v1043_v14, %v1044_v12 }
 0x17f   :  { %v860_v40 = vsel %vm796_vm13, %v757_v52, %v828_v29  ;;  %v842_v26 = vsel %vm778_vm11, %v703_v53, %v810_v56  ;;  %v1056_v29 = vrot.slane %v1055_v13, 2 }
 0x180   :  { %v1060_v49 = vsel %vm558_vm2, %v860_v40, -inf  ;;  %v934_v38 = vsel %vm558_vm2, %v842_v26, -inf }
 0x181   :  { %v1061_v59 = vrot.slane %v1060_v49, 4  ;;  %v1057_v46 = vmax.f32 %v1055_v13, %v1056_v29 }
 0x182   :  { %v705_v32 = vpop.f32.mrf.mxu2  ;;  %v759_v33 = vpop.f32.mrf.mxu3 }
 0x183   :  { %v760_v35 = vadd.f32 %v1558_v5, %v759_v33  ;;  %v706_v48 = vadd.f32 %v1558_v5, %v705_v32  ;;  %v1062_v52 = vmax.f32 %v1060_v49, %v1061_v59  ;;  %v935_v49 = vrot.slane %v934_v38, 4 }
 0x184   :  { %v1058_v7 = vrot.slane %v1057_v46, 1 }
 0x185   :  { %vm797_vm5 = vcmp.gt.f32.partialorder %v760_v35, 0.0  ;;  %v829_v44 = vmul.f32 0.2, %v760_v35  ;;  %v811_v15 = vmul.f32 0.2, %v706_v48  ;;  %vm779_vm13 = vcmp.gt.f32.partialorder %v706_v48, 0.0 }
 0x186   :  { %v1063_v9 = vrot.slane %v1062_v52, 2  ;;  %v936_v13 = vmax.f32 %v934_v38, %v935_v49 }
 0x187   :  { %v861_v50 = vsel %vm797_vm5, %v760_v35, %v829_v44  ;;  %v843_v31 = vsel %vm779_vm13, %v706_v48, %v811_v15  ;;  %v1050_v35 = vmax.f32 %v1048_v3, %v1049_v17  ;;  %v1148_v17 = vsel %vm1120_vm14, %v1045_v25, %v1655_v11 }
 0x188   :  { %v1067_v54 = vsel %vm558_vm2, %v861_v50, -inf  ;;  %v941_v44 = vsel %vm558_vm2, %v843_v31, -inf  ;;  %v1064_v50 = vmax.f32 %v1062_v52, %v1063_v9 }
 0x189   :  { %v1068_v8 = vrot.slane %v1067_v54, 4  ;;  %v942_v53 = vrot.slane %v941_v44, 4  ;;  %v1051_v3 = vrot.slane %v1050_v35, 1 }
 0x18a   :  { %v708_v63 = vpop.f32.mrf.mxu2  ;;  %v762_v2 = vpop.f32.mrf.mxu3  ;;  %v1065_v56 = vrot.slane %v1064_v50, 1 }
 0x18b   :  { %v763_v6 = vadd.f32 %v1558_v5, %v762_v2  ;;  %v709_v10 = vadd.f32 %v1558_v5, %v708_v63  ;;  %v1069_v42 = vmax.f32 %v1067_v54, %v1068_v8  ;;  %v923_v2 = vrot.slane %v1657_v22, 2 }
 0x18c   :  { %v943_v18 = vmax.f32 %v941_v44, %v942_v53 }
 0x18d   :  { %vm798_vm12 = vcmp.gt.f32.partialorder %v763_v6, 0.0  ;;  %v830_v16 = vmul.f32 0.2, %v763_v6  ;;  %v812_v24 = vmul.f32 0.2, %v709_v10  ;;  %vm780_vm3 = vcmp.gt.f32.partialorder %v709_v10, 0.0 }
 0x18e   :  { %v1070_v39 = vrot.slane %v1069_v42, 2  ;;  %v924_v25 = vmax.f32 %v1657_v22, %v923_v2  ;;  %v1011_v2 = vsel %vm558_vm2, %v1645_v57, -inf }
 0x18f   :  { %v862_v58 = vsel %vm798_vm12, %v763_v6, %v830_v16  ;;  %v844_v40 = vsel %vm780_vm3, %v709_v10, %v812_v24  ;;  %v929_v6 = vmax.f32 %v927_v28, %v928_v43  ;;  %v1052_v24 = vmax.f32 %v1050_v35, %v1051_v3 }
 0x190   :  { %v1074_v27 = vsel %vm558_vm2, %v862_v58, -inf  ;;  %v948_v21 = vsel %vm558_vm2, %v844_v40, -inf  ;;  %v1071_v54 = vmax.f32 %v1069_v42, %v1070_v39  ;;  %v1059_v28 = vmax.f32 %v1057_v46, %v1058_v7 }
 0x191   :  { %v1075_v32 = vrot.slane %v1074_v27, 4  ;;  %v949_v8 = vrot.slane %v948_v21, 4  ;;  %v1149_v35 = vsel %vm1122_vm15, %v1052_v24, %v1148_v17  ;;  %v855_v3 = vsel %vm791_vm9, %v1636_v62, %v1650_v55 }
 0x192   :  { %v711_v33 = vpop.f32.mrf.mxu2  ;;  %v765_v0 = vpop.f32.mrf.mxu3  ;;  %v1072_v52 = vrot.slane %v1071_v54, 1  ;;  %v1150_v43 = vsel %vm1124_vm0, %v1059_v28, %v1149_v35  ;;  %v925_v57 = vrot.slane %v924_v25, 1  ;;  %v999_v62 = vmax.f32 %v1620_v23, %v998_v34 }
 0x193   :  { %v712_v36 = vadd.f32 %v1558_v5, %v711_v33  ;;  %v766_v37 = vadd.f32 %v1558_v5, %v765_v0  ;;  %v1076_v41 = vmax.f32 %v1074_v27, %v1075_v32  ;;  %v930_v27 = vrot.slane %v929_v6, 2 }
 0x194   :  { %v950_v29 = vmax.f32 %v948_v21, %v949_v8  ;;  %v937_v32 = vrot.slane %v936_v13, 2  ;;  %v1066_v33 = vmax.f32 %v1064_v50, %v1065_v56  ;;  %v1025_v55 = vsel %vm558_vm2, %v855_v3, -inf }
 0x195   :  { %vm781_vm5 = vcmp.gt.f32.partialorder %v712_v36, 0.0  ;;  %v813_v45 = vmul.f32 0.2, %v712_v36  ;;  %v1077_v47 = vrot.slane %v1076_v41, 2  ;;  %vm799_vm8 = vcmp.gt.f32.partialorder %v766_v37, 0.0 }
 0x196   :  { %v831_v14 = vmul.f32 0.2, %v766_v37  ;;  %v951_v44 = vrot.slane %v950_v29, 2  ;;  %v938_v21 = vmax.f32 %v936_v13, %v937_v32  ;;  %v1012_v17 = vrot.slane %v1011_v2, 4 }
 0x197   :  { %v845_v51 = vsel %vm781_vm5, %v712_v36, %v813_v45  ;;  %v1078_v1 = vmax.f32 %v1076_v41, %v1077_v47  ;;  %v944_v36 = vrot.slane %v943_v18, 2  ;;  %v931_v41 = vmax.f32 %v929_v6, %v930_v27 }
 0x198   :  { %v955_v48 = vsel %vm558_vm2, %v845_v51, -inf  ;;  %v863_v63 = vsel %vm799_vm8, %v766_v37, %v831_v14  ;;  %v1073_v37 = vmax.f32 %v1071_v54, %v1072_v52  ;;  %v1151_v47 = vsel %vm1126_vm1, %v1066_v33, %v1150_v43 }
 0x199   :  { %v1081_v59 = vsel %vm558_vm2, %v863_v63, -inf  ;;  %v956_v15 = vrot.slane %v955_v48, 4  ;;  %v1079_v58 = vrot.slane %v1078_v1, 1  ;;  %v945_v51 = vmax.f32 %v943_v18, %v944_v36 }
 0x19a   :  { %v1082_v10 = vrot.slane %v1081_v59, 4  ;;  %v714_v12 = vpop.f32.mrf.mxu2  ;;  %v1152_v22 = vsel %vm1128_vm4, %v1073_v37, %v1151_v47  ;;  %v1018_v6 = vsel %vm558_vm2, %v1647_v60, -inf  ;;  %v932_v7 = vrot.slane %v931_v41, 1 }
 0x19b   :  { %v715_v16 = vadd.f32 %v1558_v5, %v714_v12  ;;  %v957_v0 = vmax.f32 %v955_v48, %v956_v15  ;;  %v1080_v39 = vmax.f32 %v1078_v1, %v1079_v58  ;;  %v952_v1 = vmax.f32 %v950_v29, %v951_v44 }
 0x19c   :  { %v1083_v42 = vmax.f32 %v1081_v59, %v1082_v10  ;;  %v939_v12 = vrot.slane %v938_v21, 1  ;;  %v946_v60 = vrot.slane %v945_v51, 1  ;;  %v1019_v18 = vrot.slane %v1018_v6, 4 }
 0x19d   :  { %vm782_vm10 = vcmp.gt.f32.partialorder %v715_v16, 0.0  ;;  %v814_v26 = vmul.f32 0.2, %v715_v16  ;;  %v958_v14 = vrot.slane %v957_v0, 2  ;;  %v1153_v54 = vsel %vm1130_vm6, %v1080_v39, %v1152_v22 }
 0x19e   :  { %v1084_v31 = vrot.slane %v1083_v42, 2  ;;  %v953_v52 = vrot.slane %v952_v1, 1  ;;  %v933_v24 = vmax.f32 %v931_v41, %v932_v7  ;;  %v1026_v28 = vrot.slane %v1025_v55, 4 }
 0x19f   :  { %v846_v9 = vsel %vm782_vm10, %v715_v16, %v814_v26  ;;  %v959_v8 = vmax.f32 %v957_v0, %v958_v14  ;;  %v1005_v16 = vrot.slane %v1631_v4, 4  ;;  %v926_v29 = vmax.f32 %v924_v25, %v925_v57 }
 0x1a0   :  { %v1085_v38 = vmax.f32 %v1083_v42, %v1084_v31  ;;  %v962_v11 = vsel %vm558_vm2, %v846_v9, -inf  ;;  %v940_v31 = vmax.f32 %v938_v21, %v939_v12  ;;  %v947_v23 = vmax.f32 %v945_v51, %v946_v60 }
 0x1a1   :  { %v963_v40 = vrot.slane %v962_v11, 4  ;;  %v960_v58 = vrot.slane %v959_v8, 1  ;;  %v1000_v0 = vrot.slane %v999_v62, 2  ;;  %v1006_v9 = vmax.f32 %v1631_v4, %v1005_v16 }
 0x1a2   :  { %v1086_v45 = vrot.slane %v1085_v38, 1  ;;  %v717_v46 = vpop.f32.mrf.mxu2  ;;  %v1013_v36 = vmax.f32 %v1011_v2, %v1012_v17  ;;  %v954_v37 = vmax.f32 %v952_v1, %v953_v52  ;;  %v1027_v43 = vmax.f32 %v1025_v55, %v1026_v28 }
 0x1a3   :  { %v964_v49 = vmax.f32 %v962_v11, %v963_v40  ;;  %v718_v50 = vadd.f32 %v1558_v5, %v717_v46  ;;  %v961_v11 = vmax.f32 %v959_v8, %v960_v58  ;;  %v1020_v40 = vmax.f32 %v1018_v6, %v1019_v18 }
 0x1a4   :  { %v1087_v53 = vmax.f32 %v1085_v38, %v1086_v45  ;;  %v1134_v38 = vsel %vm1120_vm14, %v933_v24, %v926_v29  ;;  %v987_v4 = vmax.f32 %v1613_v19, %v986_v30  ;;  %v1007_v47 = vrot.slane %v1006_v9, 2 }
 0x1a5   :  { %v965_v48 = vrot.slane %v964_v49, 2  ;;  %vm783_vm11 = vcmp.gt.f32.partialorder %v718_v50, 0.0  ;;  %v815_v63 = vmul.f32 0.2, %v718_v50  ;;  %v994_v22 = vmax.f32 %v1615_v20, %v993_v61 }
 0x1a6   :  { %v1154_v59 = vsel %vm1132_vm7, %v1087_v53, %v1153_v54  ;;  %v1021_v53 = vrot.slane %v1020_v40, 2  ;;  %v1008_v30 = vmax.f32 %v1006_v9, %v1007_v47  ;;  %v988_v3 = vrot.slane %v987_v4, 1 }
 0x1a7   :  { %1162 = vst.msk [vmem:[%s1738_s7 + $0x18] sm:$0xff] %vm558_vm2, %v1154_v59  ;;  %v847_v10 = vsel %vm783_vm11, %v718_v50, %v815_v63  ;;  %v966_v13 = vmax.f32 %v964_v49, %v965_v48  ;;  %v1014_v49 = vrot.slane %v1013_v36, 2  ;;  %v1001_v48 = vmax.f32 %v999_v62, %v1000_v0 }
 0x1a8   :  { %v969_v56 = vsel %vm558_vm2, %v847_v10, -inf  ;;  %v1028_v63 = vrot.slane %v1027_v43, 2  ;;  %v995_v6 = vrot.slane %v994_v22, 1  ;;  %v1022_v7 = vmax.f32 %v1020_v40, %v1021_v53 }
 0x1a9   :  { %v970_v15 = vrot.slane %v969_v56, 4  ;;  %v967_v32 = vrot.slane %v966_v13, 1  ;;  %v1015_v1 = vmax.f32 %v1013_v36, %v1014_v49  ;;  %v1002_v20 = vrot.slane %v1001_v48, 1 }
 0x1aa   :  { %v720_v42 = vpop.f32.mrf.mxu2  ;;  %v1029_v61 = vmax.f32 %v1027_v43, %v1028_v63  ;;  %v1009_v10 = vrot.slane %v1008_v30, 1  ;;  %v989_v57 = vmax.f32 %v987_v4, %v988_v3  ;;  %v1023_v62 = vrot.slane %v1022_v7, 1 }
 0x1ab   :  { %v971_v26 = vmax.f32 %v969_v56, %v970_v15  ;;  %v721_v27 = vadd.f32 %v1558_v5, %v720_v42  ;;  %v1135_v5 = vsel %vm1122_vm15, %v940_v31, %v1134_v38  ;;  %v968_v25 = vmax.f32 %v966_v13, %v967_v32 }
 0x1ac   :  { %v1136_v44 = vsel %vm1124_vm0, %v947_v23, %v1135_v5  ;;  %v1016_v12 = vrot.slane %v1015_v1, 1  ;;  %v996_v56 = vmax.f32 %v994_v22, %v995_v6  ;;  %v1003_v55 = vmax.f32 %v1001_v48, %v1002_v20 }
 0x1ad   :  { %v972_v34 = vrot.slane %v971_v26, 2  ;;  %vm784_vm12 = vcmp.gt.f32.partialorder %v721_v27, 0.0  ;;  %v816_v33 = vmul.f32 0.2, %v721_v27  ;;  %v1137_v14 = vsel %vm1126_vm1, %v954_v37, %v1136_v44 }
 0x1ae   :  { %v1138_v50 = vsel %vm1128_vm4, %v961_v11, %v1137_v14  ;;  %v1030_v60 = vrot.slane %v1029_v61, 1  ;;  %v1010_v16 = vmax.f32 %v1008_v30, %v1009_v10  ;;  %v1017_v18 = vmax.f32 %v1015_v1, %v1016_v12 }
 0x1af   :  { %v973_v35 = vmax.f32 %v971_v26, %v972_v34  ;;  %v848_v39 = vsel %vm784_vm12, %v721_v27, %v816_v33  ;;  %v1139_v54 = vsel %vm1130_vm6, %v968_v25, %v1138_v50  ;;  %v1024_v42 = vmax.f32 %v1022_v7, %v1023_v62 }
 0x1b0   :  { %v976_v41 = vsel %vm558_vm2, %v848_v39, -inf  ;;  %v1031_v58 = vmax.f32 %v1029_v61, %v1030_v60 }
 0x1b1   :  { %v974_v45 = vrot.slane %v973_v35, 1  ;;  %v977_v46 = vrot.slane %v976_v41, 4 }
 0x1b3   :  { %v975_v21 = vmax.f32 %v973_v35, %v974_v45  ;;  %v978_v51 = vmax.f32 %v976_v41, %v977_v46 }
 0x1b5   :  { %v1140_v2 = vsel %vm1132_vm7, %v975_v21, %v1139_v54  ;;  %v979_v19 = vrot.slane %v978_v51, 2 }
 0x1b6   :  { %1160 = vst.msk [vmem:[%s1738_s7 + $0x8] sm:$0xff] %vm558_vm2, %v1140_v2 }
 0x1b7   :  { %v980_v59 = vmax.f32 %v978_v51, %v979_v19 }
 0x1b9   :  { %v981_v8 = vrot.slane %v980_v59, 1 }
 0x1bb   :  { %v982_v13 = vmax.f32 %v980_v59, %v981_v8 }
 0x1bd   :  { %v1141_v15 = vsel %vm1120_vm14, %v989_v57, %v982_v13 }
 0x1be   :  { %v1142_v17 = vsel %vm1122_vm15, %v996_v56, %v1141_v15 }
 0x1bf   :  { %v1143_v52 = vsel %vm1124_vm0, %v1003_v55, %v1142_v17 }
 0x1c0   :  { %v1144_v24 = vsel %vm1126_vm1, %v1010_v16, %v1143_v52 }
 0x1c1   :  { %v1145_v26 = vsel %vm1128_vm4, %v1017_v18, %v1144_v24 }
 0x1c2   :  { %v1146_v27 = vsel %vm1130_vm6, %v1024_v42, %v1145_v26 }
 0x1c3   :  { %v1147_v28 = vsel %vm1132_vm7, %v1031_v58, %v1146_v27 }
 0x1c4   :  { %1161 = vst.msk [vmem:[%s1738_s7 + $0x10] sm:$0xff] %vm558_vm2, %v1147_v28 }

// kernel: dgcnn_forward.7
= control target key start
LH: loop header
LB: loop body
LE: loop exit
PB: predicated region body
PF: predicated region fallthrough
CT: control target
= control target key end

     0   :  { %s486_s9 = smov 0   ;;  %s488_s10 = smov 0   ;;  %s537_s0 = inlined_call_operand.vmem [shape: f32[2,16,4], index: 0, kind: input, shape index: {}, may-alias: {0,1}]   ;;  %s538_s1 = inlined_call_operand.vmem [shape: f32[2,16,4], index: 1, kind: input, shape index: {}, may-alias: {0,1}]   ;;  %s539_s2 = inlined_call_operand.vmem [shape: f32[2,16,16], index: 2, kind: output, shape index: {}]  }
   0x1   :  { %s490_s11 = smov 0  }
   0x2 LB: > { %s24_s12 = sadd.s32 1, %s465_s10  ;;  %p404_p0 = scmp.ge.s32.totalorder %s469_s11, 1  ;;  %s469_s11 = sphi %s490_s11, %s12_s11   ;;  %s465_s10 = sphi %s488_s10, %s541_s10   ;;  %s461_s9 = sphi %s486_s9, %s540_s9  }
   0x3   : > { %p26_p1 = scmp.ge.s32.totalorder %s24_s12, 2  ;;  %p143_p2 = scmp.lt.s32.totalorder %s469_s11, 3 }
   0x5   : > { %s543_s12 = smov (%p26_p1, %s24_s12), 0  ;;  %p144_p3 = pnand %p404_p0, %p143_p2 }
   0x6   : > { %p179_p4 = scmp.lt.s32.totalorder (!%p144_p3), %s461_s9, 1 }
   0x7   : > { %147 = sbr.rel (%p144_p3) target bundleno = 295 (0x127), region = 28 }
   0xc   : > { %s545_s9 = smov (!%p179_p4, %s461_s9), 1  ;;  %vm207_vm0 = vcmask 31744   ;;  %vm298_vm1 = vcmask 130048  }
   0xd   : > { %s504_s13 = sshll.u32 %s545_s9, 4 }
   0xe   : > { %s192_s16 = scalar_lea.vmem %s538_s1, %s504_s13  ;;  %s186_s19 = scalar_lea.vmem %s537_s0, %s504_s13 }
   0xf   : > { %v205_v0 = vld [vmem:[%s192_s16] sm:$0xff]  ;;  %v206_v1 = vld [vmem:[%s192_s16 + $0x8] sm:$0xff]  ;;  %s201_s22 = scalar_lea.vmem %s539_s2, %s504_s13 }
  0x10   : > { %v251_v2 = vmul.f32 %v205_v0, %v205_v0  ;;  %411 = vmatpush.xpose.msk.msra.mxu0 %vm207_vm0, %v206_v1  ;;  %420 = vmatpush.xpose.msk.msra.mxu1 %vm207_vm0, %v206_v1  ;;  %v252_v4 = vmul.f32 %v206_v1, %v206_v1  ;;  %v203_v6 = vld [vmem:[%s186_s19] sm:$0xff]  ;;  %v204_v7 = vld [vmem:[%s186_s19 + $0x8] sm:$0xff] }
  0x11   : > { %v243_v8 = vmul.f32 %v203_v6, %v203_v6  ;;  %v244_v10 = vmul.f32 %v204_v7, %v204_v7 }
  0x12   : > { %v253_v3 = vsel %vm207_vm0, %v251_v2, 0.0  ;;  %v256_v5 = vsel %vm207_vm0, %v252_v4, 0.0 }
  0x13   : > { %254 = vadd.xlane.f32.xlu0 %v253_v3  ;;  %v245_v9 = vsel %vm207_vm0, %v243_v8, 0.0  ;;  %v248_v11 = vsel %vm207_vm0, %v244_v10, 0.0 }
  0x14   : > { %412 = vmatpush.xpose.msk.msra.mxu0 %vm207_vm0, %v205_v0  ;;  %421 = vmatpush.xpose.msk.msra.mxu1 %vm207_vm0, %v205_v0 }
  0x15   : > { %246 = vadd.xlane.f32.xlu1 %v245_v9 }
  0x17   : > { %413 = vmatmul.msk.f32.vlgmr.msra.gmra.mxu0 %vm207_vm0, %v203_v6  ;;  %414 = vmatmul.msk.f32.vlgmr.msra.gmra.mxu1 %vm207_vm0, %v204_v7 }
  0x1b   : > { %257 = vadd.xlane.f32.xlu0 %v256_v5 }
  0x1d   : > { %249 = vadd.xlane.f32.xlu1 %v248_v11 }
  0x86   : > { %v255_v12 = vpop.xlane.xlu0 %254 }
  0x87   : > { %263 = vxpose.xlu2.b32.start [1/2] (short) (narrow) %v255_v12, 8 }
  0x88   : > { %v247_v14 = vpop.xlane.xlu1 %246 }
  0x8e   : > { %v258_v13 = vpop.xlane.xlu0 %257 }
  0x8f   : > { %264 = vxpose.xlu2.b32.end [2/2] (short) (narrow) %v258_v13, 8 }
  0x90   : > { %v250_v18 = vpop.xlane.xlu1 %249 }
  0x94   : > { %v240_v15 = vpop.f32.mrf.mxu1  ;;  %v237_v16 = vpop.f32.mrf.mxu0 }
  0x95   : > { %v260_v17 = vmul.f32 2.0, %v240_v15  ;;  %v259_v19 = vmul.f32 2.0, %v237_v16 }
  0x97   : > { %v262_v20 = vsub.f32 %v260_v17, %v250_v18  ;;  %v261_v22 = vsub.f32 %v259_v19, %v247_v14 }
 0x120   : > { %v279_v21 = vpop.trf.xlu2 }
 0x121   : > { %v295_v23 = vperm.slane %v279_v21, 0 }
 0x123   : > { %v296_v24 = vsub.f32 %v261_v22, %v295_v23  ;;  %v297_v25 = vsub.f32 %v262_v20, %v295_v23 }
 0x125   : > { %299 = vst.msk [vmem:[%s201_s22] sm:$0xff] %vm298_vm1, %v296_v24 }
 0x126   : > { %300 = vst.msk [vmem:[%s201_s22 + $0x8] sm:$0xff] %vm298_vm1, %v297_v25 }
 0x127 PF: > { %s12_s11 = sadd.s32 1, %s469_s11   ;;  %s540_s9 = smov %s465_s10 }
 0x128   : > { %p9_p5 = scmp.ge.s32.totalorder %s12_s11, 4   ;;  %s541_s10 = smov %s543_s12 }
 0x12a   :  { %11 = sbr.rel (!%p9_p5) target bundleno = 2 (0x2), region = 61 }

// kernel: dgcnn_forward.9
= control target key start
LH: loop header
LB: loop body
LE: loop exit
PB: predicated region body
PF: predicated region fallthrough
CT: control target
= control target key end

     0   :  { %s486_s9 = smov 0   ;;  %s488_s10 = smov 0   ;;  %s537_s0 = inlined_call_operand.vmem [shape: f32[2,16,32], index: 0, kind: input, shape index: {}, may-alias: {0,1}]   ;;  %s538_s1 = inlined_call_operand.vmem [shape: f32[2,16,32], index: 1, kind: input, shape index: {}, may-alias: {0,1}]   ;;  %s539_s2 = inlined_call_operand.vmem [shape: f32[2,16,16], index: 2, kind: output, shape index: {}]  }
   0x1   :  { %s490_s11 = smov 0  }
   0x2 LB: > { %s24_s12 = sadd.s32 1, %s465_s10  ;;  %p404_p0 = scmp.ge.s32.totalorder %s469_s11, 1  ;;  %s469_s11 = sphi %s490_s11, %s12_s11   ;;  %s465_s10 = sphi %s488_s10, %s541_s10   ;;  %s461_s9 = sphi %s486_s9, %s540_s9  }
   0x3   : > { %p26_p1 = scmp.ge.s32.totalorder %s24_s12, 2  ;;  %p143_p2 = scmp.lt.s32.totalorder %s469_s11, 3 }
   0x5   : > { %s543_s12 = smov (%p26_p1, %s24_s12), 0  ;;  %p144_p3 = pnand %p404_p0, %p143_p2 }
   0x6   : > { %p179_p4 = scmp.lt.s32.totalorder (!%p144_p3), %s461_s9, 1 }
   0x7   : > { %147 = sbr.rel (%p144_p3) target bundleno = 295 (0x127), region = 28 }
   0xc   : > { %s545_s9 = smov (!%p179_p4, %s461_s9), 1  ;;  %vm207_vm0 = vcmask 261120   ;;  %vm298_vm1 = vcmask 130048  }
   0xd   : > { %s504_s13 = sshll.u32 %s545_s9, 4 }
   0xe   : > { %s192_s16 = scalar_lea.vmem %s538_s1, %s504_s13  ;;  %s186_s19 = scalar_lea.vmem %s537_s0, %s504_s13 }
   0xf   : > { %v205_v0 = vld [vmem:[%s192_s16] sm:$0xff]  ;;  %v206_v1 = vld [vmem:[%s192_s16 + $0x8] sm:$0xff]  ;;  %s201_s22 = scalar_lea.vmem %s539_s2, %s504_s13 }
  0x10   : > { %v251_v2 = vmul.f32 %v205_v0, %v205_v0  ;;  %411 = vmatpush.xpose.msk.msra.mxu0 %vm207_vm0, %v206_v1  ;;  %420 = vmatpush.xpose.msk.msra.mxu1 %vm207_vm0, %v206_v1  ;;  %v252_v4 = vmul.f32 %v206_v1, %v206_v1  ;;  %v203_v6 = vld [vmem:[%s186_s19] sm:$0xff]  ;;  %v204_v7 = vld [vmem:[%s186_s19 + $0x8] sm:$0xff] }
  0x11   : > { %v243_v8 = vmul.f32 %v203_v6, %v203_v6  ;;  %v244_v10 = vmul.f32 %v204_v7, %v204_v7 }
  0x12   : > { %v253_v3 = vsel %vm207_vm0, %v251_v2, 0.0  ;;  %v256_v5 = vsel %vm207_vm0, %v252_v4, 0.0 }
  0x13   : > { %254 = vadd.xlane.f32.xlu0 %v253_v3  ;;  %v245_v9 = vsel %vm207_vm0, %v243_v8, 0.0  ;;  %v248_v11 = vsel %vm207_vm0, %v244_v10, 0.0 }
  0x14   : > { %412 = vmatpush.xpose.msk.msra.mxu0 %vm207_vm0, %v205_v0  ;;  %421 = vmatpush.xpose.msk.msra.mxu1 %vm207_vm0, %v205_v0 }
  0x15   : > { %246 = vadd.xlane.f32.xlu1 %v245_v9 }
  0x17   : > { %413 = vmatmul.msk.f32.vlgmr.msra.gmra.mxu0 %vm207_vm0, %v203_v6  ;;  %414 = vmatmul.msk.f32.vlgmr.msra.gmra.mxu1 %vm207_vm0, %v204_v7 }
  0x1b   : > { %257 = vadd.xlane.f32.xlu0 %v256_v5 }
  0x1d   : > { %249 = vadd.xlane.f32.xlu1 %v248_v11 }
  0x86   : > { %v255_v12 = vpop.xlane.xlu0 %254 }
  0x87   : > { %263 = vxpose.xlu2.b32.start [1/2] (short) (narrow) %v255_v12, 8 }
  0x88   : > { %v247_v14 = vpop.xlane.xlu1 %246 }
  0x8e   : > { %v258_v13 = vpop.xlane.xlu0 %257 }
  0x8f   : > { %264 = vxpose.xlu2.b32.end [2/2] (short) (narrow) %v258_v13, 8 }
  0x90   : > { %v250_v18 = vpop.xlane.xlu1 %249 }
  0x94   : > { %v240_v15 = vpop.f32.mrf.mxu1  ;;  %v237_v16 = vpop.f32.mrf.mxu0 }
  0x95   : > { %v260_v17 = vmul.f32 2.0, %v240_v15  ;;  %v259_v19 = vmul.f32 2.0, %v237_v16 }
  0x97   : > { %v262_v20 = vsub.f32 %v260_v17, %v250_v18  ;;  %v261_v22 = vsub.f32 %v259_v19, %v247_v14 }
 0x120   : > { %v279_v21 = vpop.trf.xlu2 }
 0x121   : > { %v295_v23 = vperm.slane %v279_v21, 0 }
 0x123   : > { %v296_v24 = vsub.f32 %v261_v22, %v295_v23  ;;  %v297_v25 = vsub.f32 %v262_v20, %v295_v23 }
 0x125   : > { %299 = vst.msk [vmem:[%s201_s22] sm:$0xff] %vm298_vm1, %v296_v24 }
 0x126   : > { %300 = vst.msk [vmem:[%s201_s22 + $0x8] sm:$0xff] %vm298_vm1, %v297_v25 }
 0x127 PF: > { %s12_s11 = sadd.s32 1, %s469_s11   ;;  %s540_s9 = smov %s465_s10 }
 0x128   : > { %p9_p5 = scmp.ge.s32.totalorder %s12_s11, 4   ;;  %s541_s10 = smov %s543_s12 }
 0x12a   :  { %11 = sbr.rel (!%p9_p5) target bundleno = 2 (0x2), region = 61 }

// kernel: dgcnn_forward.10
= control target key start
LH: loop header
LB: loop body
LE: loop exit
PB: predicated region body
PF: predicated region fallthrough
CT: control target
= control target key end

     0   :  { %vm74_vm0 = vcmask 261120   ;;  %s1647_s3 = inlined_call_operand.vmem [shape: f32[32,32], index: 3, kind: input, shape index: {}]   ;;  %s1648_s2 = inlined_call_operand.vmem [shape: f32[32,32], index: 2, kind: input, shape index: {}]   ;;  %s1649_s1 = inlined_call_operand.vmem [shape: f32[32,32], index: 1, kind: input, shape index: {}]   ;;  %s1650_s0 = inlined_call_operand.vmem [shape: f32[32,8,32], index: 0, kind: input, shape index: {}]   ;;  %s1651_s4 = inlined_call_operand.vmem [shape: f32[1,32], index: 4, kind: input, shape index: {}]   ;;  %s1652_s5 = inlined_call_operand.vmem [shape: f32[32,32], index: 5, kind: input, shape index: {}]   ;;  %s1653_s6 = inlined_call_operand.vmem [shape: f32[1,32], index: 6, kind: input, shape index: {}]   ;;  %s1654_s7 = inlined_call_operand.vmem [shape: f32[32,32], index: 7, kind: output, shape index: {}]  }
   0x1   :  { %v69_v0 = vld [vmem:[%s1647_s3 + $0x18] sm:$0xff]  ;;  %v68_v2 = vld [vmem:[%s1647_s3 + $0x10] sm:$0xff]  ;;  %v67_v4 = vld [vmem:[%s1647_s3 + $0x8] sm:$0xff] }
   0x2   :  { %v65_v1 = vld [vmem:[%s1648_s2 + $0x18] sm:$0xff]  ;;  %99 = vmatpush.msra.mxu0 %v69_v0  ;;  %1233 = vmatpush.msra.mxu3 %v69_v0  ;;  %v64_v3 = vld [vmem:[%s1648_s2 + $0x10] sm:$0xff]  ;;  %v63_v5 = vld [vmem:[%s1648_s2 + $0x8] sm:$0xff] }
   0x3   :  { %224 = vmatpush.msra.mxu1 %v65_v1  ;;  %v66_v6 = vld [vmem:[%s1647_s3] sm:$0xff]  ;;  %v60_v9 = vld [vmem:[%s1649_s1 + $0x10] sm:$0xff]  ;;  %v61_v11 = vld [vmem:[%s1649_s1 + $0x18] sm:$0xff] }
   0x4   :  { %100 = vmatpush.msra.mxu0 %v68_v2  ;;  %1234 = vmatpush.msra.mxu3 %v68_v2  ;;  %v62_v7 = vld [vmem:[%s1648_s2] sm:$0xff]  ;;  %v27_v12 = vld [vmem:[%s1650_s0 + $0x8] sm:$0xff]  ;;  %v28_v13 = vld [vmem:[%s1650_s0 + $0x10] sm:$0xff] }
   0x5   :  { %225 = vmatpush.msra.mxu1 %v64_v3  ;;  %v58_v8 = vld [vmem:[%s1649_s1] sm:$0xff]  ;;  %v43_v14 = vld [vmem:[%s1650_s0 + $0x88] sm:$0xff]  ;;  %v29_v15 = vld [vmem:[%s1650_s0 + $0x18] sm:$0xff] }
   0x6   :  { %101 = vmatpush.msra.mxu0 %v67_v4  ;;  %1235 = vmatpush.msra.mxu3 %v67_v4  ;;  %v26_v10 = vld [vmem:[%s1650_s0] sm:$0xff]  ;;  %v44_v16 = vld [vmem:[%s1650_s0 + $0x90] sm:$0xff]  ;;  %v59_v17 = vld [vmem:[%s1649_s1 + $0x8] sm:$0xff] }
   0x7   :  { %226 = vmatpush.msra.mxu1 %v63_v5  ;;  %v30_v18 = vld [vmem:[%s1650_s0 + $0x20] sm:$0xff]  ;;  %v45_v19 = vld [vmem:[%s1650_s0 + $0x98] sm:$0xff]  ;;  %v31_v20 = vld [vmem:[%s1650_s0 + $0x28] sm:$0xff] }
   0x8   :  { %102 = vmatpush.msra.mxu0 %v66_v6  ;;  %1236 = vmatpush.msra.mxu3 %v66_v6  ;;  %v46_v21 = vld [vmem:[%s1650_s0 + $0xa0] sm:$0xff]  ;;  %v32_v22 = vld [vmem:[%s1650_s0 + $0x30] sm:$0xff]  ;;  %v47_v23 = vld [vmem:[%s1650_s0 + $0xa8] sm:$0xff] }
   0x9   :  { %227 = vmatpush.msra.mxu1 %v62_v7  ;;  %1165 = vmatmul.msk.f32.vlgmr.msra.gmra.mxu0 %vm74_vm0, %v58_v8  ;;  %v33_v24 = vld [vmem:[%s1650_s0 + $0x38] sm:$0xff]  ;;  %v48_v25 = vld [vmem:[%s1650_s0 + $0xb0] sm:$0xff]  ;;  %v34_v26 = vld [vmem:[%s1650_s0 + $0x40] sm:$0xff] }
   0xa   :  { %1167 = vmatmul.msk.f32.vlgmr.msra.gmra.mxu3 %vm74_vm0, %v60_v9  ;;  %1169 = vmatmul.msk.f32.vlgmr.msra.gmra.mxu1 %vm74_vm0, %v26_v10  ;;  %v49_v27 = vld [vmem:[%s1650_s0 + $0xb8] sm:$0xff]  ;;  %v35_v28 = vld [vmem:[%s1650_s0 + $0x48] sm:$0xff]  ;;  %v50_v29 = vld [vmem:[%s1650_s0 + $0xc0] sm:$0xff] }
   0xb   :  { %1237 = vmatpush.msrb.mxu3 %v65_v1  ;;  %v36_v30 = vld [vmem:[%s1650_s0 + $0x50] sm:$0xff]  ;;  %v51_v31 = vld [vmem:[%s1650_s0 + $0xc8] sm:$0xff]  ;;  %v37_v32 = vld [vmem:[%s1650_s0 + $0x58] sm:$0xff] }
   0xc   :  { %v52_v33 = vld [vmem:[%s1650_s0 + $0xd0] sm:$0xff]  ;;  %v38_v34 = vld [vmem:[%s1650_s0 + $0x60] sm:$0xff]  ;;  %v53_v35 = vld [vmem:[%s1650_s0 + $0xd8] sm:$0xff] }
   0xd   :  { %1238 = vmatpush.msrb.mxu3 %v64_v3  ;;  %v552_v36 = vld [vmem:[%s1652_s5 + $0x18] sm:$0xff]  ;;  %v551_v37 = vld [vmem:[%s1652_s5 + $0x10] sm:$0xff]  ;;  %v550_v38 = vld [vmem:[%s1652_s5 + $0x8] sm:$0xff] }
   0xe   :  { %665 = vmatpush.msrb.mxu0 %v552_v36  ;;  %1241 = vmatpush.msra.mxu2 %v552_v36  ;;  %v39_v39 = vld [vmem:[%s1650_s0 + $0x68] sm:$0xff]  ;;  %v54_v40 = vld [vmem:[%s1650_s0 + $0xe0] sm:$0xff]  ;;  %v40_v42 = vld [vmem:[%s1650_s0 + $0x70] sm:$0xff] }
   0xf   :  { %1239 = vmatpush.msrb.mxu3 %v63_v5  ;;  %v549_v41 = vld [vmem:[%s1652_s5] sm:$0xff]  ;;  %v55_v43 = vld [vmem:[%s1650_s0 + $0xe8] sm:$0xff]  ;;  %v41_v44 = vld [vmem:[%s1650_s0 + $0x78] sm:$0xff] }
  0x10   :  { %666 = vmatpush.msrb.mxu0 %v551_v37  ;;  %1242 = vmatpush.msra.mxu2 %v551_v37  ;;  %v56_v45 = vld [vmem:[%s1650_s0 + $0xf0] sm:$0xff]  ;;  %v1462_v46 = vld [vmem:[%s1651_s4] ss:$0 sm:$0xff]  ;;  %v57_v51 = vld [vmem:[%s1650_s0 + $0xf8] sm:$0xff] }
  0x11   :  { %1240 = vmatpush.msrb.mxu3 %v62_v7  ;;  %1166 = vmatmul.msk.f32.gmra.mxu0 %vm74_vm0, %v59_v17  ;;  %v42_v50 = vld [vmem:[%s1650_s0 + $0x80] sm:$0xff] }
  0x12   :  { %1168 = vmatmul.msk.f32.gmra.mxu3 %vm74_vm0, %v61_v11  ;;  %1170 = vmatmul.msk.f32.gmra.mxu1 %vm74_vm0, %v27_v12 }
  0x13   :  { %667 = vmatpush.msrb.mxu0 %v550_v38  ;;  %1243 = vmatpush.msra.mxu2 %v550_v38 }
  0x15   :  { %668 = vmatpush.msrb.mxu0 %v549_v41  ;;  %1244 = vmatpush.msra.mxu2 %v549_v41 }
  0x1a   :  { %1171 = vmatmul.msk.f32.gmra.mxu1 %vm74_vm0, %v28_v13  ;;  %1186 = vmatmul.msk.f32.vlgmr.msrb.gmra.mxu3 %vm74_vm0, %v43_v14 }
  0x22   :  { %1172 = vmatmul.msk.f32.gmra.mxu1 %vm74_vm0, %v29_v15  ;;  %1187 = vmatmul.msk.f32.gmra.mxu3 %vm74_vm0, %v44_v16 }
  0x2a   :  { %1173 = vmatmul.msk.f32.gmra.mxu1 %vm74_vm0, %v30_v18  ;;  %1188 = vmatmul.msk.f32.gmra.mxu3 %vm74_vm0, %v45_v19 }
  0x32   :  { %1174 = vmatmul.msk.f32.gmra.mxu1 %vm74_vm0, %v31_v20  ;;  %1189 = vmatmul.msk.f32.gmra.mxu3 %vm74_vm0, %v46_v21 }
  0x3a   :  { %1175 = vmatmul.msk.f32.gmra.mxu1 %vm74_vm0, %v32_v22  ;;  %1190 = vmatmul.msk.f32.gmra.mxu3 %vm74_vm0, %v47_v23 }
  0x42   :  { %1176 = vmatmul.msk.f32.gmra.mxu1 %vm74_vm0, %v33_v24  ;;  %1191 = vmatmul.msk.f32.gmra.mxu3 %vm74_vm0, %v48_v25 }
  0x4a   :  { %1177 = vmatmul.msk.f32.gmra.mxu1 %vm74_vm0, %v34_v26  ;;  %1192 = vmatmul.msk.f32.gmra.mxu3 %vm74_vm0, %v49_v27 }
  0x52   :  { %1178 = vmatmul.msk.f32.gmra.mxu1 %vm74_vm0, %v35_v28  ;;  %1193 = vmatmul.msk.f32.gmra.mxu3 %vm74_vm0, %v50_v29 }
  0x5a   :  { %1179 = vmatmul.msk.f32.gmra.mxu1 %vm74_vm0, %v36_v30  ;;  %1194 = vmatmul.msk.f32.gmra.mxu3 %vm74_vm0, %v51_v31 }
  0x62   :  { %1180 = vmatmul.msk.f32.gmra.mxu1 %vm74_vm0, %v37_v32  ;;  %1195 = vmatmul.msk.f32.gmra.mxu3 %vm74_vm0, %v52_v33 }
  0x6a   :  { %1181 = vmatmul.msk.f32.gmra.mxu1 %vm74_vm0, %v38_v34  ;;  %1196 = vmatmul.msk.f32.gmra.mxu3 %vm74_vm0, %v53_v35 }
  0x72   :  { %1182 = vmatmul.msk.f32.gmra.mxu1 %vm74_vm0, %v39_v39  ;;  %1197 = vmatmul.msk.f32.gmra.mxu3 %vm74_vm0, %v54_v40 }
  0x7a   :  { %1183 = vmatmul.msk.f32.gmra.mxu1 %vm74_vm0, %v40_v42  ;;  %1198 = vmatmul.msk.f32.gmra.mxu3 %vm74_vm0, %v55_v43 }
  0x82   :  { %1184 = vmatmul.msk.f32.gmra.mxu1 %vm74_vm0, %v41_v44  ;;  %1199 = vmatmul.msk.f32.gmra.mxu3 %vm74_vm0, %v56_v45 }
  0x86   :  { %v104_v47 = vpop.f32.mrf.mxu0 }
  0x87   :  { %v105_v48 = vadd.f32 %v1462_v46, %v104_v47  ;;  %v229_v49 = vpop.f32.mrf.mxu1 }
  0x89   :  { %v357_v52 = vperm.slane %v105_v48, 0  ;;  %v329_v53 = vrot.slane %v105_v48, 1  ;;  %v330_v60 = vrot.slane %v105_v48, 2  ;;  %v331_v2 = vrot.slane %v105_v48, 3 }
  0x8a   :  { %1185 = vmatmul.msk.f32.gmra.mxu1 %vm74_vm0, %v42_v50  ;;  %1200 = vmatmul.msk.f32.gmra.mxu3 %vm74_vm0, %v57_v51  ;;  %v332_v8 = vrot.slane %v105_v48, 4  ;;  %v333_v14 = vrot.slane %v105_v48, 5  ;;  %v334_v20 = vrot.slane %v105_v48, 6  ;;  %v335_v26 = vrot.slane %v105_v48, 7 }
  0x8b   :  { %v421_v54 = vadd.f32 %v357_v52, %v229_v49  ;;  %v358_v55 = vperm.slane %v329_v53, 0  ;;  %v359_v62 = vperm.slane %v330_v60, 0  ;;  %v360_v4 = vperm.slane %v331_v2, 0 }
  0x8c   :  { %v361_v10 = vperm.slane %v332_v8, 0  ;;  %v362_v16 = vperm.slane %v333_v14, 0  ;;  %v363_v22 = vperm.slane %v334_v20, 0  ;;  %v364_v28 = vperm.slane %v335_v26, 0 }
  0x8d   :  { %vm453_vm1 = vcmp.gt.f32.partialorder %v421_v54, 0.0  ;;  %v485_v56 = vmul.f32 0.2, %v421_v54  ;;  %v110_v53 = vpop.f32.mrf.mxu3 }
  0x8e   :  { %v107_v29 = vpop.f32.mrf.mxu0 }
  0x8f   :  { %v232_v57 = vpop.f32.mrf.mxu1  ;;  %v517_v58 = vsel %vm453_vm1, %v421_v54, %v485_v56  ;;  %v108_v33 = vadd.f32 %v1462_v46, %v107_v29 }
  0x90   :  { %v422_v59 = vadd.f32 %v358_v55, %v232_v57  ;;  %1201 = vmatmul.msk.f32.vlgmr.msrb.gmra.mxu0 %vm74_vm0, %v517_v58 }
  0x91   :  { %v365_v35 = vperm.slane %v108_v33, 0  ;;  %v336_v39 = vrot.slane %v108_v33, 1  ;;  %v337_v45 = vrot.slane %v108_v33, 2  ;;  %v338_v52 = vrot.slane %v108_v33, 3 }
  0x92   :  { %v486_v61 = vmul.f32 0.2, %v422_v59  ;;  %vm454_vm2 = vcmp.gt.f32.partialorder %v422_v59, 0.0  ;;  %v340_v2 = vrot.slane %v108_v33, 5 }
  0x93   :  { %v366_v41 = vperm.slane %v336_v39, 0  ;;  %v367_v48 = vperm.slane %v337_v45, 0  ;;  %v368_v55 = vperm.slane %v338_v52, 0 }
  0x94   :  { %v518_v0 = vsel %vm454_vm2, %v422_v59, %v486_v61  ;;  %v339_v59 = vrot.slane %v108_v33, 4 }
  0x95   :  { %v1485_v60 = vpop.f32.mrf.mxu3 }
  0x97   :  { %v235_v63 = vpop.f32.mrf.mxu1 }
  0x98   :  { %v423_v1 = vadd.f32 %v359_v62, %v235_v63  ;;  %1202 = vmatmul.msk.f32.gmra.mxu0 %vm74_vm0, %v518_v0  ;;  %v369_v62 = vperm.slane %v339_v59, 0 }
  0x9a   :  { %v487_v3 = vmul.f32 0.2, %v423_v1  ;;  %vm455_vm3 = vcmp.gt.f32.partialorder %v423_v1, 0.0 }
  0x9c   :  { %v519_v6 = vsel %vm455_vm3, %v423_v1, %v487_v3 }
  0x9f   :  { %v238_v5 = vpop.f32.mrf.mxu1 }
  0xa0   :  { %v424_v7 = vadd.f32 %v360_v4, %v238_v5  ;;  %1203 = vmatmul.msk.f32.gmra.mxu0 %vm74_vm0, %v519_v6  ;;  %v370_v4 = vperm.slane %v340_v2, 0  ;;  %v280_v5 = vpop.f32.mrf.mxu3 }
  0xa2   :  { %v488_v9 = vmul.f32 0.2, %v424_v7  ;;  %vm456_vm4 = vcmp.gt.f32.partialorder %v424_v7, 0.0 }
  0xa4   :  { %v520_v12 = vsel %vm456_vm4, %v424_v7, %v488_v9  ;;  %v341_v9 = vrot.slane %v108_v33, 6 }
  0xa7   :  { %v241_v11 = vpop.f32.mrf.mxu1 }
  0xa8   :  { %v425_v13 = vadd.f32 %v361_v10, %v241_v11  ;;  %1204 = vmatmul.msk.f32.gmra.mxu0 %vm74_vm0, %v520_v12  ;;  %v371_v11 = vperm.slane %v341_v9, 0  ;;  %v283_v12 = vpop.f32.mrf.mxu3 }
  0xaa   :  { %v489_v15 = vmul.f32 0.2, %v425_v13  ;;  %vm457_vm5 = vcmp.gt.f32.partialorder %v425_v13, 0.0 }
  0xac   :  { %v521_v18 = vsel %vm457_vm5, %v425_v13, %v489_v15 }
  0xaf   :  { %v244_v17 = vpop.f32.mrf.mxu1 }
  0xb0   :  { %v426_v19 = vadd.f32 %v362_v16, %v244_v17  ;;  %1205 = vmatmul.msk.f32.gmra.mxu0 %vm74_vm0, %v521_v18  ;;  %v342_v16 = vrot.slane %v108_v33, 7 }
  0xb2   :  { %v490_v21 = vmul.f32 0.2, %v426_v19  ;;  %vm458_vm6 = vcmp.gt.f32.partialorder %v426_v19, 0.0  ;;  %v372_v18 = vperm.slane %v342_v16, 0 }
  0xb4   :  { %v522_v24 = vsel %vm458_vm6, %v426_v19, %v490_v21  ;;  %v1491_v21 = vadd.f32 %v1462_v46, %v110_v53 }
  0xb7   :  { %v247_v23 = vpop.f32.mrf.mxu1 }
  0xb8   :  { %v427_v25 = vadd.f32 %v363_v22, %v247_v23  ;;  %1206 = vmatmul.msk.f32.gmra.mxu0 %vm74_vm0, %v522_v24  ;;  %v286_v23 = vpop.f32.mrf.mxu3 }
  0xba   :  { %v491_v27 = vmul.f32 0.2, %v427_v25  ;;  %vm459_vm7 = vcmp.gt.f32.partialorder %v427_v25, 0.0 }
  0xbc   :  { %v523_v31 = vsel %vm459_vm7, %v427_v25, %v491_v27  ;;  %v343_v25 = vrot.slane %v1491_v21, 1  ;;  %v373_v27 = vperm.slane %v1491_v21, 0 }
  0xbe   :  { %v374_v29 = vperm.slane %v343_v25, 0 }
  0xbf   :  { %v250_v30 = vpop.f32.mrf.mxu1 }
  0xc0   :  { %v428_v32 = vadd.f32 %v364_v28, %v250_v30  ;;  %1207 = vmatmul.msk.f32.gmra.mxu0 %vm74_vm0, %v523_v31  ;;  %v438_v33 = vadd.f32 %v374_v29, %v280_v5 }
  0xc2   :  { %v492_v34 = vmul.f32 0.2, %v428_v32  ;;  %vm460_vm8 = vcmp.gt.f32.partialorder %v428_v32, 0.0  ;;  %vm470_vm3 = vcmp.gt.f32.partialorder %v438_v33, 0.0 }
  0xc4   :  { %v524_v37 = vsel %vm460_vm8, %v428_v32, %v492_v34  ;;  %v289_v32 = vpop.f32.mrf.mxu3  ;;  %v344_v34 = vrot.slane %v1491_v21, 2 }
  0xc7   :  { %v253_v36 = vpop.f32.mrf.mxu1 }
  0xc8   :  { %v429_v38 = vadd.f32 %v365_v35, %v253_v36  ;;  %1208 = vmatmul.msk.f32.gmra.mxu0 %vm74_vm0, %v524_v37  ;;  %v502_v37 = vmul.f32 0.2, %v438_v33 }
  0xca   :  { %v493_v40 = vmul.f32 0.2, %v429_v38  ;;  %vm461_vm9 = vcmp.gt.f32.partialorder %v429_v38, 0.0 }
  0xcc   :  { %v525_v43 = vsel %vm461_vm9, %v429_v38, %v493_v40  ;;  %v375_v38 = vperm.slane %v344_v34, 0  ;;  %v345_v40 = vrot.slane %v1491_v21, 3 }
  0xce   :  { %v439_v39 = vadd.f32 %v375_v38, %v283_v12  ;;  %v376_v45 = vperm.slane %v345_v40, 0 }
  0xcf   :  { %v256_v42 = vpop.f32.mrf.mxu1 }
  0xd0   :  { %v430_v44 = vadd.f32 %v366_v41, %v256_v42  ;;  %1209 = vmatmul.msk.f32.gmra.mxu0 %vm74_vm0, %v525_v43  ;;  %v534_v41 = vsel %vm470_vm3, %v438_v33, %v502_v37  ;;  %v292_v42 = vpop.f32.mrf.mxu3  ;;  %vm471_vm4 = vcmp.gt.f32.partialorder %v439_v39, 0.0 }
  0xd2   :  { %v494_v47 = vmul.f32 0.2, %v430_v44  ;;  %vm462_vm10 = vcmp.gt.f32.partialorder %v430_v44, 0.0 }
  0xd4   :  { %v526_v50 = vsel %vm462_vm10, %v430_v44, %v494_v47  ;;  %v503_v44 = vmul.f32 0.2, %v439_v39  ;;  %v440_v47 = vadd.f32 %v376_v45, %v286_v23 }
  0xd6   :  { %v504_v52 = vmul.f32 0.2, %v440_v47  ;;  %vm472_vm5 = vcmp.gt.f32.partialorder %v440_v47, 0.0 }
  0xd7   :  { %v259_v49 = vpop.f32.mrf.mxu1 }
  0xd8   :  { %v431_v51 = vadd.f32 %v367_v48, %v259_v49  ;;  %1210 = vmatmul.msk.f32.gmra.mxu0 %vm74_vm0, %v526_v50  ;;  %v346_v48 = vrot.slane %v1491_v21, 4  ;;  %v535_v49 = vsel %vm471_vm4, %v439_v39, %v503_v44  ;;  %vm1118_vm4 = vcmask 1041409  }
  0xda   :  { %v495_v54 = vmul.f32 0.2, %v431_v51  ;;  %vm463_vm11 = vcmp.gt.f32.partialorder %v431_v51, 0.0  ;;  %v377_v53 = vperm.slane %v346_v48, 0 }
  0xdc   :  { %v527_v57 = vsel %vm463_vm11, %v431_v51, %v495_v54  ;;  %v295_v51 = vpop.f32.mrf.mxu3  ;;  %v441_v54 = vadd.f32 %v377_v53, %v289_v32 }
  0xde   :  { %vm473_vm6 = vcmp.gt.f32.partialorder %v441_v54, 0.0 }
  0xdf   :  { %v262_v56 = vpop.f32.mrf.mxu1 }
  0xe0   :  { %v432_v58 = vadd.f32 %v368_v55, %v262_v56  ;;  %1211 = vmatmul.msk.f32.gmra.mxu0 %vm74_vm0, %v527_v57  ;;  %v347_v55 = vrot.slane %v1491_v21, 5  ;;  %v536_v56 = vsel %vm472_vm5, %v440_v47, %v504_v52  ;;  %vm1120_vm5 = vcmask 1042434  }
  0xe2   :  { %v496_v61 = vmul.f32 0.2, %v432_v58  ;;  %vm464_vm12 = vcmp.gt.f32.partialorder %v432_v58, 0.0  ;;  %v378_v59 = vperm.slane %v347_v55, 0 }
  0xe4   :  { %v528_v0 = vsel %vm464_vm12, %v432_v58, %v496_v61  ;;  %v505_v58 = vmul.f32 0.2, %v441_v54  ;;  %v298_v61 = vpop.f32.mrf.mxu3 }
  0xe6   :  { %v537_v2 = vsel %vm473_vm6, %v441_v54, %v505_v58  ;;  %vm1122_vm6 = vcmask 1043459  }
  0xe7   :  { %v265_v63 = vpop.f32.mrf.mxu1 }
  0xe8   :  { %v433_v1 = vadd.f32 %v369_v62, %v265_v63  ;;  %1212 = vmatmul.msk.f32.gmra.mxu0 %vm74_vm0, %v528_v0  ;;  %v1508_v62 = vld [vmem:[%s1653_s6] ss:$0 sm:$0xff]  ;;  %v348_v63 = vrot.slane %v1491_v21, 6  ;;  %v442_v0 = vadd.f32 %v378_v59, %v292_v42 }
  0xea   :  { %v497_v3 = vmul.f32 0.2, %v433_v1  ;;  %vm465_vm13 = vcmp.gt.f32.partialorder %v433_v1, 0.0  ;;  %v506_v9 = vmul.f32 0.2, %v442_v0  ;;  %vm474_vm8 = vcmp.gt.f32.partialorder %v442_v0, 0.0 }
  0xec   :  { %v529_v7 = vsel %vm465_vm13, %v433_v1, %v497_v3  ;;  %v301_v16 = vpop.f32.mrf.mxu3 }
  0xef   :  { %v268_v6 = vpop.f32.mrf.mxu1 }
  0xf0   :  { %v434_v8 = vadd.f32 %v370_v4, %v268_v6  ;;  %1213 = vmatmul.msk.f32.gmra.mxu0 %vm74_vm0, %v529_v7  ;;  %v379_v7 = vperm.slane %v348_v63, 0 }
  0xf2   :  { %v498_v10 = vmul.f32 0.2, %v434_v8  ;;  %vm466_vm14 = vcmp.gt.f32.partialorder %v434_v8, 0.0 }
  0xf4   :  { %v530_v14 = vsel %vm466_vm14, %v434_v8, %v498_v10 }
  0xf7   :  { %v271_v13 = vpop.f32.mrf.mxu1 }
  0xf8   :  { %v435_v15 = vadd.f32 %v371_v11, %v271_v13  ;;  %1214 = vmatmul.msk.f32.gmra.mxu0 %vm74_vm0, %v530_v14  ;;  %v443_v14 = vadd.f32 %v379_v7, %v295_v51 }
  0xfa   :  { %v499_v17 = vmul.f32 0.2, %v435_v15  ;;  %vm467_vm15 = vcmp.gt.f32.partialorder %v435_v15, 0.0  ;;  %vm475_vm14 = vcmp.gt.f32.partialorder %v443_v14, 0.0 }
  0xfc   :  { %v531_v20 = vsel %vm467_vm15, %v435_v15, %v499_v17  ;;  %v349_v15 = vrot.slane %v1491_v21, 7 }
  0xff   :  { %v274_v19 = vpop.f32.mrf.mxu1 }
 0x100   :  { %v436_v22 = vadd.f32 %v372_v18, %v274_v19  ;;  %1215 = vmatmul.msk.f32.gmra.mxu0 %vm74_vm0, %v531_v20  ;;  %v538_v19 = vsel %vm474_vm8, %v442_v0, %v506_v9  ;;  %vm1124_vm8 = vcmask 1044484  }
 0x102   :  { %v500_v24 = vmul.f32 0.2, %v436_v22  ;;  %vm468_vm1 = vcmp.gt.f32.partialorder %v436_v22, 0.0 }
 0x104   :  { %v532_v26 = vsel %vm468_vm1, %v436_v22, %v500_v24 }
 0x105   :  { %1216 = vmatmul.msk.f32.vlgmr.msra.gmra.mxu2 %vm74_vm0, %v532_v26  ;;  %v507_v26 = vmul.f32 0.2, %v443_v14 }
 0x107   :  { %v277_v28 = vpop.f32.mrf.mxu1  ;;  %v539_v42 = vsel %vm475_vm14, %v443_v14, %v507_v26 }
 0x108   :  { %v437_v30 = vadd.f32 %v373_v27, %v277_v28  ;;  %v380_v27 = vperm.slane %v349_v15, 0 }
 0x10a   :  { %v501_v31 = vmul.f32 0.2, %v437_v30  ;;  %vm469_vm2 = vcmp.gt.f32.partialorder %v437_v30, 0.0  ;;  %v444_v40 = vadd.f32 %v380_v27, %v298_v61 }
 0x10c   :  { %v533_v35 = vsel %vm469_vm2, %v437_v30, %v501_v31  ;;  %v508_v51 = vmul.f32 0.2, %v444_v40  ;;  %vm476_vm1 = vcmp.gt.f32.partialorder %v444_v40, 0.0 }
 0x10d   :  { %1217 = vmatmul.msk.f32.gmra.mxu2 %vm74_vm0, %v533_v35  ;;  %v670_v36 = vpop.f32.mrf.mxu0 }
 0x10e   :  { %v671_v3 = vadd.f32 %v1508_v62, %v670_v36  ;;  %v1527_v36 = vadd.f32 %v1462_v46, %v1485_v60 }
 0x110   :  { %v798_v11 = vmul.f32 0.2, %v671_v3  ;;  %vm766_vm9 = vcmp.gt.f32.partialorder %v671_v3, 0.0  ;;  %v350_v55 = vrot.slane %v1527_v36, 1 }
 0x112   :  { %v830_v20 = vsel %vm766_vm9, %v671_v3, %v798_v11  ;;  %v540_v3 = vsel %vm476_vm1, %v444_v40, %v508_v51  ;;  %v382_v11 = vperm.slane %v350_v55, 0  ;;  %vm1126_vm9 = vcmask 1045509  }
 0x113   :  { %v862_v21 = vsel %vm74_vm0, %v830_v20, -inf }
 0x114   :  { %v863_v37 = vrot.slane %v862_v21, 4 }
 0x115   :  { %1218 = vmatmul.msk.f32.gmra.mxu2 %vm74_vm0, %v534_v41  ;;  %v673_v43 = vpop.f32.mrf.mxu0 }
 0x116   :  { %v674_v1 = vadd.f32 %v1508_v62, %v673_v43  ;;  %v304_v43 = vpop.f32.mrf.mxu3  ;;  %v864_v46 = vmax.f32 %v862_v21, %v863_v37 }
 0x118   :  { %v799_v10 = vmul.f32 0.2, %v674_v1  ;;  %vm767_vm7 = vcmp.gt.f32.partialorder %v674_v1, 0.0  ;;  %v865_v61 = vrot.slane %v864_v46, 2 }
 0x11a   :  { %v831_v18 = vsel %vm767_vm7, %v674_v1, %v799_v10 }
 0x11b   :  { %v869_v28 = vsel %vm74_vm0, %v831_v18, -inf }
 0x11c   :  { %v870_v33 = vrot.slane %v869_v28, 4 }
 0x11d   :  { %1219 = vmatmul.msk.f32.gmra.mxu2 %vm74_vm0, %v535_v49  ;;  %v676_v50 = vpop.f32.mrf.mxu0 }
 0x11e   :  { %v677_v4 = vadd.f32 %v1508_v62, %v676_v50  ;;  %v871_v47 = vmax.f32 %v869_v28, %v870_v33  ;;  %v381_v50 = vperm.slane %v1527_v36, 0 }
 0x120   :  { %v800_v12 = vmul.f32 0.2, %v677_v4  ;;  %vm768_vm10 = vcmp.gt.f32.partialorder %v677_v4, 0.0  ;;  %v445_v59 = vadd.f32 %v381_v50, %v301_v16 }
 0x122   :  { %v832_v22 = vsel %vm768_vm10, %v677_v4, %v800_v12  ;;  %v509_v10 = vmul.f32 0.2, %v445_v59  ;;  %v307_v12 = vpop.f32.mrf.mxu3  ;;  %vm477_vm3 = vcmp.gt.f32.partialorder %v445_v59, 0.0  ;;  %vm1128_vm10 = vcmask 1046534  }
 0x123   :  { %v876_v30 = vsel %vm74_vm0, %v832_v22, -inf }
 0x124   :  { %v877_v38 = vrot.slane %v876_v30, 4 }
 0x125   :  { %1220 = vmatmul.msk.f32.gmra.mxu2 %vm74_vm0, %v536_v56  ;;  %v679_v57 = vpop.f32.mrf.mxu0  ;;  %v872_v56 = vrot.slane %v871_v47, 2 }
 0x126   :  { %v680_v6 = vadd.f32 %v1508_v62, %v679_v57  ;;  %v878_v60 = vmax.f32 %v876_v30, %v877_v38  ;;  %v541_v30 = vsel %vm477_vm3, %v445_v59, %v509_v10 }
 0x128   :  { %v801_v13 = vmul.f32 0.2, %v680_v6  ;;  %vm769_vm11 = vcmp.gt.f32.partialorder %v680_v6, 0.0  ;;  %v879_v63 = vrot.slane %v878_v60, 2 }
 0x12a   :  { %v833_v24 = vsel %vm769_vm11, %v680_v6, %v801_v13  ;;  %v873_v6 = vmax.f32 %v871_v47, %v872_v56  ;;  %v866_v13 = vmax.f32 %v864_v46, %v865_v61  ;;  %v880_v14 = vmax.f32 %v878_v60, %v879_v63 }
 0x12b   :  { %v883_v32 = vsel %vm74_vm0, %v833_v24, -inf  ;;  %v446_v24 = vadd.f32 %v382_v11, %v304_v43  ;;  %vm1130_vm11 = vcmask 1047559  }
 0x12c   :  { %v884_v41 = vrot.slane %v883_v32, 4  ;;  %v874_v20 = vrot.slane %v873_v6, 1  ;;  %v867_v28 = vrot.slane %v866_v13, 1 }
 0x12d   :  { %1221 = vmatmul.msk.f32.gmra.mxu2 %vm74_vm0, %v537_v2  ;;  %v682_v5 = vpop.f32.mrf.mxu0  ;;  %v510_v38 = vmul.f32 0.2, %v446_v24  ;;  %vm478_vm7 = vcmp.gt.f32.partialorder %v446_v24, 0.0 }
 0x12e   :  { %v683_v8 = vadd.f32 %v1508_v62, %v682_v5  ;;  %v885_v52 = vmax.f32 %v883_v32, %v884_v41  ;;  %v868_v41 = vmax.f32 %v866_v13, %v867_v28  ;;  %v356_v28 = vrot.slane %v1527_v36, 7 }
 0x130   :  { %v802_v17 = vmul.f32 0.2, %v683_v8  ;;  %vm770_vm12 = vcmp.gt.f32.partialorder %v683_v8, 0.0  ;;  %v886_v1 = vrot.slane %v885_v52, 2 }
 0x132   :  { %v834_v29 = vsel %vm770_vm12, %v683_v8, %v802_v17  ;;  %v887_v15 = vmax.f32 %v885_v52, %v886_v1 }
 0x133   :  { %v890_v34 = vsel %vm74_vm0, %v834_v29, -inf }
 0x134   :  { %v891_v44 = vrot.slane %v890_v34, 4  ;;  %v888_v29 = vrot.slane %v887_v15, 1 }
 0x135   :  { %1222 = vmatmul.msk.f32.gmra.mxu2 %vm74_vm0, %v538_v19  ;;  %v685_v23 = vpop.f32.mrf.mxu0  ;;  %v351_v19 = vrot.slane %v1527_v36, 2 }
 0x136   :  { %v686_v25 = vadd.f32 %v1508_v62, %v685_v23  ;;  %v892_v54 = vmax.f32 %v890_v34, %v891_v44  ;;  %v875_v34 = vmax.f32 %v873_v6, %v874_v20  ;;  %v310_v44 = vpop.f32.mrf.mxu3 }
 0x137   :  { %v383_v33 = vperm.slane %v351_v19, 0 }
 0x138   :  { %vm771_vm13 = vcmp.gt.f32.partialorder %v686_v25, 0.0  ;;  %v803_v31 = vmul.f32 0.2, %v686_v25  ;;  %v893_v4 = vrot.slane %v892_v54, 2 }
 0x139   :  { %v447_v46 = vadd.f32 %v383_v33, %v307_v12 }
 0x13a   :  { %v835_v35 = vsel %vm771_vm13, %v686_v25, %v803_v31  ;;  %v894_v18 = vmax.f32 %v892_v54, %v893_v4  ;;  %v881_v25 = vrot.slane %v880_v14, 1  ;;  %v542_v54 = vsel %vm478_vm7, %v446_v24, %v510_v38 }
 0x13b   :  { %v897_v39 = vsel %vm74_vm0, %v835_v35, -inf  ;;  %v511_v61 = vmul.f32 0.2, %v447_v46  ;;  %vm479_vm12 = vcmp.gt.f32.partialorder %v447_v46, 0.0  ;;  %v388_v38 = vperm.slane %v356_v28, 0 }
 0x13c   :  { %v898_v48 = vrot.slane %v897_v39, 4  ;;  %v895_v31 = vrot.slane %v894_v18, 1 }
 0x13d   :  { %1223 = vmatmul.msk.f32.gmra.mxu2 %vm74_vm0, %v539_v42  ;;  %v688_v45 = vpop.f32.mrf.mxu0  ;;  %v889_v42 = vmax.f32 %v887_v15, %v888_v29  ;;  %v543_v4 = vsel %vm479_vm12, %v447_v46, %v511_v61 }
 0x13e   :  { %v689_v49 = vadd.f32 %v1508_v62, %v688_v45  ;;  %v899_v57 = vmax.f32 %v897_v39, %v898_v48  ;;  %v882_v39 = vmax.f32 %v880_v14, %v881_v25  ;;  %v352_v45 = vrot.slane %v1527_v36, 3  ;;  %v313_v1 = vpop.f32.mrf.mxu3 }
 0x13f   :  { %v896_v47 = vmax.f32 %v894_v18, %v895_v31  ;;  %v1119_v48 = vsel %vm1118_vm4, %v875_v34, %v868_v41 }
 0x140   :  { %vm772_vm15 = vcmp.gt.f32.partialorder %v689_v49, 0.0  ;;  %v804_v53 = vmul.f32 0.2, %v689_v49  ;;  %v900_v7 = vrot.slane %v899_v57, 2  ;;  %v1121_v60 = vsel %vm1120_vm5, %v882_v39, %v1119_v48 }
 0x141   :  { %v1123_v52 = vsel %vm1122_vm6, %v889_v42, %v1121_v60  ;;  %v384_v63 = vperm.slane %v352_v45, 0 }
 0x142   :  { %v836_v58 = vsel %vm772_vm15, %v689_v49, %v804_v53  ;;  %v901_v22 = vmax.f32 %v899_v57, %v900_v7  ;;  %v1125_v55 = vsel %vm1124_vm8, %v896_v47, %v1123_v52 }
 0x143   :  { %v904_v0 = vsel %vm74_vm0, %v836_v58, -inf }
 0x144   :  { %v905_v2 = vrot.slane %v904_v0, 4  ;;  %v902_v35 = vrot.slane %v901_v22, 1 }
 0x145   :  { %1224 = vmatmul.msk.f32.gmra.mxu2 %vm74_vm0, %v540_v3  ;;  %v691_v5 = vpop.f32.mrf.mxu0  ;;  %v353_v3 = vrot.slane %v1527_v36, 4 }
 0x146   :  { %v906_v8 = vmax.f32 %v904_v0, %v905_v2  ;;  %v692_v9 = vadd.f32 %v1508_v62, %v691_v5  ;;  %v903_v49 = vmax.f32 %v901_v22, %v902_v35  ;;  %v448_v2 = vadd.f32 %v384_v63, %v310_v44  ;;  %v316_v11 = vpop.f32.mrf.mxu3 }
 0x147   :  { %v385_v7 = vperm.slane %v353_v3, 0 }
 0x148   :  { %v907_v16 = vrot.slane %v906_v8, 2  ;;  %vm773_vm2 = vcmp.gt.f32.partialorder %v692_v9, 0.0  ;;  %v805_v17 = vmul.f32 0.2, %v692_v9  ;;  %v1127_v57 = vsel %vm1126_vm9, %v903_v49, %v1125_v55 }
 0x149   :  { %v512_v6 = vmul.f32 0.2, %v448_v2  ;;  %vm480_vm13 = vcmp.gt.f32.partialorder %v448_v2, 0.0 }
 0x14a   :  { %v837_v23 = vsel %vm773_vm2, %v692_v9, %v805_v17  ;;  %v908_v26 = vmax.f32 %v906_v8, %v907_v16  ;;  %v449_v8 = vadd.f32 %v385_v7, %v313_v1  ;;  %v354_v9 = vrot.slane %v1527_v36, 5 }
 0x14b   :  { %v911_v27 = vsel %vm74_vm0, %v837_v23, -inf  ;;  %v544_v10 = vsel %vm480_vm13, %v448_v2, %v512_v6  ;;  %v355_v16 = vrot.slane %v1527_v36, 6 }
 0x14c   :  { %v912_v21 = vrot.slane %v911_v27, 4  ;;  %v909_v40 = vrot.slane %v908_v26, 1  ;;  %v513_v13 = vmul.f32 0.2, %v449_v8  ;;  %v386_v14 = vperm.slane %v354_v9, 0 }
 0x14d   :  { %1225 = vmatmul.msk.f32.gmra.mxu2 %vm74_vm0, %v541_v30  ;;  %v1540_v32 = vpop.f32.mrf.mxu0  ;;  %vm481_vm14 = vcmp.gt.f32.partialorder %v449_v8, 0.0  ;;  %v387_v23 = vperm.slane %v355_v16, 0 }
 0x14e   :  { %v913_v37 = vmax.f32 %v911_v27, %v912_v21  ;;  %v910_v51 = vmax.f32 %v908_v26, %v909_v40  ;;  %v450_v15 = vadd.f32 %v386_v14, %v316_v11  ;;  %v545_v17 = vsel %vm481_vm14, %v449_v8, %v513_v13  ;;  %v319_v19 = vpop.f32.mrf.mxu3 }
 0x14f   :  { %v695_v25 = vadd.f32 %v1508_v62, %v1540_v32  ;;  %v451_v21 = vadd.f32 %v387_v23, %v319_v19 }
 0x150   :  { %v914_v43 = vrot.slane %v913_v37, 2  ;;  %v1129_v59 = vsel %vm1128_vm10, %v910_v51, %v1127_v57  ;;  %v514_v22 = vmul.f32 0.2, %v450_v15  ;;  %vm482_vm15 = vcmp.gt.f32.partialorder %v450_v15, 0.0 }
 0x151   :  { %v806_v33 = vmul.f32 0.2, %v695_v25  ;;  %vm774_vm3 = vcmp.gt.f32.partialorder %v695_v25, 0.0  ;;  %v515_v36 = vmul.f32 0.2, %v451_v21  ;;  %vm483_vm14 = vcmp.gt.f32.partialorder %v451_v21, 0.0 }
 0x152   :  { %v915_v50 = vmax.f32 %v913_v37, %v914_v43  ;;  %v546_v31 = vsel %vm482_vm15, %v450_v15, %v514_v22 }
 0x153   :  { %v838_v43 = vsel %vm774_vm3, %v695_v25, %v806_v33  ;;  %v547_v51 = vsel %vm483_vm14, %v451_v21, %v515_v36 }
 0x154   :  { %v916_v53 = vrot.slane %v915_v50, 1  ;;  %v918_v46 = vsel %vm74_vm0, %v838_v43, -inf }
 0x155   :  { %1226 = vmatmul.msk.f32.gmra.mxu2 %vm74_vm0, %v542_v54  ;;  %v697_v56 = vpop.f32.mrf.mxu0 }
 0x156   :  { %v917_v58 = vmax.f32 %v915_v50, %v916_v53  ;;  %v698_v20 = vadd.f32 %v1508_v62, %v697_v56  ;;  %v322_v42 = vpop.f32.mrf.mxu3 }
 0x157   :  { %v452_v50 = vadd.f32 %v388_v38, %v322_v42 }
 0x158   :  { %v1131_v0 = vsel %vm1130_vm11, %v917_v58, %v1129_v59  ;;  %v807_v29 = vmul.f32 0.2, %v698_v20  ;;  %vm775_vm1 = vcmp.gt.f32.partialorder %v698_v20, 0.0  ;;  %v919_v58 = vrot.slane %v918_v46, 4 }
 0x159   :  { %1157 = vst.msk [vmem:[%s1654_s7] sm:$0xff] %vm74_vm0, %v1131_v0  ;;  %v516_v61 = vmul.f32 0.2, %v452_v50 }
 0x15a   :  { %v839_v39 = vsel %vm775_vm1, %v698_v20, %v807_v29  ;;  %vm484_vm1 = vcmp.gt.f32.partialorder %v452_v50, 0.0 }
 0x15b   :  { %v925_v45 = vsel %vm74_vm0, %v839_v39, -inf }
 0x15c   :  { %v926_v52 = vrot.slane %v925_v45, 4 }
 0x15d   :  { %1227 = vmatmul.msk.f32.gmra.mxu2 %vm74_vm0, %v543_v4  ;;  %v700_v5 = vpop.f32.mrf.mxu0 }
 0x15e   :  { %v701_v24 = vadd.f32 %v1508_v62, %v700_v5  ;;  %v927_v1 = vmax.f32 %v925_v45, %v926_v52  ;;  %v920_v5 = vmax.f32 %v918_v46, %v919_v58 }
 0x160   :  { %v808_v30 = vmul.f32 0.2, %v701_v24  ;;  %vm776_vm2 = vcmp.gt.f32.partialorder %v701_v24, 0.0  ;;  %v928_v11 = vrot.slane %v927_v1, 2  ;;  %v921_v15 = vrot.slane %v920_v5, 2 }
 0x162   :  { %v840_v40 = vsel %vm776_vm2, %v701_v24, %v808_v30  ;;  %v929_v19 = vmax.f32 %v927_v1, %v928_v11  ;;  %v922_v25 = vmax.f32 %v920_v5, %v921_v15 }
 0x163   :  { %v932_v48 = vsel %vm74_vm0, %v840_v40, -inf }
 0x164   :  { %v933_v55 = vrot.slane %v932_v48, 4  ;;  %v930_v29 = vrot.slane %v929_v19, 1 }
 0x165   :  { %1228 = vmatmul.msk.f32.gmra.mxu2 %vm74_vm0, %v544_v10  ;;  %v703_v12 = vpop.f32.mrf.mxu0  ;;  %v548_v10 = vsel %vm484_vm1, %v452_v50, %v516_v61 }
 0x166   :  { %v704_v26 = vadd.f32 %v1508_v62, %v703_v12  ;;  %v934_v3 = vmax.f32 %v932_v48, %v933_v55  ;;  %v931_v36 = vmax.f32 %v929_v19, %v930_v29 }
 0x168   :  { %v809_v34 = vmul.f32 0.2, %v704_v26  ;;  %vm777_vm7 = vcmp.gt.f32.partialorder %v704_v26, 0.0  ;;  %v935_v13 = vrot.slane %v934_v3, 2 }
 0x16a   :  { %v841_v44 = vsel %vm777_vm7, %v704_v26, %v809_v34  ;;  %v936_v23 = vmax.f32 %v934_v3, %v935_v13 }
 0x16b   :  { %v939_v60 = vsel %vm74_vm0, %v841_v44, -inf }
 0x16c   :  { %v940_v59 = vrot.slane %v939_v60, 4 }
 0x16d   :  { %1229 = vmatmul.msk.f32.gmra.mxu2 %vm74_vm0, %v545_v17  ;;  %v706_v18 = vpop.f32.mrf.mxu0 }
 0x16e   :  { %v707_v27 = vadd.f32 %v1508_v62, %v706_v18  ;;  %v941_v6 = vmax.f32 %v939_v60, %v940_v59 }
 0x170   :  { %v810_v32 = vmul.f32 0.2, %v707_v27  ;;  %vm778_vm12 = vcmp.gt.f32.partialorder %v707_v27, 0.0  ;;  %v942_v16 = vrot.slane %v941_v6, 2 }
 0x172   :  { %v842_v47 = vsel %vm778_vm12, %v707_v27, %v810_v32  ;;  %v943_v26 = vmax.f32 %v941_v6, %v942_v16 }
 0x173   :  { %v946_v53 = vsel %vm74_vm0, %v842_v47, -inf }
 0x174   :  { %v947_v63 = vrot.slane %v946_v53, 4  ;;  %v944_v32 = vrot.slane %v943_v26, 1 }
 0x175   :  { %1230 = vmatmul.msk.f32.gmra.mxu2 %vm74_vm0, %v546_v31  ;;  %v709_v35 = vpop.f32.mrf.mxu0  ;;  %v937_v31 = vrot.slane %v936_v23, 1 }
 0x176   :  { %v710_v37 = vadd.f32 %v1508_v62, %v709_v35  ;;  %v948_v8 = vmax.f32 %v946_v53, %v947_v63  ;;  %v923_v35 = vrot.slane %v922_v25, 1  ;;  %v945_v45 = vmax.f32 %v943_v26, %v944_v32 }
 0x177   :  { %v938_v42 = vmax.f32 %v936_v23, %v937_v31 }
 0x178   :  { %vm779_vm13 = vcmp.gt.f32.partialorder %v710_v37, 0.0  ;;  %v811_v41 = vmul.f32 0.2, %v710_v37  ;;  %v949_v17 = vrot.slane %v948_v8, 2  ;;  %v924_v44 = vmax.f32 %v922_v25, %v923_v35 }
 0x17a   :  { %v843_v49 = vsel %vm779_vm13, %v710_v37, %v811_v41  ;;  %v950_v28 = vmax.f32 %v948_v8, %v949_v17 }
 0x17b   :  { %v953_v56 = vsel %vm74_vm0, %v843_v49, -inf  ;;  %v1132_v49 = vsel %vm1118_vm4, %v931_v36, %v924_v44 }
 0x17c   :  { %v954_v2 = vrot.slane %v953_v56, 4  ;;  %v951_v38 = vrot.slane %v950_v28, 1  ;;  %v1133_v60 = vsel %vm1120_vm5, %v938_v42, %v1132_v49 }
 0x17d   :  { %1231 = vmatmul.msk.f32.gmra.mxu2 %vm74_vm0, %v547_v51  ;;  %v712_v54 = vpop.f32.mrf.mxu0  ;;  %v1134_v52 = vsel %vm1122_vm6, %v945_v45, %v1133_v60 }
 0x17e   :  { %v713_v57 = vadd.f32 %v1508_v62, %v712_v54  ;;  %v955_v12 = vmax.f32 %v953_v56, %v954_v2  ;;  %v952_v48 = vmax.f32 %v950_v28, %v951_v38 }
 0x180   :  { %vm780_vm15 = vcmp.gt.f32.partialorder %v713_v57, 0.0  ;;  %v812_v0 = vmul.f32 0.2, %v713_v57  ;;  %v956_v20 = vrot.slane %v955_v12, 2  ;;  %v1135_v54 = vsel %vm1124_vm8, %v952_v48, %v1134_v52 }
 0x182   :  { %v844_v4 = vsel %vm780_vm15, %v713_v57, %v812_v0  ;;  %v957_v21 = vmax.f32 %v955_v12, %v956_v20 }
 0x183   :  { %v960_v7 = vsel %vm74_vm0, %v844_v4, -inf }
 0x184   :  { %v961_v9 = vrot.slane %v960_v7, 4  ;;  %v958_v40 = vrot.slane %v957_v21, 1 }
 0x185   :  { %1232 = vmatmul.msk.f32.gmra.mxu2 %vm74_vm0, %v548_v10 }
 0x186   :  { %v962_v14 = vmax.f32 %v960_v7, %v961_v9  ;;  %v959_v50 = vmax.f32 %v957_v21, %v958_v40 }
 0x188   :  { %v715_v18 = vpop.f32.mrf.mxu2  ;;  %v963_v24 = vrot.slane %v962_v14, 2  ;;  %v1136_v56 = vsel %vm1126_vm9, %v959_v50, %v1135_v54 }
 0x189   :  { %v716_v22 = vadd.f32 %v1508_v62, %v715_v18 }
 0x18a   :  { %v964_v33 = vmax.f32 %v962_v14, %v963_v24 }
 0x18b   :  { %vm781_vm2 = vcmp.gt.f32.partialorder %v716_v22, 0.0  ;;  %v813_v27 = vmul.f32 0.2, %v716_v22 }
 0x18c   :  { %v965_v43 = vrot.slane %v964_v33, 1 }
 0x18d   :  { %v845_v30 = vsel %vm781_vm2, %v716_v22, %v813_v27 }
 0x18e   :  { %v967_v34 = vsel %vm74_vm0, %v845_v30, -inf  ;;  %v966_v51 = vmax.f32 %v964_v33, %v965_v43 }
 0x18f   :  { %v968_v37 = vrot.slane %v967_v34, 4 }
 0x190   :  { %v718_v39 = vpop.f32.mrf.mxu2  ;;  %v1137_v58 = vsel %vm1128_vm10, %v966_v51, %v1136_v56 }
 0x191   :  { %v969_v41 = vmax.f32 %v967_v34, %v968_v37  ;;  %v719_v1 = vadd.f32 %v1508_v62, %v718_v39 }
 0x193   :  { %v970_v47 = vrot.slane %v969_v41, 2  ;;  %v814_v7 = vmul.f32 0.2, %v719_v1  ;;  %vm782_vm7 = vcmp.gt.f32.partialorder %v719_v1, 0.0 }
 0x195   :  { %v971_v46 = vmax.f32 %v969_v41, %v970_v47  ;;  %v846_v12 = vsel %vm782_vm7, %v719_v1, %v814_v7 }
 0x196   :  { %v974_v19 = vsel %vm74_vm0, %v846_v12, -inf }
 0x197   :  { %v972_v53 = vrot.slane %v971_v46, 1  ;;  %v975_v27 = vrot.slane %v974_v19, 4 }
 0x198   :  { %v721_v55 = vpop.f32.mrf.mxu2 }
 0x199   :  { %v973_v57 = vmax.f32 %v971_v46, %v972_v53  ;;  %v722_v0 = vadd.f32 %v1508_v62, %v721_v55  ;;  %v976_v32 = vmax.f32 %v974_v19, %v975_v27 }
 0x19b   :  { %v1138_v59 = vsel %vm1130_vm11, %v973_v57, %v1137_v58  ;;  %v815_v6 = vmul.f32 0.2, %v722_v0  ;;  %vm783_vm3 = vcmp.gt.f32.partialorder %v722_v0, 0.0  ;;  %v977_v43 = vrot.slane %v976_v32, 2 }
 0x19c   :  { %1158 = vst.msk [vmem:[%s1654_s7 + $0x8] sm:$0xff] %vm74_vm0, %v1138_v59 }
 0x19d   :  { %v847_v11 = vsel %vm783_vm3, %v722_v0, %v815_v6  ;;  %v978_v53 = vmax.f32 %v976_v32, %v977_v43 }
 0x19e   :  { %v981_v17 = vsel %vm74_vm0, %v847_v11, -inf }
 0x19f   :  { %v982_v24 = vrot.slane %v981_v17, 4 }
 0x1a0   :  { %v724_v61 = vpop.f32.mrf.mxu2 }
 0x1a1   :  { %v725_v2 = vadd.f32 %v1508_v62, %v724_v61  ;;  %v983_v33 = vmax.f32 %v981_v17, %v982_v24 }
 0x1a3   :  { %v816_v8 = vmul.f32 0.2, %v725_v2  ;;  %vm784_vm12 = vcmp.gt.f32.partialorder %v725_v2, 0.0  ;;  %v984_v40 = vrot.slane %v983_v33, 2 }
 0x1a5   :  { %v848_v13 = vsel %vm784_vm12, %v725_v2, %v816_v8  ;;  %v985_v46 = vmax.f32 %v983_v33, %v984_v40 }
 0x1a6   :  { %v988_v20 = vsel %vm74_vm0, %v848_v13, -inf }
 0x1a7   :  { %v989_v28 = vrot.slane %v988_v20, 4  ;;  %v986_v59 = vrot.slane %v985_v46, 1 }
 0x1a8   :  { %v727_v63 = vpop.f32.mrf.mxu2 }
 0x1a9   :  { %v728_v4 = vadd.f32 %v1508_v62, %v727_v63  ;;  %v990_v37 = vmax.f32 %v988_v20, %v989_v28  ;;  %v987_v8 = vmax.f32 %v985_v46, %v986_v59 }
 0x1ab   :  { %v817_v9 = vmul.f32 0.2, %v728_v4  ;;  %vm785_vm13 = vcmp.gt.f32.partialorder %v728_v4, 0.0  ;;  %v991_v44 = vrot.slane %v990_v37, 2 }
 0x1ad   :  { %v849_v15 = vsel %vm785_vm13, %v728_v4, %v817_v9  ;;  %v992_v54 = vmax.f32 %v990_v37, %v991_v44 }
 0x1ae   :  { %v995_v23 = vsel %vm74_vm0, %v849_v15, -inf }
 0x1af   :  { %v996_v21 = vrot.slane %v995_v23, 4  ;;  %v993_v0 = vrot.slane %v992_v54, 1 }
 0x1b0   :  { %v730_v3 = vpop.f32.mrf.mxu2 }
 0x1b1   :  { %v731_v5 = vadd.f32 %v1508_v62, %v730_v3  ;;  %v997_v38 = vmax.f32 %v995_v23, %v996_v21  ;;  %v979_v3 = vrot.slane %v978_v53, 1  ;;  %v994_v11 = vmax.f32 %v992_v54, %v993_v0 }
 0x1b3   :  { %v818_v10 = vmul.f32 0.2, %v731_v5  ;;  %vm786_vm14 = vcmp.gt.f32.partialorder %v731_v5, 0.0  ;;  %v998_v47 = vrot.slane %v997_v38, 2  ;;  %v980_v13 = vmax.f32 %v978_v53, %v979_v3 }
 0x1b5   :  { %v850_v18 = vsel %vm786_vm14, %v731_v5, %v818_v10  ;;  %v999_v55 = vmax.f32 %v997_v38, %v998_v47  ;;  %v1139_v17 = vsel %vm1118_vm4, %v987_v8, %v980_v13 }
 0x1b6   :  { %v1002_v25 = vsel %vm74_vm0, %v850_v18, -inf  ;;  %v1140_v20 = vsel %vm1120_vm5, %v994_v11, %v1139_v17 }
 0x1b7   :  { %v1003_v30 = vrot.slane %v1002_v25, 4  ;;  %v1000_v4 = vrot.slane %v999_v55, 1 }
 0x1b8   :  { %v733_v14 = vpop.f32.mrf.mxu2 }
 0x1b9   :  { %v734_v16 = vadd.f32 %v1508_v62, %v733_v14  ;;  %v1004_v36 = vmax.f32 %v1002_v25, %v1003_v30  ;;  %v1001_v14 = vmax.f32 %v999_v55, %v1000_v4 }
 0x1bb   :  { %vm787_vm15 = vcmp.gt.f32.partialorder %v734_v16, 0.0  ;;  %v819_v22 = vmul.f32 0.2, %v734_v16  ;;  %v1005_v49 = vrot.slane %v1004_v36, 2  ;;  %v1141_v23 = vsel %vm1122_vm6, %v1001_v14, %v1140_v20 }
 0x1bd   :  { %v851_v26 = vsel %vm787_vm15, %v734_v16, %v819_v22  ;;  %v1006_v58 = vmax.f32 %v1004_v36, %v1005_v49 }
 0x1be   :  { %v1009_v29 = vsel %vm74_vm0, %v851_v26, -inf }
 0x1bf   :  { %v1010_v34 = vrot.slane %v1009_v29, 4  ;;  %v1007_v6 = vrot.slane %v1006_v58, 1 }
 0x1c0   :  { %v736_v31 = vpop.f32.mrf.mxu2 }
 0x1c1   :  { %v737_v35 = vadd.f32 %v1508_v62, %v736_v31  ;;  %v1011_v41 = vmax.f32 %v1009_v29, %v1010_v34  ;;  %v1008_v16 = vmax.f32 %v1006_v58, %v1007_v6 }
 0x1c3   :  { %vm788_vm1 = vcmp.gt.f32.partialorder %v737_v35, 0.0  ;;  %v820_v39 = vmul.f32 0.2, %v737_v35  ;;  %v1012_v60 = vrot.slane %v1011_v41, 2  ;;  %v1142_v25 = vsel %vm1124_vm8, %v1008_v16, %v1141_v23 }
 0x1c5   :  { %v852_v42 = vsel %vm788_vm1, %v737_v35, %v820_v39  ;;  %v1013_v61 = vmax.f32 %v1011_v41, %v1012_v60 }
 0x1c6   :  { %v1016_v45 = vsel %vm74_vm0, %v852_v42, -inf }
 0x1c7   :  { %v1017_v48 = vrot.slane %v1016_v45, 4  ;;  %v1014_v9 = vrot.slane %v1013_v61, 1 }
 0x1c8   :  { %v739_v50 = vpop.f32.mrf.mxu2 }
 0x1c9   :  { %v1018_v51 = vmax.f32 %v1016_v45, %v1017_v48  ;;  %v740_v52 = vadd.f32 %v1508_v62, %v739_v50  ;;  %v1015_v18 = vmax.f32 %v1013_v61, %v1014_v9 }
 0x1cb   :  { %v1019_v56 = vrot.slane %v1018_v51, 2  ;;  %vm789_vm2 = vcmp.gt.f32.partialorder %v740_v52, 0.0  ;;  %v821_v57 = vmul.f32 0.2, %v740_v52  ;;  %v1143_v27 = vsel %vm1126_vm9, %v1015_v18, %v1142_v25 }
 0x1cd   :  { %v853_v63 = vsel %vm789_vm2, %v740_v52, %v821_v57  ;;  %v1020_v1 = vmax.f32 %v1018_v51, %v1019_v56 }
 0x1ce   :  { %v1023_v2 = vsel %vm74_vm0, %v853_v63, -inf }
 0x1cf   :  { %v1024_v5 = vrot.slane %v1023_v2, 4  ;;  %v1021_v12 = vrot.slane %v1020_v1, 1 }
 0x1d0   :  { %v742_v7 = vpop.f32.mrf.mxu2 }
 0x1d1   :  { %v1025_v10 = vmax.f32 %v1023_v2, %v1024_v5  ;;  %v1022_v22 = vmax.f32 %v1020_v1, %v1021_v12  ;;  %v743_v34 = vadd.f32 %v1508_v62, %v742_v7 }
 0x1d3   :  { %v1026_v15 = vrot.slane %v1025_v10, 2  ;;  %v1144_v29 = vsel %vm1128_vm10, %v1022_v22, %v1143_v27  ;;  %v822_v36 = vmul.f32 0.2, %v743_v34  ;;  %vm790_vm7 = vcmp.gt.f32.partialorder %v743_v34, 0.0 }
 0x1d5   :  { %v1027_v19 = vmax.f32 %v1025_v10, %v1026_v15  ;;  %v854_v44 = vsel %vm790_vm7, %v743_v34, %v822_v36 }
 0x1d6   :  { %v1030_v60 = vsel %vm74_vm0, %v854_v44, -inf }
 0x1d7   :  { %v1028_v24 = vrot.slane %v1027_v19, 1  ;;  %v1031_v57 = vrot.slane %v1030_v60, 4 }
 0x1d8   :  { %v745_v26 = vpop.f32.mrf.mxu2 }
 0x1d9   :  { %v1029_v28 = vmax.f32 %v1027_v19, %v1028_v24  ;;  %v746_v33 = vadd.f32 %v1508_v62, %v745_v26  ;;  %v1032_v4 = vmax.f32 %v1030_v60, %v1031_v57 }
 0x1db   :  { %v1145_v21 = vsel %vm1130_vm11, %v1029_v28, %v1144_v29  ;;  %v823_v39 = vmul.f32 0.2, %v746_v33  ;;  %vm791_vm3 = vcmp.gt.f32.partialorder %v746_v33, 0.0  ;;  %v1033_v12 = vrot.slane %v1032_v4, 2 }
 0x1dc   :  { %1159 = vst.msk [vmem:[%s1654_s7 + $0x10] sm:$0xff] %vm74_vm0, %v1145_v21 }
 0x1dd   :  { %v855_v43 = vsel %vm791_vm3, %v746_v33, %v823_v39  ;;  %v1034_v24 = vmax.f32 %v1032_v4, %v1033_v12 }
 0x1de   :  { %v1037_v50 = vsel %vm74_vm0, %v855_v43, -inf }
 0x1df   :  { %v1038_v54 = vrot.slane %v1037_v50, 4 }
 0x1e0   :  { %v748_v30 = vpop.f32.mrf.mxu2 }
 0x1e1   :  { %v749_v35 = vadd.f32 %v1508_v62, %v748_v30  ;;  %v1039_v1 = vmax.f32 %v1037_v50, %v1038_v54 }
 0x1e3   :  { %v824_v40 = vmul.f32 0.2, %v749_v35  ;;  %vm792_vm12 = vcmp.gt.f32.partialorder %v749_v35, 0.0  ;;  %v1040_v9 = vrot.slane %v1039_v1, 2 }
 0x1e5   :  { %v856_v45 = vsel %vm792_vm12, %v749_v35, %v824_v40  ;;  %v1041_v19 = vmax.f32 %v1039_v1, %v1040_v9 }
 0x1e6   :  { %v1044_v51 = vsel %vm74_vm0, %v856_v45, -inf }
 0x1e7   :  { %v1045_v58 = vrot.slane %v1044_v51, 4  ;;  %v1042_v21 = vrot.slane %v1041_v19, 1 }
 0x1e8   :  { %v751_v31 = vpop.f32.mrf.mxu2 }
 0x1e9   :  { %v752_v37 = vadd.f32 %v1508_v62, %v751_v31  ;;  %v1046_v5 = vmax.f32 %v1044_v51, %v1045_v58  ;;  %v1043_v36 = vmax.f32 %v1041_v19, %v1042_v21 }
 0x1eb   :  { %v825_v41 = vmul.f32 0.2, %v752_v37  ;;  %vm793_vm13 = vcmp.gt.f32.partialorder %v752_v37, 0.0  ;;  %v1047_v13 = vrot.slane %v1046_v5, 2 }
 0x1ed   :  { %v857_v48 = vsel %vm793_vm13, %v752_v37, %v825_v41  ;;  %v1048_v25 = vmax.f32 %v1046_v5, %v1047_v13 }
 0x1ee   :  { %v1051_v53 = vsel %vm74_vm0, %v857_v48, -inf }
 0x1ef   :  { %v1052_v61 = vrot.slane %v1051_v53, 4  ;;  %v1049_v33 = vrot.slane %v1048_v25, 1 }
 0x1f0   :  { %v754_v32 = vpop.f32.mrf.mxu2 }
 0x1f1   :  { %v755_v38 = vadd.f32 %v1508_v62, %v754_v32  ;;  %v1053_v6 = vmax.f32 %v1051_v53, %v1052_v61  ;;  %v1035_v32 = vrot.slane %v1034_v24, 1  ;;  %v1050_v41 = vmax.f32 %v1048_v25, %v1049_v33 }
 0x1f3   :  { %v826_v42 = vmul.f32 0.2, %v755_v38  ;;  %vm794_vm14 = vcmp.gt.f32.partialorder %v755_v38, 0.0  ;;  %v1054_v15 = vrot.slane %v1053_v6, 2  ;;  %v1036_v43 = vmax.f32 %v1034_v24, %v1035_v32 }
 0x1f5   :  { %v858_v46 = vsel %vm794_vm14, %v755_v38, %v826_v42  ;;  %v1055_v26 = vmax.f32 %v1053_v6, %v1054_v15  ;;  %v1146_v48 = vsel %vm1118_vm4, %v1043_v36, %v1036_v43 }
 0x1f6   :  { %v1058_v55 = vsel %vm74_vm0, %v858_v46, -inf  ;;  %v1147_v46 = vsel %vm1120_vm5, %v1050_v41, %v1146_v48 }
 0x1f7   :  { %v1059_v63 = vrot.slane %v1058_v55, 4  ;;  %v1056_v37 = vrot.slane %v1055_v26, 1 }
 0x1f8   :  { %v757_v47 = vpop.f32.mrf.mxu2 }
 0x1f9   :  { %v758_v49 = vadd.f32 %v1508_v62, %v757_v47  ;;  %v1060_v8 = vmax.f32 %v1058_v55, %v1059_v63  ;;  %v1057_v44 = vmax.f32 %v1055_v26, %v1056_v37 }
 0x1fb   :  { %vm795_vm15 = vcmp.gt.f32.partialorder %v758_v49, 0.0  ;;  %v827_v52 = vmul.f32 0.2, %v758_v49  ;;  %v1061_v17 = vrot.slane %v1060_v8, 2  ;;  %v1148_v51 = vsel %vm1122_vm6, %v1057_v44, %v1147_v46 }
 0x1fd   :  { %v859_v56 = vsel %vm795_vm15, %v758_v49, %v827_v52  ;;  %v1062_v29 = vmax.f32 %v1060_v8, %v1061_v17 }
 0x1fe   :  { %v1065_v59 = vsel %vm74_vm0, %v859_v56, -inf }
 0x1ff   :  { %v1066_v2 = vrot.slane %v1065_v59, 4  ;;  %v1063_v39 = vrot.slane %v1062_v29, 1 }
 0x200   :  { %v760_v0 = vpop.f32.mrf.mxu2 }
 0x201   :  { %v761_v3 = vadd.f32 %v1508_v62, %v760_v0  ;;  %v1067_v10 = vmax.f32 %v1065_v59, %v1066_v2  ;;  %v1064_v47 = vmax.f32 %v1062_v29, %v1063_v39 }
 0x203   :  { %vm796_vm1 = vcmp.gt.f32.partialorder %v761_v3, 0.0  ;;  %v828_v7 = vmul.f32 0.2, %v761_v3  ;;  %v1068_v20 = vrot.slane %v1067_v10, 2  ;;  %v1149_v53 = vsel %vm1124_vm8, %v1064_v47, %v1148_v51 }
 0x205   :  { %v860_v11 = vsel %vm796_vm1, %v761_v3, %v828_v7  ;;  %v1069_v30 = vmax.f32 %v1067_v10, %v1068_v20 }
 0x206   :  { %v1072_v14 = vsel %vm74_vm0, %v860_v11, -inf }
 0x207   :  { %v1073_v16 = vrot.slane %v1072_v14, 4 }
 0x208   :  { %v763_v18 = vpop.f32.mrf.mxu2 }
 0x209   :  { %v1074_v22 = vmax.f32 %v1072_v14, %v1073_v16  ;;  %v764_v23 = vadd.f32 %v1508_v62, %v763_v18  ;;  %v1070_v62 = vrot.slane %v1069_v30, 1 }
 0x20b   :  { %v1075_v27 = vrot.slane %v1074_v22, 2  ;;  %vm797_vm2 = vcmp.gt.f32.partialorder %v764_v23, 0.0  ;;  %v829_v28 = vmul.f32 0.2, %v764_v23  ;;  %v1071_v49 = vmax.f32 %v1069_v30, %v1070_v62 }
 0x20d   :  { %v861_v31 = vsel %vm797_vm2, %v764_v23, %v829_v28  ;;  %v1076_v34 = vmax.f32 %v1074_v22, %v1075_v27  ;;  %v1150_v54 = vsel %vm1126_vm9, %v1071_v49, %v1149_v53 }
 0x20e   :  { %v1079_v35 = vsel %vm74_vm0, %v861_v31, -inf }
 0x20f   :  { %v1080_v38 = vrot.slane %v1079_v35, 4  ;;  %v1077_v42 = vrot.slane %v1076_v34, 1 }
 0x211   :  { %v1081_v40 = vmax.f32 %v1079_v35, %v1080_v38  ;;  %v1078_v60 = vmax.f32 %v1076_v34, %v1077_v42 }
 0x213   :  { %v1082_v45 = vrot.slane %v1081_v40, 2  ;;  %v1151_v56 = vsel %vm1128_vm10, %v1078_v60, %v1150_v54 }
 0x215   :  { %v1083_v50 = vmax.f32 %v1081_v40, %v1082_v45 }
 0x217   :  { %v1084_v52 = vrot.slane %v1083_v50, 1 }
 0x219   :  { %v1085_v55 = vmax.f32 %v1083_v50, %v1084_v52 }
 0x21b   :  { %v1152_v57 = vsel %vm1130_vm11, %v1085_v55, %v1151_v56 }
 0x21c   :  { %1160 = vst.msk [vmem:[%s1654_s7 + $0x18] sm:$0xff] %vm74_vm0, %v1152_v57 }

// kernel: dgcnn_forward.13
= control target key start
LH: loop header
LB: loop body
LE: loop exit
PB: predicated region body
PF: predicated region fallthrough
CT: control target
= control target key end

     0   :  { %s365_s0 = inlined_call_operand.vmem [shape: f32[32,96], index: 0, kind: input, shape index: {}]   ;;  %s366_s1 = inlined_call_operand.vmem [shape: f32[96,64], index: 1, kind: input, shape index: {}]   ;;  %s367_s2 = inlined_call_operand.vmem [shape: f32[1,64], index: 2, kind: input, shape index: {}]   ;;  %s368_s3 = inlined_call_operand.vmem [shape: f32[64,32], index: 3, kind: input, shape index: {}]   ;;  %s369_s4 = inlined_call_operand.vmem [shape: f32[1,32], index: 4, kind: input, shape index: {}]   ;;  %s370_s5 = inlined_call_operand.hbm [shape: f32[32,32], index: 5, kind: output, shape index: {}]  }
   0x1   :  { %v36_v0 = vld [vmem:[%s366_s1 + $0x58] sm:$0xff]  ;;  %v35_v1 = vld [vmem:[%s366_s1 + $0x50] sm:$0xff]  ;;  %v34_v2 = vld [vmem:[%s366_s1 + $0x48] sm:$0xff] }
   0x2   :  { %192 = vmatpush.msra.mxu2 %v36_v0  ;;  %58 = vmatpush.msra.mxu0 %v36_v0  ;;  %v33_v3 = vld [vmem:[%s366_s1 + $0x40] sm:$0xff] }
   0x4   :  { %193 = vmatpush.msra.mxu2 %v35_v1  ;;  %59 = vmatpush.msra.mxu0 %v35_v1 }
   0x6   :  { %194 = vmatpush.msra.mxu2 %v34_v2  ;;  %60 = vmatpush.msra.mxu0 %v34_v2 }
   0x7   :  { %10 = vsyncpa [#allocation3], 0  ;;  %v32_v4 = vld [vmem:[%s366_s1 + $0x38] sm:$0xff]  ;;  %v31_v5 = vld [vmem:[%s366_s1 + $0x30] sm:$0xff]  ;;  %vm41_vm0 = vcmask 785408   ;;  %vm107_vm2 = vcmask 523264  }
   0x8   :  { %195 = vmatpush.msra.mxu2 %v33_v3  ;;  %61 = vmatpush.msra.mxu0 %v33_v3  ;;  %v102_v6 = vld [vmem:[%s368_s3 + $0x38] sm:$0xff]  ;;  %v101_v7 = vld [vmem:[%s368_s3 + $0x30] sm:$0xff]  ;;  %v30_v8 = vld [vmem:[%s366_s1 + $0x28] sm:$0xff]  ;;  %vm161_vm7 = vcmask 261120   ;;  %s172_s19 = sshll.u32 %s370_s5, 4  ;;  %s244_s20 = smov 128   ;;  %s173_s19 = int_to_ptr.hbm [resolvable:$true] %s172_s19 }
   0x9   :  { %204 = vmatpush.msra.mxu3 %v102_v6  ;;  %128 = vmatpush.msra.mxu1 %v102_v6  ;;  %v100_v9 = vld [vmem:[%s368_s3 + $0x28] sm:$0xff]  ;;  %v29_v10 = vld [vmem:[%s366_s1 + $0x20] sm:$0xff]  ;;  %v28_v12 = vld [vmem:[%s366_s1 + $0x18] sm:$0xff]  ;;  %s245_s21 = smov 8  }
   0xa   :  { %196 = vmatpush.msra.mxu2 %v32_v4  ;;  %62 = vmatpush.msra.mxu0 %v32_v4  ;;  %v99_v11 = vld [vmem:[%s368_s3 + $0x20] sm:$0xff]  ;;  %v98_v13 = vld [vmem:[%s368_s3 + $0x18] sm:$0xff]  ;;  %v27_v14 = vld [vmem:[%s366_s1 + $0x10] sm:$0xff] }
   0xb   :  { %205 = vmatpush.msra.mxu3 %v101_v7  ;;  %129 = vmatpush.msra.mxu1 %v101_v7  ;;  %v26_v15 = vld [vmem:[%s366_s1 + $0x8] sm:$0xff]  ;;  %v25_v16 = vld [vmem:[%s366_s1] sm:$0xff]  ;;  %v23_v19 = vld [vmem:[%s365_s0 + $0x10] sm:$0xff] }
   0xc   :  { %197 = vmatpush.msra.mxu2 %v31_v5  ;;  %63 = vmatpush.msra.mxu0 %v31_v5  ;;  %v22_v17 = vld [vmem:[%s365_s0 + $0x8] sm:$0xff]  ;;  %v21_v18 = vld [vmem:[%s365_s0] sm:$0xff]  ;;  %v24_v20 = vld [vmem:[%s365_s0 + $0x18] sm:$0xff] }
   0xd   :  { %206 = vmatpush.msra.mxu3 %v100_v9  ;;  %130 = vmatpush.msra.mxu1 %v100_v9  ;;  %v97_v21 = vld [vmem:[%s368_s3 + $0x10] sm:$0xff]  ;;  %v96_v22 = vld [vmem:[%s368_s3 + $0x8] sm:$0xff]  ;;  %v95_v23 = vld [vmem:[%s368_s3] sm:$0xff] }
   0xe   :  { %198 = vmatpush.msra.mxu2 %v30_v8  ;;  %64 = vmatpush.msra.mxu0 %v30_v8  ;;  %v215_v24 = vld [vmem:[%s367_s2] ss:$0 sm:$0xff] }
   0xf   :  { %207 = vmatpush.msra.mxu3 %v99_v11  ;;  %131 = vmatpush.msra.mxu1 %v99_v11  ;;  %v216_v41 = vld [vmem:[%s369_s4] ss:$0 sm:$0xff]  ;;  %s243_s4 = smov [#allocation2]  }
  0x10   :  { %199 = vmatpush.msra.mxu2 %v29_v10  ;;  %65 = vmatpush.msra.mxu0 %v29_v10  ;;  %s170_s16 = sshll.u32 %s243_s4, 4  ;;  %s171_s16 = int_to_ptr.vmem [resolvable:$true] %s170_s16 }
  0x11   :  { %208 = vmatpush.msra.mxu3 %v98_v13  ;;  %132 = vmatpush.msra.mxu1 %v98_v13 }
  0x12   :  { %200 = vmatpush.msra.mxu2 %v28_v12  ;;  %66 = vmatpush.msra.mxu0 %v28_v12 }
  0x13   :  { %209 = vmatpush.msra.mxu3 %v97_v21  ;;  %133 = vmatpush.msra.mxu1 %v97_v21 }
  0x14   :  { %201 = vmatpush.msra.mxu2 %v27_v14  ;;  %67 = vmatpush.msra.mxu0 %v27_v14 }
  0x15   :  { %210 = vmatpush.msra.mxu3 %v96_v22  ;;  %134 = vmatpush.msra.mxu1 %v96_v22 }
  0x16   :  { %202 = vmatpush.msra.mxu2 %v26_v15  ;;  %68 = vmatpush.msra.mxu0 %v26_v15 }
  0x17   :  { %211 = vmatpush.msra.mxu3 %v95_v23  ;;  %135 = vmatpush.msra.mxu1 %v95_v23 }
  0x18   :  { %203 = vmatpush.msra.mxu2 %v25_v16  ;;  %69 = vmatpush.msra.mxu0 %v25_v16 }
  0x19   :  { %185 = vmatmul.msk.f32.vlgmr.msra.gmra.mxu2 %vm41_vm0, %v22_v17  ;;  %184 = vmatmul.msk.f32.vlgmr.msra.gmra.mxu0 %vm41_vm0, %v21_v18 }
  0x21   :  { %186 = vmatmul.msk.f32.gmra.mxu2 %vm41_vm0, %v23_v19 }
  0x29   :  { %187 = vmatmul.msk.f32.gmra.mxu2 %vm41_vm0, %v24_v20 }
  0x96   :  { %v71_v25 = vpop.f32.mrf.mxu0 }
  0x97   :  { %v72_v26 = vadd.f32 %v215_v24, %v71_v25 }
  0x99   :  { %v87_v27 = vmul.f32 0.2, %v72_v26  ;;  %vm83_vm1 = vcmp.gt.f32.partialorder %v72_v26, 0.0 }
  0x9b   :  { %v91_v28 = vsel %vm83_vm1, %v72_v26, %v87_v27 }
  0x9c   :  { %v74_v29 = vpop.f32.mrf.mxu2  ;;  %188 = vmatmul.msk.f32.vlgmr.msra.gmra.mxu1 %vm107_vm2, %v91_v28 }
  0x9d   :  { %v75_v30 = vadd.f32 %v215_v24, %v74_v29 }
  0x9f   :  { %v88_v31 = vmul.f32 0.2, %v75_v30  ;;  %vm84_vm3 = vcmp.gt.f32.partialorder %v75_v30, 0.0 }
  0xa1   :  { %v92_v32 = vsel %vm84_vm3, %v75_v30, %v88_v31 }
  0xa2   :  { %189 = vmatmul.msk.f32.vlgmr.msra.gmra.mxu3 %vm107_vm2, %v92_v32 }
  0xa4   :  { %v77_v33 = vpop.f32.mrf.mxu2 }
  0xa5   :  { %v78_v34 = vadd.f32 %v215_v24, %v77_v33 }
  0xa7   :  { %v89_v35 = vmul.f32 0.2, %v78_v34  ;;  %vm85_vm4 = vcmp.gt.f32.partialorder %v78_v34, 0.0 }
  0xa9   :  { %v93_v36 = vsel %vm85_vm4, %v78_v34, %v89_v35 }
  0xaa   :  { %190 = vmatmul.msk.f32.gmra.mxu3 %vm107_vm2, %v93_v36 }
  0xac   :  { %v80_v37 = vpop.f32.mrf.mxu2 }
  0xad   :  { %v81_v38 = vadd.f32 %v215_v24, %v80_v37 }
  0xaf   :  { %v90_v39 = vmul.f32 0.2, %v81_v38  ;;  %vm86_vm5 = vcmp.gt.f32.partialorder %v81_v38, 0.0 }
  0xb1   :  { %v94_v40 = vsel %vm86_vm5, %v81_v38, %v90_v39 }
  0xb2   :  { %191 = vmatmul.msk.f32.gmra.mxu3 %vm107_vm2, %v94_v40 }
 0x119   :  { %v137_v42 = vpop.f32.mrf.mxu1 }
 0x11a   :  { %v138_v43 = vadd.f32 %v216_v41, %v137_v42 }
 0x11c   :  { %vm149_vm6 = vcmp.gt.f32.partialorder %v138_v43, 0.0  ;;  %v153_v44 = vmul.f32 0.2, %v138_v43 }
 0x11e   :  { %v157_v45 = vsel %vm149_vm6, %v138_v43, %v153_v44 }
 0x11f   :  { %162 = vst.msk [vmem:[#allocation2] sm:$0xff] %vm161_vm7, %v157_v45 }
 0x125   :  { %v140_v46 = vpop.f32.mrf.mxu3 }
 0x126   :  { %v141_v47 = vadd.f32 %v216_v41, %v140_v46 }
 0x128   :  { %vm150_vm8 = vcmp.gt.f32.partialorder %v141_v47, 0.0  ;;  %v154_v48 = vmul.f32 0.2, %v141_v47 }
 0x12a   :  { %v158_v49 = vsel %vm150_vm8, %v141_v47, %v154_v48 }
 0x12b   :  { %163 = vst.msk [vmem:[#allocation2 + $0x8] sm:$0xff] %vm161_vm7, %v158_v49 }
 0x12d   :  { %v143_v50 = vpop.f32.mrf.mxu3 }
 0x12e   :  { %v144_v51 = vadd.f32 %v216_v41, %v143_v50 }
 0x130   :  { %vm151_vm9 = vcmp.gt.f32.partialorder %v144_v51, 0.0  ;;  %v155_v52 = vmul.f32 0.2, %v144_v51 }
 0x132   :  { %v159_v53 = vsel %vm151_vm9, %v144_v51, %v155_v52 }
 0x133   :  { %164 = vst.msk [vmem:[#allocation2 + $0x10] sm:$0xff] %vm161_vm7, %v159_v53 }
 0x135   :  { %v146_v54 = vpop.f32.mrf.mxu3 }
 0x136   :  { %v147_v55 = vadd.f32 %v216_v41, %v146_v54 }
 0x138   :  { %vm152_vm10 = vcmp.gt.f32.partialorder %v147_v55, 0.0  ;;  %v156_v56 = vmul.f32 0.2, %v147_v55 }
 0x13a   :  { %v160_v57 = vsel %vm152_vm10, %v147_v55, %v156_v56 }
 0x13b   :  { %165 = vst.msk [vmem:[#allocation2 + $0x18] sm:$0xff] %vm161_vm7, %v160_v57 }
 0x13c   :  { %178 = dma.vmem_to_hbm [thread:$0]  %s171_s16, 512, %s173_s19, [#allocation3], %s244_s20, %s244_s20, %s245_s21  }
 0x13d   :  { %241 = dma.done.wait [#allocation3], 512  }
 0x13e   :  { %242 = vsyncadd [#allocation3], 4294966784 }
 0x13f   :  { %183 = vsyncpa [#allocation3], 1 }

</bundles_post_ra>
